<compile_context>
chip_gen: v6e
topology: v6e:2x2x1
jax: 0.10.0
libtpu: 0.0.40
codegen_flags: <defaults>
</compile_context>

<pallas_src>
import functools
import math

import jax
import jax.numpy as jnp
from jax.experimental import pallas as pl
from jax.experimental.pallas import tpu as pltpu

HIDDEN_DIMS = (300, 1000, 800)
_LANE = 128


def _round_up(v, m):
    return ((v + m - 1) // m) * m


def _mlp_kernel(x_ref,
                w1_ref, b1_ref,
                w2_ref, b2_ref,
                w3_ref, b3_ref,
                w4_ref, b4_ref,
                o_ref):
    """Fused 4-layer MLP (3x Linear+ReLU, final Linear) for one batch tile.

    bf16 operands on the MXU, f32 accumulation; all padded dims are
    multiples of 128 so every vreg / MXU pass is lane-dense.
    """
    compute_dtype = w1_ref.dtype
    h = x_ref[...].astype(compute_dtype)

    h = jnp.dot(h, w1_ref[...], preferred_element_type=jnp.float32) + b1_ref[...]
    h = jnp.maximum(h.astype(compute_dtype), 0)          # cast-then-ReLU (identical)

    h = jnp.dot(h, w2_ref[...], preferred_element_type=jnp.float32) + b2_ref[...]
    h = jnp.maximum(h.astype(compute_dtype), 0)

    h = jnp.dot(h, w3_ref[...], preferred_element_type=jnp.float32) + b3_ref[...]
    h = jnp.maximum(h.astype(compute_dtype), 0)

    h = jnp.dot(h, w4_ref[...], preferred_element_type=jnp.float32) + b4_ref[...]
    o_ref[...] = h.astype(o_ref.dtype)


@functools.partial(jax.jit, static_argnames=("out_dim",))
def generator_forward(x, params, *, out_dim):
    """x: [batch, inp] float array. params: padded weights/biases (see init).

    Returns [batch, out_dim] float32, matching the PyTorch module's forward.
    """
    w1, b1 = params["w1"], params["b1"]
    w2, b2 = params["w2"], params["b2"]
    w3, b3 = params["w3"], params["b3"]
    w4, b4 = params["w4"], params["b4"]

    batch, inp = x.shape
    inp_pad = w1.shape[0]
    out_pad = w4.shape[1]
    assert inp <= inp_pad and out_dim <= out_pad

    # Batch tile: multiple of 16 (bf16 sublane packing), capped at 512.
    # Small batches -> one step (mem-bound regime, splitting only adds
    # overhead); batches >= ~576 -> >=2 grid steps, amortizing per-step
    # overhead on v5e/v6e and letting v7x shard over both TensorCores.
    tile_b = min(512, _round_up(max(batch, 1), 16))
    batch_pad = _round_up(batch, tile_b)

    # Only pad/cast the input on the wrapper side when it is NOT a no-op;
    # otherwise feed x directly (cast to bf16 inside the kernel). The padded
    # rows/cols are inert through every layer (padded weights/biases are 0).
    if inp != inp_pad or batch != batch_pad:
        x_in = jnp.zeros((batch_pad, inp_pad), dtype=w1.dtype)
        x_in = x_in.at[:batch, :inp].set(x.astype(w1.dtype))
    else:
        x_in = x

    grid = (batch_pad // tile_b,)

    x_spec = pl.BlockSpec((tile_b, inp_pad), lambda i: (i, 0))
    o_spec = pl.BlockSpec((tile_b, out_pad), lambda i: (i, 0))

    def resident(a):
        # Constant block index -> DMA'd once, stays in VMEM across grid steps.
        # Buffered(1): no second pipeline buffer for a block that never changes.
        return pl.BlockSpec(a.shape, lambda i: (0,) * a.ndim,
                            pipeline_mode=pl.Buffered(1))

    out = pl.pallas_call(
        _mlp_kernel,
        out_shape=jax.ShapeDtypeStruct((batch_pad, out_pad), jnp.float32),
        grid=grid,
        in_specs=[x_spec,
                  resident(w1), resident(b1),
                  resident(w2), resident(b2),
                  resident(w3), resident(b3),
                  resident(w4), resident(b4)],
        out_specs=o_spec,
        compiler_params=pltpu.CompilerParams(
            dimension_semantics=("parallel",),
            vmem_limit_bytes=32 << 20,
        ),
    )(x_in, w1, b1, w2, b2, w3, b3, w4, b4)

    # Slice off padding only when there is any (layout plumbing, outside kernel).
    if batch != batch_pad or out_dim != out_pad:
        out = out[:batch, :out_dim]
    return out


def init_generator_params(key, inp, out, *, weight_dtype=jnp.bfloat16):
    """nn.Linear-style init (uniform +/- 1/sqrt(fan_in)) on the true dims,
    then zero-padded once to 128-multiples. Weights bf16, biases f32 [1, N]."""
    dims = [inp, *HIDDEN_DIMS, out]
    dims_pad = [_round_up(d, _LANE) for d in dims]
    params = {}
    for i in range(4):
        fan_in, fan_out = dims[i], dims[i + 1]
        fan_in_p, fan_out_p = dims_pad[i], dims_pad[i + 1]
        key, kw, kb = jax.random.split(key, 3)
        bound = 1.0 / math.sqrt(fan_in)
        w = jax.random.uniform(kw, (fan_in, fan_out), jnp.float32, -bound, bound)
        b = jax.random.uniform(kb, (fan_out,), jnp.float32, -bound, bound)
        w_p = jnp.zeros((fan_in_p, fan_out_p), weight_dtype)
        w_p = w_p.at[:fan_in, :fan_out].set(w.astype(weight_dtype))
        b_p = jnp.zeros((1, fan_out_p), jnp.float32)
        b_p = b_p.at[:, :fan_out].set(b)
        params[f"w{i + 1}"] = w_p
        params[f"b{i + 1}"] = b_p
    return params


def reference_forward(x, params, inp, out):
    """Pure-JAX reference mirroring the kernel's precision (bf16 ops, f32 acc)
    on the un-padded logical weights, to validate both math and padding."""
    dims = [inp, *HIDDEN_DIMS, out]
    cdt = params["w1"].dtype
    h = x.astype(cdt)
    for i in range(1, 5):
        w = params[f"w{i}"][:dims[i - 1], :dims[i]]
        b = params[f"b{i}"][:, :dims[i]]
        h = jnp.dot(h, w, preferred_element_type=jnp.float32) + b
        if i < 4:
            h = jnp.maximum(h.astype(cdt), 0)
    return h


if __name__ == "__main__":
    key = jax.random.PRNGKey(0)
    kx, kp = jax.random.split(key)

    inp, out, batch = 8, 16, 2          # small GAN noise dim -> small output dim
    x = jax.random.normal(kx, (batch, inp), jnp.float32)
    params = init_generator_params(kp, inp, out)

    y = generator_forward(x, params, out_dim=out)
    y = jax.block_until_ready(y)

    y_ref = reference_forward(x, params, inp, out)
    assert y.shape == (batch, out), y.shape
    assert jnp.allclose(y, y_ref, atol=5e-3, rtol=5e-3), \
        float(jnp.max(jnp.abs(y - y_ref)))

    print("KERNEL_OK")
</pallas_src>

<mosaic_0001>
module attributes {stable_mosaic.version = 11 : i64} {
  func.func @_mlp_kernel(%arg0: i32, %arg1: memref<16x128xbf16, #tpu.memory_space<vmem>>, %arg2: memref<128x384xbf16, #tpu.memory_space<vmem>>, %arg3: memref<1x384xf32, #tpu.memory_space<vmem>>, %arg4: memref<384x1024xbf16, #tpu.memory_space<vmem>>, %arg5: memref<1x1024xf32, #tpu.memory_space<vmem>>, %arg6: memref<1024x896xbf16, #tpu.memory_space<vmem>>, %arg7: memref<1x896xf32, #tpu.memory_space<vmem>>, %arg8: memref<896x128xbf16, #tpu.memory_space<vmem>>, %arg9: memref<1x128xf32, #tpu.memory_space<vmem>>, %arg10: memref<16x128xf32, #tpu.memory_space<vmem>>) attributes {dimension_semantics = [#tpu.dimension_semantics<parallel>], iteration_bounds = array<i64: 1>, scalar_prefetch = 0 : i64, scratch_operands = 0 : i64, tpu.core_type = #tpu.core_type<tc>, window_params = [{transform_indices = @transform_0, window_bounds = array<i64: 16, 128>}, {pipeline_mode = #tpu.pipeline_mode<synchronous>, transform_indices = @transform_1, window_bounds = array<i64: 128, 384>}, {pipeline_mode = #tpu.pipeline_mode<synchronous>, transform_indices = @transform_2, window_bounds = array<i64: 1, 384>}, {pipeline_mode = #tpu.pipeline_mode<synchronous>, transform_indices = @transform_3, window_bounds = array<i64: 384, 1024>}, {pipeline_mode = #tpu.pipeline_mode<synchronous>, transform_indices = @transform_4, window_bounds = array<i64: 1, 1024>}, {pipeline_mode = #tpu.pipeline_mode<synchronous>, transform_indices = @transform_5, window_bounds = array<i64: 1024, 896>}, {pipeline_mode = #tpu.pipeline_mode<synchronous>, transform_indices = @transform_6, window_bounds = array<i64: 1, 896>}, {pipeline_mode = #tpu.pipeline_mode<synchronous>, transform_indices = @transform_7, window_bounds = array<i64: 896, 128>}, {pipeline_mode = #tpu.pipeline_mode<synchronous>, transform_indices = @transform_8, window_bounds = array<i64: 1, 128>}, {transform_indices = @transform_9, window_bounds = array<i64: 16, 128>}]} {
    %c0 = arith.constant 0 : index
    %c0_0 = arith.constant 0 : index
    %0 = vector.load %arg1[%c0, %c0_0] : memref<16x128xbf16, #tpu.memory_space<vmem>>, vector<16x128xbf16>
    %c0_1 = arith.constant 0 : index
    %c0_2 = arith.constant 0 : index
    %1 = vector.load %arg2[%c0_1, %c0_2] : memref<128x384xbf16, #tpu.memory_space<vmem>>, vector<128x384xbf16>
    %cst = arith.constant dense<0.000000e+00> : vector<16x384xf32>
    %2 = tpu.matmul %0, %1, %cst {dimension_numbers = #tpu.dot_dimension_numbers<[1], [0], [0], [1], [0, 0, 1, 1], [], []>} : vector<16x128xbf16>, vector<128x384xbf16>, vector<16x384xf32> -> vector<16x384xf32>
    %c0_3 = arith.constant 0 : index
    %c0_4 = arith.constant 0 : index
    %3 = vector.load %arg3[%c0_3, %c0_4] : memref<1x384xf32, #tpu.memory_space<vmem>>, vector<1x384xf32>
    %4 = vector.broadcast %3 : vector<1x384xf32> to vector<16x384xf32>
    %5 = arith.addf %2, %4 : vector<16x384xf32>
    %6 = arith.truncf %5 : vector<16x384xf32> to vector<16x384xbf16>
    %cst_5 = arith.constant 0.000000e+00 : bf16
    %7 = vector.broadcast %cst_5 : bf16 to vector<16x384xbf16>
    %8 = arith.maximumf %6, %7 : vector<16x384xbf16>
    %c0_6 = arith.constant 0 : index
    %c0_7 = arith.constant 0 : index
    %9 = vector.load %arg4[%c0_6, %c0_7] : memref<384x1024xbf16, #tpu.memory_space<vmem>>, vector<384x1024xbf16>
    %cst_8 = arith.constant dense<0.000000e+00> : vector<16x1024xf32>
    %10 = tpu.matmul %8, %9, %cst_8 {dimension_numbers = #tpu.dot_dimension_numbers<[1], [0], [0], [1], [0, 0, 1, 1], [], []>} : vector<16x384xbf16>, vector<384x1024xbf16>, vector<16x1024xf32> -> vector<16x1024xf32>
    %c0_9 = arith.constant 0 : index
    %c0_10 = arith.constant 0 : index
    %11 = vector.load %arg5[%c0_9, %c0_10] : memref<1x1024xf32, #tpu.memory_space<vmem>>, vector<1x1024xf32>
    %12 = vector.broadcast %11 : vector<1x1024xf32> to vector<16x1024xf32>
    %13 = arith.addf %10, %12 : vector<16x1024xf32>
    %14 = arith.truncf %13 : vector<16x1024xf32> to vector<16x1024xbf16>
    %cst_11 = arith.constant 0.000000e+00 : bf16
    %15 = vector.broadcast %cst_11 : bf16 to vector<16x1024xbf16>
    %16 = arith.maximumf %14, %15 : vector<16x1024xbf16>
    %c0_12 = arith.constant 0 : index
    %c0_13 = arith.constant 0 : index
    %17 = vector.load %arg6[%c0_12, %c0_13] : memref<1024x896xbf16, #tpu.memory_space<vmem>>, vector<1024x896xbf16>
    %cst_14 = arith.constant dense<0.000000e+00> : vector<16x896xf32>
    %18 = tpu.matmul %16, %17, %cst_14 {dimension_numbers = #tpu.dot_dimension_numbers<[1], [0], [0], [1], [0, 0, 1, 1], [], []>} : vector<16x1024xbf16>, vector<1024x896xbf16>, vector<16x896xf32> -> vector<16x896xf32>
    %c0_15 = arith.constant 0 : index
    %c0_16 = arith.constant 0 : index
    %19 = vector.load %arg7[%c0_15, %c0_16] : memref<1x896xf32, #tpu.memory_space<vmem>>, vector<1x896xf32>
    %20 = vector.broadcast %19 : vector<1x896xf32> to vector<16x896xf32>
    %21 = arith.addf %18, %20 : vector<16x896xf32>
    %22 = arith.truncf %21 : vector<16x896xf32> to vector<16x896xbf16>
    %cst_17 = arith.constant 0.000000e+00 : bf16
    %23 = vector.broadcast %cst_17 : bf16 to vector<16x896xbf16>
    %24 = arith.maximumf %22, %23 : vector<16x896xbf16>
    %c0_18 = arith.constant 0 : index
    %c0_19 = arith.constant 0 : index
    %25 = vector.load %arg8[%c0_18, %c0_19] : memref<896x128xbf16, #tpu.memory_space<vmem>>, vector<896x128xbf16>
    %cst_20 = arith.constant dense<0.000000e+00> : vector<16x128xf32>
    %26 = tpu.matmul %24, %25, %cst_20 {dimension_numbers = #tpu.dot_dimension_numbers<[1], [0], [0], [1], [0, 0, 1, 1], [], []>} : vector<16x896xbf16>, vector<896x128xbf16>, vector<16x128xf32> -> vector<16x128xf32>
    %c0_21 = arith.constant 0 : index
    %c0_22 = arith.constant 0 : index
    %27 = vector.load %arg9[%c0_21, %c0_22] : memref<1x128xf32, #tpu.memory_space<vmem>>, vector<1x128xf32>
    %28 = vector.broadcast %27 : vector<1x128xf32> to vector<16x128xf32>
    %29 = arith.addf %26, %28 : vector<16x128xf32>
    %c0_23 = arith.constant 0 : index
    %c0_24 = arith.constant 0 : index
    %30 = vector.load %arg10[%c0_23, %c0_24] : memref<16x128xf32, #tpu.memory_space<vmem>>, vector<16x128xf32>
    tpu.vector_store %arg10[%c0_23, %c0_24], %29 {strides = array<i32>} : memref<16x128xf32, #tpu.memory_space<vmem>>, vector<16x128xf32>,
    return
  }
  func.func @transform_0(%arg0: i32) -> (i32, i32) {
    %c0_i32 = arith.constant 0 : i32
    %c0_i32_0 = arith.constant 0 : i32
    return %arg0, %c0_i32 : i32, i32
  }
  func.func @transform_1(%arg0: i32) -> (i32, i32) {
    %c0_i32 = arith.constant 0 : i32
    %c0_i32_0 = arith.constant 0 : i32
    %c0_i32_1 = arith.constant 0 : i32
    return %c0_i32, %c0_i32_0 : i32, i32
  }
  func.func @transform_2(%arg0: i32) -> (i32, i32) {
    %c0_i32 = arith.constant 0 : i32
    %c0_i32_0 = arith.constant 0 : i32
    %c0_i32_1 = arith.constant 0 : i32
    return %c0_i32, %c0_i32_0 : i32, i32
  }
  func.func @transform_3(%arg0: i32) -> (i32, i32) {
    %c0_i32 = arith.constant 0 : i32
    %c0_i32_0 = arith.constant 0 : i32
    %c0_i32_1 = arith.constant 0 : i32
    return %c0_i32, %c0_i32_0 : i32, i32
  }
  func.func @transform_4(%arg0: i32) -> (i32, i32) {
    %c0_i32 = arith.constant 0 : i32
    %c0_i32_0 = arith.constant 0 : i32
    %c0_i32_1 = arith.constant 0 : i32
    return %c0_i32, %c0_i32_0 : i32, i32
  }
  func.func @transform_5(%arg0: i32) -> (i32, i32) {
    %c0_i32 = arith.constant 0 : i32
    %c0_i32_0 = arith.constant 0 : i32
    %c0_i32_1 = arith.constant 0 : i32
    return %c0_i32, %c0_i32_0 : i32, i32
  }
  func.func @transform_6(%arg0: i32) -> (i32, i32) {
    %c0_i32 = arith.constant 0 : i32
    %c0_i32_0 = arith.constant 0 : i32
    %c0_i32_1 = arith.constant 0 : i32
    return %c0_i32, %c0_i32_0 : i32, i32
  }
  func.func @transform_7(%arg0: i32) -> (i32, i32) {
    %c0_i32 = arith.constant 0 : i32
    %c0_i32_0 = arith.constant 0 : i32
    %c0_i32_1 = arith.constant 0 : i32
    return %c0_i32, %c0_i32_0 : i32, i32
  }
  func.func @transform_8(%arg0: i32) -> (i32, i32) {
    %c0_i32 = arith.constant 0 : i32
    %c0_i32_0 = arith.constant 0 : i32
    %c0_i32_1 = arith.constant 0 : i32
    return %c0_i32, %c0_i32_0 : i32, i32
  }
  func.func @transform_9(%arg0: i32) -> (i32, i32) {
    %c0_i32 = arith.constant 0 : i32
    %c0_i32_0 = arith.constant 0 : i32
    return %arg0, %c0_i32 : i32, i32
  }
}

</mosaic_0001>

<bundles_post_ra>
// kernel: generator_forward.1
= control target key start
LH: loop header
LB: loop body
LE: loop exit
PB: predicated region body
PF: predicated region fallthrough
CT: control target
= control target key end

     0   :  { %14 = vsyncpa [#allocation3], 0  ;;  %s8308_s0 = inlined_call_operand.vmem [shape: bf16[16,128], index: 0, kind: input, shape index: {}]   ;;  %s8309_s1 = inlined_call_operand.hbm [shape: bf16[128,384], index: 1, kind: input, shape index: {}]   ;;  %s8310_s2 = inlined_call_operand.hbm [shape: f32[1,384], index: 2, kind: input, shape index: {}]   ;;  %s8311_s3 = inlined_call_operand.hbm [shape: bf16[384,1024], index: 3, kind: input, shape index: {}]   ;;  %s8312_s4 = inlined_call_operand.hbm [shape: f32[1,1024], index: 4, kind: input, shape index: {}]   ;;  %s8313_s5 = inlined_call_operand.hbm [shape: bf16[1024,896], index: 5, kind: input, shape index: {}]   ;;  %s8314_s6 = inlined_call_operand.hbm [shape: f32[1,896], index: 6, kind: input, shape index: {}]   ;;  %s8315_s7 = inlined_call_operand.hbm [shape: bf16[896,128], index: 7, kind: input, shape index: {}]   ;;  %s8316_s8 = inlined_call_operand.hbm [shape: f32[1,128], index: 8, kind: input, shape index: {}]   ;;  %s8317_s9 = inlined_call_operand.vmem [shape: f32[16,128], index: 9, kind: output, shape index: {}]  }
   0x1   :  { %15 = vsyncpa [#allocation5], 0 }
   0x2   :  { %16 = vsyncpa [#allocation8], 0 }
   0x3   :  { %17 = vsyncpa [#allocation11], 0 }
   0x4   :  { %18 = vsyncpa [#allocation14], 0  ;;  %s7992_s30 = smov [#allocation4]   ;;  %s7993_s11 = smov [#allocation7]  }
   0x5   :  { %s39_s10 = sshll.u32 %s7992_s30, 4  ;;  %s61_s12 = sshll.u32 %s7993_s11, 4  ;;  %s40_s10 = int_to_ptr.vmem [resolvable:$true] %s39_s10  ;;  %s62_s12 = int_to_ptr.vmem [resolvable:$true] %s61_s12 }
   0x6   :  { %s7830_s13 = scalar_lea.vmem %s40_s10, 48  ;;  %s7834_s14 = scalar_lea.vmem %s40_s10, 64 }
   0x7   :  { %p7831_p0 = scmp.ne.s32.totalorder %s40_s10, %s7830_s13  ;;  %p7835_p1 = scmp.lt.s32.totalorder %s40_s10, %s40_s10 }
   0x8   :  { %p7836_p2 = scmp.lt.s32.totalorder %s7834_s14, %s7830_s13 }
   0xa   :  { %p7837_p3 = por %p7836_p2, %p7835_p1 }
   0xc   :  { %p7838_p4 = pnand %p7837_p3, %p7831_p0 }
   0xe   :  { %7841 = shalt.err (!%p7838_p4)
}
   0xf   :  { %42 = dma.hbm_to_vmem [thread:$0]  %s8310_s2, 48, %s40_s10, [#allocation5]  }
  0x10   :  { %s7850_s17 = scalar_lea.vmem %s62_s12, 128  ;;  %p7855_p6 = scmp.lt.s32.totalorder %s62_s12, %s62_s12 }
  0x11   :  { %p7851_p5 = scmp.ne.s32.totalorder %s62_s12, %s7850_s17  ;;  %p7856_p7 = scmp.lt.s32.totalorder %s7850_s17, %s7850_s17 }
  0x13   :  { %p7857_p8 = por %p7856_p7, %p7855_p6 }
  0x15   :  { %p7858_p9 = pnand %p7857_p8, %p7851_p5 }
  0x17   :  { %7861 = shalt.err (!%p7858_p9)
}
  0x18   :  { %64 = dma.hbm_to_vmem [thread:$0]  %s8312_s4, 128, %s62_s12, [#allocation8]  }
  0x19   :  { %s7994_s20 = smov [#allocation10]   ;;  %s7995_s22 = smov [#allocation2]  }
  0x1a   :  { %s83_s21 = sshll.u32 %s7994_s20, 4  ;;  %s26_s23 = sshll.u32 %s7995_s22, 4  ;;  %s84_s21 = int_to_ptr.vmem [resolvable:$true] %s83_s21  ;;  %s27_s23 = int_to_ptr.vmem [resolvable:$true] %s26_s23 }
  0x1b   :  { %s7870_s24 = scalar_lea.vmem %s84_s21, 112  ;;  %s7874_s2 = scalar_lea.vmem %s84_s21, 128 }
  0x1c   :  { %p7871_p10 = scmp.ne.s32.totalorder %s84_s21, %s7870_s24  ;;  %p7875_p11 = scmp.lt.s32.totalorder %s84_s21, %s84_s21 }
  0x1d   :  { %p7876_p12 = scmp.lt.s32.totalorder %s7874_s2, %s7870_s24 }
  0x1f   :  { %p7877_p13 = por %p7876_p12, %p7875_p11 }
  0x21   :  { %p7878_p0 = pnand %p7877_p13, %p7871_p10 }
  0x23   :  { %7881 = shalt.err (!%p7878_p0)
}
  0x24   :  { %86 = dma.hbm_to_vmem [thread:$0]  %s8314_s6, 112, %s84_s21, [#allocation11]  }
  0x25   :  { %s7890_s27 = scalar_lea.vmem %s27_s23, 3072  ;;  %p7895_p2 = scmp.lt.s32.totalorder %s27_s23, %s27_s23 }
  0x26   :  { %p7891_p1 = scmp.ne.s32.totalorder %s27_s23, %s7890_s27  ;;  %p7896_p3 = scmp.lt.s32.totalorder %s7890_s27, %s7890_s27 }
  0x28   :  { %p7897_p4 = por %p7896_p3, %p7895_p2 }
  0x2a   :  { %p7898_p5 = pnand %p7897_p4, %p7891_p1 }
  0x2c   :  { %7901 = shalt.err (!%p7898_p5)
}
  0x2d   :  { %s7996_s4 = smov 192   ;;  %s7997_s28 = smov 12  }
  0x2e   :  { %32 = dma.hbm_to_vmem [thread:$0]  %s8309_s1, 3072, %s27_s23, [#allocation3], %s7996_s4, %s7996_s4, %s7997_s28  }
  0x2f   :  { %s7998_s10 = smov [#allocation6]  }
  0x30   :  { %s48_s11 = sshll.u32 %s7998_s10, 4  ;;  %s49_s11 = int_to_ptr.vmem [resolvable:$true] %s48_s11 }
  0x31   :  { %s7910_s12 = scalar_lea.vmem %s49_s11, 24576  ;;  %p7915_p7 = scmp.lt.s32.totalorder %s49_s11, %s49_s11 }
  0x32   :  { %p7911_p6 = scmp.ne.s32.totalorder %s49_s11, %s7910_s12  ;;  %p7916_p8 = scmp.lt.s32.totalorder %s7910_s12, %s7910_s12 }
  0x34   :  { %p7917_p9 = por %p7916_p8, %p7915_p7 }
  0x36   :  { %p7918_p10 = pnand %p7917_p9, %p7911_p6 }
  0x38   :  { %7921 = shalt.err (!%p7918_p10)
}
  0x39   :  { %s7999_s6 = smov 512   ;;  %s8000_s13 = smov 32  }
  0x3a   :  { %54 = dma.hbm_to_vmem [thread:$0]  %s8311_s3, 24576, %s49_s11, [#allocation5], %s7999_s6, %s7999_s6, %s8000_s13  }
  0x3b   :  { %s8001_s16 = smov [#allocation9]  }
  0x3c   :  { %s70_s17 = sshll.u32 %s8001_s16, 4  ;;  %s71_s17 = int_to_ptr.vmem [resolvable:$true] %s70_s17 }
  0x3d   :  { %s7930_s1 = scalar_lea.vmem %s71_s17, 57344  ;;  %p7935_p12 = scmp.lt.s32.totalorder %s71_s17, %s71_s17 }
  0x3e   :  { %p7931_p11 = scmp.ne.s32.totalorder %s71_s17, %s7930_s1  ;;  %p7936_p13 = scmp.lt.s32.totalorder %s7930_s1, %s7930_s1 }
  0x40   :  { %p7937_p0 = por %p7936_p13, %p7935_p12 }
  0x42   :  { %p7938_p1 = pnand %p7937_p0, %p7931_p11 }
  0x44   :  { %7941 = shalt.err (!%p7938_p1)
}
  0x45   :  { %s8002_s18 = smov 448   ;;  %s8003_s19 = smov 28  }
  0x46   :  { %76 = dma.hbm_to_vmem [thread:$0]  %s8313_s5, 57344, %s71_s17, [#allocation8], %s8002_s18, %s8002_s18, %s8003_s19  }
  0x47   :  { %s8004_s22 = smov [#allocation12]  }
  0x48   :  { %s92_s23 = sshll.u32 %s8004_s22, 4  ;;  %s93_s23 = int_to_ptr.vmem [resolvable:$true] %s92_s23 }
  0x49   :  { %s7950_s3 = scalar_lea.vmem %s93_s23, 7168  ;;  %p7955_p3 = scmp.lt.s32.totalorder %s93_s23, %s93_s23 }
  0x4a   :  { %p7951_p2 = scmp.ne.s32.totalorder %s93_s23, %s7950_s3  ;;  %p7956_p4 = scmp.lt.s32.totalorder %s7950_s3, %s7950_s3 }
  0x4c   :  { %p7957_p5 = por %p7956_p4, %p7955_p3 }
  0x4e   :  { %p7958_p6 = pnand %p7957_p5, %p7951_p2 }
  0x50   :  { %7961 = shalt.err (!%p7958_p6)
}
  0x51   :  { %s8005_s24 = smov 64   ;;  %s8006_s2 = smov 4  }
  0x52   :  { %98 = dma.hbm_to_vmem [thread:$0]  %s8315_s7, 7168, %s93_s23, [#allocation11], %s8005_s24, %s8005_s24, %s8006_s2  }
  0x53   :  { %s8007_s27 = smov [#allocation13]  }
  0x54   :  { %s105_s4 = sshll.u32 %s8007_s27, 4  ;;  %s106_s4 = int_to_ptr.vmem [resolvable:$true] %s105_s4 }
  0x55   :  { %s7970_s5 = scalar_lea.vmem %s106_s4, 16  ;;  %s7974_s28 = scalar_lea.vmem %s106_s4, 32 }
  0x56   :  { %p7971_p7 = scmp.ne.s32.totalorder %s106_s4, %s7970_s5  ;;  %p7975_p8 = scmp.lt.s32.totalorder %s106_s4, %s106_s4 }
  0x57   :  { %p7976_p9 = scmp.lt.s32.totalorder %s7974_s28, %s7970_s5 }
  0x59   :  { %p7977_p10 = por %p7976_p9, %p7975_p8 }
  0x5b   :  { %p7978_p11 = pnand %p7977_p10, %p7971_p7 }
  0x5d   :  { %7981 = shalt.err (!%p7978_p11)
}
  0x5e   :  { %108 = dma.hbm_to_vmem [thread:$0]  %s8316_s8, 16, %s106_s4, [#allocation14]  }
  0x5f   :  { %7982 = dma.done.wait [#allocation3], 3072  }
  0x60   :  { %7983 = vsyncadd [#allocation3], 4294964224 }
  0x61   :  { %7984 = dma.done.wait [#allocation5], 24624  }
  0x62   :  { %7985 = vsyncadd [#allocation5], 4294942672 }
  0x63   :  { %7986 = dma.done.wait [#allocation8], 57472  }
  0x64   :  { %7987 = vsyncadd [#allocation8], 4294909824 }
  0x65   :  { %7988 = dma.done.wait [#allocation11], 7280  }
  0x66   :  { %7989 = vsyncadd [#allocation11], 4294960016 }
  0x67   :  { %7990 = dma.done.wait [#allocation14], 16  }
  0x68   :  { %7991 = vsyncadd [#allocation14], 4294967280  ;;  %v8008_v0 = vmov 0.0   ;;  %vm8009_vm0 = vmmov 0   ;;  %v8010_v1 = vmov 0   ;;  %v593_v24 = vld [vmem:[#allocation6 + $0x5c0] sm:$0xff] }
  0x69   :  { %7034 = vmatprep.subr.bf16.mxu1 %v8008_v0  ;;  %7050 = vmatprep.mubr.msk.bf16.mxu1 %vm8009_vm0, %v8008_v0  ;;  %v7093_v2 = vld [vmem:[#allocation2 + $0xac] ss:$12 sps:$4 sm:$0xff]   ;;  %v7095_v3 = vld [vmem:[#allocation2 + $0xb0] ss:$12 sps:$4 sm:$0xff]   ;;  %v7096_v4 = vld [vmem:[#allocation2 + $0xa8] ss:$12 sps:$4 sm:$0xff]  }
  0x6a   :  { %351 = vmatprep.mubr.bf16.mxu0 %v8010_v1  ;;  %319 = vmatprep.subr.bf16.mxu0 %v7093_v2  ;;  %v7097_v5 = vld [vmem:[#allocation2 + $0x94] ss:$12 sps:$4 sm:$0xff]   ;;  %v7099_v6 = vld [vmem:[#allocation2 + $0x98] ss:$12 sps:$4 sm:$0xff]   ;;  %v7100_v7 = vld [vmem:[#allocation2 + $0x90] ss:$12 sps:$4 sm:$0xff]  }
  0x6b   :  { %7035 = vmatpush3.bf16.msra.mxu1 %v7095_v3  ;;  %320 = vmatpush1.bf16.msra.mxu0 %v7096_v4  ;;  %v7101_v8 = vld [vmem:[#allocation2 + $0x7c] ss:$12 sps:$4 sm:$0xff]   ;;  %v7103_v9 = vld [vmem:[#allocation2 + $0x80] ss:$12 sps:$4 sm:$0xff]   ;;  %v7104_v10 = vld [vmem:[#allocation2 + $0x78] ss:$12 sps:$4 sm:$0xff]  }
  0x6c   :  { %7036 = vmatprep.subr.bf16.mxu1 %v8008_v0  ;;  %321 = vmatprep.subr.bf16.mxu0 %v7097_v5  ;;  %v7105_v11 = vld [vmem:[#allocation2 + $0x64] ss:$12 sps:$4 sm:$0xff]   ;;  %v7107_v12 = vld [vmem:[#allocation2 + $0x68] ss:$12 sps:$4 sm:$0xff]   ;;  %v7108_v13 = vld [vmem:[#allocation2 + $0x60] ss:$12 sps:$4 sm:$0xff]  }
  0x6d   :  { %v7109_v14 = vld [vmem:[#allocation2 + $0x4c] ss:$12 sps:$4 sm:$0xff]   ;;  %v7111_v15 = vld [vmem:[#allocation2 + $0x50] ss:$12 sps:$4 sm:$0xff]   ;;  %v7112_v16 = vld [vmem:[#allocation2 + $0x48] ss:$12 sps:$4 sm:$0xff]  }
  0x6e   :  { %v7113_v17 = vld [vmem:[#allocation2 + $0x34] ss:$12 sps:$4 sm:$0xff]   ;;  %v7115_v18 = vld [vmem:[#allocation2 + $0x38] ss:$12 sps:$4 sm:$0xff]   ;;  %v7116_v19 = vld [vmem:[#allocation2 + $0x30] ss:$12 sps:$4 sm:$0xff]  }
  0x6f   :  { %7037 = vmatpush3.bf16.msra.mxu1 %v7099_v6  ;;  %322 = vmatpush1.bf16.msra.mxu0 %v7100_v7  ;;  %v7117_v20 = vld [vmem:[#allocation2 + $0x1c] ss:$12 sps:$4 sm:$0xff]   ;;  %v7119_v21 = vld [vmem:[#allocation2 + $0x20] ss:$12 sps:$4 sm:$0xff]   ;;  %v7120_v22 = vld [vmem:[#allocation2 + $0x18] ss:$12 sps:$4 sm:$0xff]  }
  0x70   :  { %7038 = vmatprep.subr.bf16.mxu1 %v8008_v0  ;;  %323 = vmatprep.subr.bf16.mxu0 %v7101_v8  ;;  %v7121_v23 = vld [vmem:[#allocation2 + $0x4] ss:$12 sps:$4 sm:$0xff]   ;;  %v7123_v28 = vld [vmem:[#allocation2 + $0x8] ss:$12 sps:$4 sm:$0xff]   ;;  %v7124_v29 = vld [vmem:[#allocation2] ss:$12 sps:$4 sm:$0xff]  }
  0x71   :  { %v597_v25 = vld [vmem:[#allocation6 + $0x5e0] sm:$0xff] }
  0x72   :  { %v465_v26 = vld [vmem:[#allocation6 + $0x1c0] sm:$0xff]  ;;  %v6350_v30 = vcombine.high %v593_v24, %v597_v25  ;;  %v6349_v37 = vcombine.low %v593_v24, %v597_v25 }
  0x73   :  { %7039 = vmatpush3.bf16.msra.mxu1 %v7103_v9  ;;  %324 = vmatpush1.bf16.msra.mxu0 %v7104_v10  ;;  %v469_v27 = vld [vmem:[#allocation6 + $0x1e0] sm:$0xff] }
  0x74   :  { %7040 = vmatprep.subr.bf16.mxu1 %v8008_v0  ;;  %325 = vmatprep.subr.bf16.mxu0 %v7105_v11  ;;  %v6222_v31 = vcombine.high %v465_v26, %v469_v27  ;;  %v585_v32 = vld [vmem:[#allocation6 + $0x580] sm:$0xff]  ;;  %v6221_v38 = vcombine.low %v465_v26, %v469_v27 }
  0x75   :  { %v589_v33 = vld [vmem:[#allocation6 + $0x5a0] sm:$0xff] }
  0x76   :  { %v7125_v34 = vld [vmem:[%s8308_s0] sm:$0xff]   ;;  %v6342_v41 = vcombine.high %v585_v32, %v589_v33  ;;  %v6341_v45 = vcombine.low %v585_v32, %v589_v33 }
  0x77   :  { %7041 = vmatpush3.bf16.msra.mxu1 %v7107_v12  ;;  %326 = vmatpush1.bf16.msra.mxu0 %v7108_v13  ;;  %v457_v35 = vld [vmem:[#allocation6 + $0x180] sm:$0xff] }
  0x78   :  { %7042 = vmatprep.subr.bf16.mxu1 %v8008_v0  ;;  %327 = vmatprep.subr.bf16.mxu0 %v7109_v14  ;;  %v461_v36 = vld [vmem:[#allocation6 + $0x1a0] sm:$0xff] }
  0x79   :  { %v449_v39 = vld [vmem:[#allocation6 + $0x140] sm:$0xff]  ;;  %v6214_v44 = vcombine.high %v457_v35, %v461_v36  ;;  %v6213_v48 = vcombine.low %v457_v35, %v461_v36 }
  0x7a   :  { %v453_v40 = vld [vmem:[#allocation6 + $0x160] sm:$0xff] }
  0x7b   :  { %7043 = vmatpush3.bf16.msra.mxu1 %v7111_v15  ;;  %328 = vmatpush1.bf16.msra.mxu0 %v7112_v16  ;;  %v577_v42 = vld [vmem:[#allocation6 + $0x540] sm:$0xff]  ;;  %v6206_v52 = vcombine.high %v449_v39, %v453_v40  ;;  %v6205_v56 = vcombine.low %v449_v39, %v453_v40 }
  0x7c   :  { %7044 = vmatprep.subr.bf16.mxu1 %v8008_v0  ;;  %329 = vmatprep.subr.bf16.mxu0 %v7113_v17  ;;  %v581_v43 = vld [vmem:[#allocation6 + $0x560] sm:$0xff] }
  0x7d   :  { %v569_v46 = vld [vmem:[#allocation6 + $0x500] sm:$0xff]  ;;  %v6334_v51 = vcombine.high %v577_v42, %v581_v43  ;;  %v6333_v53 = vcombine.low %v577_v42, %v581_v43 }
  0x7e   :  { %v573_v47 = vld [vmem:[#allocation6 + $0x520] sm:$0xff] }
  0x7f   :  { %7045 = vmatpush3.bf16.msra.mxu1 %v7115_v18  ;;  %330 = vmatpush1.bf16.msra.mxu0 %v7116_v19  ;;  %v441_v49 = vld [vmem:[#allocation6 + $0x100] sm:$0xff]  ;;  %v6326_v59 = vcombine.high %v569_v46, %v573_v47  ;;  %v6325_v61 = vcombine.low %v569_v46, %v573_v47 }
  0x80   :  { %7046 = vmatprep.subr.bf16.mxu1 %v8008_v0  ;;  %331 = vmatprep.subr.bf16.mxu0 %v7117_v20  ;;  %v445_v50 = vld [vmem:[#allocation6 + $0x120] sm:$0xff] }
  0x81   :  { %v561_v54 = vld [vmem:[#allocation6 + $0x4c0] sm:$0xff]  ;;  %v6198_v60 = vcombine.high %v441_v49, %v445_v50  ;;  %v6197_v2 = vcombine.low %v441_v49, %v445_v50 }
  0x82   :  { %v565_v55 = vld [vmem:[#allocation6 + $0x4e0] sm:$0xff] }
  0x83   :  { %7047 = vmatpush3.bf16.msra.mxu1 %v7119_v21  ;;  %332 = vmatpush1.bf16.msra.mxu0 %v7120_v22  ;;  %v433_v57 = vld [vmem:[#allocation6 + $0xc0] sm:$0xff]  ;;  %v6318_v5 = vcombine.high %v561_v54, %v565_v55  ;;  %v6317_v7 = vcombine.low %v561_v54, %v565_v55 }
  0x84   :  { %7048 = vmatprep.subr.bf16.mxu1 %v8008_v0  ;;  %333 = vmatprep.subr.bf16.mxu0 %v7121_v23  ;;  %v437_v58 = vld [vmem:[#allocation6 + $0xe0] sm:$0xff] }
  0x85   :  { %v553_v62 = vld [vmem:[#allocation6 + $0x480] sm:$0xff]  ;;  %v6190_v6 = vcombine.high %v433_v57, %v437_v58  ;;  %v6189_v8 = vcombine.low %v433_v57, %v437_v58 }
  0x86   :  { %v557_v63 = vld [vmem:[#allocation6 + $0x4a0] sm:$0xff] }
  0x87   :  { %7049 = vmatpush3.bf16.msra.mxu1 %v7123_v28  ;;  %334 = vmatpush1.bf16.msra.mxu0 %v7124_v29  ;;  %v425_v3 = vld [vmem:[#allocation6 + $0x80] sm:$0xff]  ;;  %v6310_v11 = vcombine.high %v553_v62, %v557_v63  ;;  %v6309_v13 = vcombine.low %v553_v62, %v557_v63 }
  0x88   :  { %1646 = vmatprep.subr.bf16.mxu1 %v6350_v30  ;;  %1603 = vmatprep.subr.bf16.mxu0 %v6222_v31  ;;  %v429_v4 = vld [vmem:[#allocation6 + $0xa0] sm:$0xff] }
  0x89   :  { %v417_v9 = vld [vmem:[#allocation6 + $0x40] sm:$0xff]  ;;  %v6182_v12 = vcombine.high %v425_v3, %v429_v4  ;;  %v6181_v14 = vcombine.low %v425_v3, %v429_v4  ;;  %v594_v3 = vld [vmem:[#allocation6 + $0x5c8] sm:$0xff] }
  0x8a   :  { %7051 = vmatmul.mubr.bf16.vlgmr.msra.gmra.mxu1 %v7125_v34  ;;  %352 = vmatmul.mubr.bf16.vlgmr.msra.gmra.mxu0 %v7125_v34  ;;  %v421_v10 = vld [vmem:[#allocation6 + $0x60] sm:$0xff]  ;;  %v598_v4 = vld [vmem:[#allocation6 + $0x5e8] sm:$0xff] }
  0x8b   :  { %1647 = vmatpush1.bf16.msra.mxu1 %v6349_v37  ;;  %1604 = vmatpush1.bf16.msra.mxu0 %v6221_v38  ;;  %v409_v15 = vld [vmem:[#allocation6] sm:$0xff]  ;;  %v6174_v17 = vcombine.high %v417_v9, %v421_v10  ;;  %v6173_v18 = vcombine.low %v417_v9, %v421_v10  ;;  %v168_v10 = vld [vmem:[#allocation4] sm:$0x7] }
  0x8c   :  { %1648 = vmatprep.subr.bf16.mxu1 %v6342_v41  ;;  %1605 = vmatprep.subr.bf16.mxu0 %v6214_v44  ;;  %v413_v16 = vld [vmem:[#allocation6 + $0x20] sm:$0xff] }
  0x8d   :  { %1678 = vmatprep.mubr.bf16.mxu1 %v8010_v1  ;;  %v529_v19 = vld [vmem:[#allocation6 + $0x3c0] sm:$0xff]  ;;  %v6166_v21 = vcombine.high %v409_v15, %v413_v16  ;;  %v6165_v22 = vcombine.low %v409_v15, %v413_v16 }
  0x8e   :  { %v533_v20 = vld [vmem:[#allocation6 + $0x3e0] sm:$0xff] }
  0x8f   :  { %1649 = vmatpush1.bf16.msra.mxu1 %v6341_v45  ;;  %1606 = vmatpush1.bf16.msra.mxu0 %v6213_v48  ;;  %v521_v23 = vld [vmem:[#allocation6 + $0x380] sm:$0xff]  ;;  %v6286_v25 = vcombine.high %v529_v19, %v533_v20  ;;  %v6285_v26 = vcombine.low %v529_v19, %v533_v20 }
  0x90   :  { %1650 = vmatprep.subr.bf16.mxu1 %v6334_v51  ;;  %1607 = vmatprep.subr.bf16.mxu0 %v6206_v52  ;;  %v525_v24 = vld [vmem:[#allocation6 + $0x3a0] sm:$0xff] }
  0x91   :  { %v513_v27 = vld [vmem:[#allocation6 + $0x340] sm:$0xff]  ;;  %v6278_v29 = vcombine.high %v521_v23, %v525_v24  ;;  %v6277_v30 = vcombine.low %v521_v23, %v525_v24 }
  0x92   :  { %v517_v28 = vld [vmem:[#allocation6 + $0x360] sm:$0xff] }
  0x93   :  { %1651 = vmatpush1.bf16.msra.mxu1 %v6333_v53  ;;  %1608 = vmatpush1.bf16.msra.mxu0 %v6205_v56  ;;  %v505_v31 = vld [vmem:[#allocation6 + $0x300] sm:$0xff]  ;;  %v6270_v33 = vcombine.high %v513_v27, %v517_v28  ;;  %v6269_v34 = vcombine.low %v513_v27, %v517_v28 }
  0x94   :  { %1652 = vmatprep.subr.bf16.mxu1 %v6326_v59  ;;  %1609 = vmatprep.subr.bf16.mxu0 %v6198_v60  ;;  %v509_v32 = vld [vmem:[#allocation6 + $0x320] sm:$0xff]  ;;  %v466_v59 = vld [vmem:[#allocation6 + $0x1c8] sm:$0xff] }
  0x95   :  { %v497_v35 = vld [vmem:[#allocation6 + $0x2c0] sm:$0xff]  ;;  %v6262_v37 = vcombine.high %v505_v31, %v509_v32  ;;  %v6261_v38 = vcombine.low %v505_v31, %v509_v32 }
  0x96   :  { %v501_v36 = vld [vmem:[#allocation6 + $0x2e0] sm:$0xff] }
  0x97   :  { %1653 = vmatpush1.bf16.msra.mxu1 %v6325_v61  ;;  %1610 = vmatpush1.bf16.msra.mxu0 %v6197_v2  ;;  %v6254_v39 = vcombine.high %v497_v35, %v501_v36  ;;  %v6253_v40 = vcombine.low %v497_v35, %v501_v36  ;;  %v489_v41 = vld [vmem:[#allocation6 + $0x280] sm:$0xff]  ;;  %v470_v61 = vld [vmem:[#allocation6 + $0x1e8] sm:$0xff] }
  0x98   :  { %1654 = vmatprep.subr.bf16.mxu1 %v6318_v5  ;;  %1611 = vmatprep.subr.bf16.mxu0 %v6190_v6  ;;  %v493_v42 = vld [vmem:[#allocation6 + $0x2a0] sm:$0xff]  ;;  %v6223_v63 = vcombine.low %v466_v59, %v470_v61  ;;  %v6224_v2 = vcombine.high %v466_v59, %v470_v61  ;;  %v6351_v5 = vcombine.low %v594_v3, %v598_v4  ;;  %v454_v35 = vld [vmem:[#allocation6 + $0x168] sm:$0xff] }
  0x99   :  { %v545_v43 = vld [vmem:[#allocation6 + $0x440] sm:$0xff]  ;;  %v6246_v44 = vcombine.high %v489_v41, %v493_v42  ;;  %v6245_v46 = vcombine.low %v489_v41, %v493_v42  ;;  %v6352_v6 = vcombine.high %v594_v3, %v598_v4  ;;  %v430_v61 = vld [vmem:[#allocation6 + $0xa8] sm:$0xff] }
  0x9a   :  { %v549_v45 = vld [vmem:[#allocation6 + $0x460] sm:$0xff] }
  0x9b   :  { %1655 = vmatpush1.bf16.msra.mxu1 %v6317_v7  ;;  %1612 = vmatpush1.bf16.msra.mxu0 %v6189_v8  ;;  %v6301_v47 = vcombine.low %v545_v43, %v549_v45  ;;  %v6302_v48 = vcombine.high %v545_v43, %v549_v45  ;;  %v481_v49 = vld [vmem:[#allocation6 + $0x240] sm:$0xff]  ;;  %v170_v7 = vlaneseq  ;;  %v446_v45 = vld [vmem:[#allocation6 + $0x128] sm:$0xff] }
  0x9c   :  { %1656 = vmatprep.subr.bf16.mxu1 %v6310_v11  ;;  %1613 = vmatprep.subr.bf16.mxu0 %v6182_v12  ;;  %v485_v50 = vld [vmem:[#allocation6 + $0x260] sm:$0xff] }
  0x9d   :  { %v537_v51 = vld [vmem:[#allocation6 + $0x400] sm:$0xff]  ;;  %v6238_v52 = vcombine.high %v481_v49, %v485_v50  ;;  %v6237_v54 = vcombine.low %v481_v49, %v485_v50  ;;  %v8100_v8 = vshrl.u32 %v170_v7, 7  ;;  %v422_v7 = vld [vmem:[#allocation6 + $0x68] sm:$0xff] }
  0x9e   :  { %v541_v53 = vld [vmem:[#allocation6 + $0x420] sm:$0xff] }
  0x9f   :  { %1657 = vmatpush1.bf16.msra.mxu1 %v6309_v13  ;;  %1614 = vmatpush1.bf16.msra.mxu0 %v6181_v14  ;;  %v6293_v55 = vcombine.low %v537_v51, %v541_v53  ;;  %v6294_v56 = vcombine.high %v537_v51, %v541_v53  ;;  %v473_v57 = vld [vmem:[#allocation6 + $0x200] sm:$0xff]  ;;  %v8103_v9 = vsub.s32 0, %v8100_v8  ;;  %v8106_v11 = vsub.s32 2, %v8100_v8  ;;  %v438_v53 = vld [vmem:[#allocation6 + $0xe8] sm:$0xff] }
  0xa0   :  { %1615 = vmatprep.subr.bf16.mxu0 %v6174_v17  ;;  %1658 = vmatprep.subr.bf16.mxu1 %v6302_v48  ;;  %v477_v58 = vld [vmem:[#allocation6 + $0x220] sm:$0xff]  ;;  %v8109_v12 = vsub.s32 1, %v8100_v8 }
  0xa1   :  { %v6230_v60 = vcombine.high %v473_v57, %v477_v58  ;;  %v6229_v62 = vcombine.low %v473_v57, %v477_v58  ;;  %v173_v14 = vrot.slane %v168_v10, %v8103_v9  ;;  %v181_v15 = vrot.slane %v168_v10, %v8106_v11 }
  0xa3   :  { %1616 = vmatpush1.bf16.msra.mxu0 %v6173_v18  ;;  %1659 = vmatpush1.bf16.msra.mxu1 %v6301_v47  ;;  %v177_v18 = vrot.slane %v168_v10, %v8109_v12  ;;  %v582_v47 = vld [vmem:[#allocation6 + $0x568] sm:$0xff] }
  0xa4   :  { %1617 = vmatprep.subr.bf16.mxu0 %v6166_v21  ;;  %1660 = vmatprep.subr.bf16.mxu1 %v6294_v56  ;;  %v554_v10 = vld [vmem:[#allocation6 + $0x488] sm:$0xff] }
  0xa7   :  { %1618 = vmatpush1.bf16.msra.mxu0 %v6165_v22  ;;  %1661 = vmatpush1.bf16.msra.mxu1 %v6293_v55  ;;  %v574_v55 = vld [vmem:[#allocation6 + $0x528] sm:$0xff] }
  0xa8   :  { %1619 = vmatprep.subr.bf16.mxu0 %v6286_v25  ;;  %1689 = vmatprep.subr.bf16.mxu1 %v6224_v2  ;;  %v458_v25 = vld [vmem:[#allocation6 + $0x188] sm:$0xff] }
  0xab   :  { %1620 = vmatpush2.bf16.msra.mxu0 %v6285_v26  ;;  %v462_v26 = vld [vmem:[#allocation6 + $0x1a8] sm:$0xff] }
  0xac   :  { %1621 = vmatprep.subr.bf16.mxu0 %v6278_v29  ;;  %v6215_v43 = vcombine.low %v458_v25, %v462_v26 }
  0xaf   :  { %1622 = vmatpush2.bf16.msra.mxu0 %v6277_v30 }
  0xb0   :  { %1623 = vmatprep.subr.bf16.mxu0 %v6270_v33 }
  0xb3   :  { %1624 = vmatpush2.bf16.msra.mxu0 %v6269_v34  ;;  %v450_v34 = vld [vmem:[#allocation6 + $0x148] sm:$0xff] }
  0xb4   :  { %1625 = vmatprep.subr.bf16.mxu0 %v6262_v37  ;;  %v6216_v37 = vcombine.high %v458_v25, %v462_v26  ;;  %v6208_v48 = vcombine.high %v450_v34, %v454_v35  ;;  %v6207_v50 = vcombine.low %v450_v34, %v454_v35  ;;  %v530_v26 = vld [vmem:[#allocation6 + $0x3c8] sm:$0xff] }
  0xb5   :  { %v522_v34 = vld [vmem:[#allocation6 + $0x388] sm:$0xff] }
  0xb6   :  { %v526_v35 = vld [vmem:[#allocation6 + $0x3a8] sm:$0xff] }
  0xb7   :  { %1626 = vmatpush2.bf16.msra.mxu0 %v6261_v38  ;;  %v586_v38 = vld [vmem:[#allocation6 + $0x588] sm:$0xff] }
  0xb8   :  { %1627 = vmatprep.subr.bf16.mxu0 %v6254_v39  ;;  %v590_v39 = vld [vmem:[#allocation6 + $0x5a8] sm:$0xff] }
  0xb9   :  { %v6344_v49 = vcombine.high %v586_v38, %v590_v39  ;;  %v6343_v51 = vcombine.low %v586_v38, %v590_v39  ;;  %v471_v38 = vld [vmem:[#allocation6 + $0x1f0] sm:$0xff] }
  0xbb   :  { %1628 = vmatpush2.bf16.msra.mxu0 %v6253_v40 }
  0xbc   :  { %1629 = vmatprep.subr.bf16.mxu0 %v6246_v44  ;;  %v442_v44 = vld [vmem:[#allocation6 + $0x108] sm:$0xff] }
  0xbd   :  { %v6200_v56 = vcombine.high %v442_v44, %v446_v45  ;;  %v6199_v58 = vcombine.low %v442_v44, %v446_v45  ;;  %v514_v45 = vld [vmem:[#allocation6 + $0x348] sm:$0xff] }
  0xbf   :  { %1630 = vmatpush2.bf16.msra.mxu0 %v6245_v46  ;;  %v578_v46 = vld [vmem:[#allocation6 + $0x548] sm:$0xff] }
  0xc0   :  { %1631 = vmatprep.subr.bf16.mxu0 %v6238_v52  ;;  %v434_v52 = vld [vmem:[#allocation6 + $0xc8] sm:$0xff]  ;;  %v6336_v57 = vcombine.high %v578_v46, %v582_v47  ;;  %v6335_v59 = vcombine.low %v578_v46, %v582_v47  ;;  %v6280_v47 = vcombine.high %v522_v34, %v526_v35 }
  0xc1   :  { %v6192_v2 = vcombine.high %v434_v52, %v438_v53  ;;  %v6191_v4 = vcombine.low %v434_v52, %v438_v53  ;;  %v518_v46 = vld [vmem:[#allocation6 + $0x368] sm:$0xff] }
  0xc2   :  { %v6272_v53 = vcombine.high %v514_v45, %v518_v46 }
  0xc3   :  { %1632 = vmatpush2.bf16.msra.mxu0 %v6237_v54  ;;  %v570_v54 = vld [vmem:[#allocation6 + $0x508] sm:$0xff] }
  0xc4   :  { %1633 = vmatprep.subr.bf16.mxu0 %v6230_v60  ;;  %v426_v60 = vld [vmem:[#allocation6 + $0x88] sm:$0xff]  ;;  %v6328_v3 = vcombine.high %v570_v54, %v574_v55 }
  0xc7   :  { %1634 = vmatpush2.bf16.msra.mxu0 %v6229_v62  ;;  %v562_v62 = vld [vmem:[#allocation6 + $0x4c8] sm:$0xff] }
  0xc8   :  { %1732 = vmatprep.subr.bf16.mxu0 %v6352_v6  ;;  %v418_v6 = vld [vmem:[#allocation6 + $0x48] sm:$0xff] }
 0x14a   :  { %v396_v13 = vpop.f32.mrf.mxu1  ;;  %v353_v16 = vpop.f32.mrf.mxu0 }
 0x14b   :  { %v354_v20 = vadd.f32 %v353_v16, %v173_v14  ;;  %v397_v22 = vadd.f32 %v396_v13, %v181_v15  ;;  %v558_v13 = vld [vmem:[#allocation6 + $0x4a8] sm:$0xff]  ;;  %v6183_v16 = vcombine.low %v426_v60, %v430_v61 }
 0x14c   :  { %v7052_v17 = vpop.f32.mrf.mxu1  ;;  %v355_v19 = vpop.f32.mrf.mxu0  ;;  %v6311_v25 = vcombine.low %v554_v10, %v558_v13 }
 0x14d   :  { %v356_v27 = vadd.f32 %v355_v19, %v177_v18  ;;  %v414_v19 = vld [vmem:[#allocation6 + $0x28] sm:$0xff] }
 0x14e   :  { %v399_v21 = vpop.f32.mrf.mxu1  ;;  %v357_v24 = vpop.f32.mrf.mxu0 }
 0x14f   :  { %v400_v23 = vadd.f32 %v399_v21, %v181_v15  ;;  %v358_v28 = vadd.f32 %v357_v24, %v173_v14  ;;  %v6184_v14 = vcombine.high %v426_v60, %v430_v61  ;;  %v550_v21 = vld [vmem:[#allocation6 + $0x468] sm:$0xff]  ;;  %v6175_v24 = vcombine.low %v418_v6, %v422_v7 }
 0x150   :  { %v7053_v29 = vpop.f32.mrf.mxu1  ;;  %v359_v31 = vpop.f32.mrf.mxu0  ;;  %v498_v61 = vld [vmem:[#allocation6 + $0x2c8] sm:$0xff] }
 0x151   :  { %v405_v30 = vpack.c.bf16 %v400_v23, %v397_v22  ;;  %v403_v32 = vpack.c.bf16 %v358_v28, %v354_v20  ;;  %v360_v33 = vadd.f32 %v359_v31, %v177_v18  ;;  %v410_v18 = vld [vmem:[#allocation6 + $0x8] sm:$0xff]  ;;  %v6176_v22 = vcombine.high %v418_v6, %v422_v7 }
 0x152   :  { %v546_v20 = vld [vmem:[#allocation6 + $0x448] sm:$0xff]  ;;  %v6312_v23 = vcombine.high %v554_v10, %v558_v13  ;;  %v435_v13 = vld [vmem:[#allocation6 + $0xd0] sm:$0xff] }
 0x153   :  { %v8115_v36 = vmax.bf16 %v8010_v1, %v405_v30  ;;  %v404_v40 = vpack.c.bf16 %v360_v33, %v356_v27  ;;  %v8118_v41 = vmax.bf16 %v8010_v1, %v403_v32  ;;  %v534_v27 = vld [vmem:[#allocation6 + $0x3e8] sm:$0xff]  ;;  %v6168_v30 = vcombine.high %v410_v18, %v414_v19 }
 0x154   :  { %v538_v28 = vld [vmem:[#allocation6 + $0x408] sm:$0xff]  ;;  %v6304_v31 = vcombine.high %v546_v20, %v550_v21  ;;  %v6167_v32 = vcombine.low %v410_v18, %v414_v19  ;;  %v6303_v33 = vcombine.low %v546_v20, %v550_v21  ;;  %v6288_v39 = vcombine.high %v530_v26, %v534_v27  ;;  %v427_v21 = vld [vmem:[#allocation6 + $0x90] sm:$0xff] }
 0x155   :  { %1679 = vmatmul.mubr.bf16.vlgmr.msra.gmra.mxu1 %v8115_v36  ;;  %v8122_v42 = vmax.bf16 %v8010_v1, %v404_v40  ;;  %v542_v29 = vld [vmem:[#allocation6 + $0x428] sm:$0xff] }
 0x156   :  { %1690 = vmatpush1.bf16.msra.mxu1 %v6223_v63  ;;  %v566_v63 = vld [vmem:[#allocation6 + $0x4e8] sm:$0xff]  ;;  %v6296_v40 = vcombine.high %v538_v28, %v542_v29  ;;  %v6295_v44 = vcombine.low %v538_v28, %v542_v29  ;;  %v419_v29 = vld [vmem:[#allocation6 + $0x50] sm:$0xff] }
 0x157   :  { %1691 = vmatprep.subr.bf16.mxu1 %v6216_v37  ;;  %1635 = vmatprep.mubr.bf16.mxu0 %v8122_v42  ;;  %v6320_v15 = vcombine.high %v562_v62, %v566_v63  ;;  %v6319_v17 = vcombine.low %v562_v62, %v566_v63  ;;  %v467_v37 = vld [vmem:[#allocation6 + $0x1d0] sm:$0xff]  ;;  %v502_v62 = vld [vmem:[#allocation6 + $0x2e8] sm:$0xff] }
 0x158   :  { %1721 = vmatprep.mubr.bf16.mxu1 %v8122_v42  ;;  %1636 = vmatmul.mubr.bf16.vlgmr.msra.gmra.mxu0 %v8118_v41  ;;  %v6225_v52 = vcombine.low %v467_v37, %v471_v38  ;;  %v443_v63 = vld [vmem:[#allocation6 + $0x110] sm:$0xff]  ;;  %v490_v7 = vld [vmem:[#allocation6 + $0x288] sm:$0xff] }
 0x159   :  { %1733 = vmatpush1.bf16.msra.mxu0 %v6351_v5  ;;  %1764 = vmatprep.mubr.bf16.mxu0 %v8010_v1  ;;  %v6327_v5 = vcombine.low %v570_v54, %v574_v55  ;;  %v506_v54 = vld [vmem:[#allocation6 + $0x308] sm:$0xff] }
 0x15a   :  { %1692 = vmatpush1.bf16.msra.mxu1 %v6215_v43  ;;  %1734 = vmatprep.subr.bf16.mxu0 %v6344_v49  ;;  %v6287_v43 = vcombine.low %v530_v26, %v534_v27  ;;  %v459_v49 = vld [vmem:[#allocation6 + $0x190] sm:$0xff]  ;;  %v494_v10 = vld [vmem:[#allocation6 + $0x2a8] sm:$0xff] }
 0x15b   :  { %1693 = vmatprep.subr.bf16.mxu1 %v6208_v48  ;;  %v6226_v48 = vcombine.high %v467_v37, %v471_v38  ;;  %v482_v19 = vld [vmem:[#allocation6 + $0x248] sm:$0xff]  ;;  %v415_v37 = vld [vmem:[#allocation6 + $0x30] sm:$0xff] }
 0x15c   :  { %v486_v20 = vld [vmem:[#allocation6 + $0x268] sm:$0xff]  ;;  %v595_v38 = vld [vmem:[#allocation6 + $0x5d0] sm:$0xff] }
 0x15d   :  { %1735 = vmatpush1.bf16.msra.mxu0 %v6343_v51  ;;  %v6279_v51 = vcombine.low %v522_v34, %v526_v35  ;;  %v474_v27 = vld [vmem:[#allocation6 + $0x208] sm:$0xff]  ;;  %v411_v35 = vld [vmem:[#allocation6 + $0x10] sm:$0xff] }
 0x15e   :  { %1694 = vmatpush1.bf16.msra.mxu1 %v6207_v50  ;;  %1736 = vmatprep.subr.bf16.mxu0 %v6336_v57  ;;  %v463_v50 = vld [vmem:[#allocation6 + $0x1b0] sm:$0xff]  ;;  %v478_v28 = vld [vmem:[#allocation6 + $0x228] sm:$0xff] }
 0x15f   :  { %1695 = vmatprep.subr.bf16.mxu1 %v6200_v56  ;;  %v6218_v55 = vcombine.high %v459_v49, %v463_v50  ;;  %v510_v56 = vld [vmem:[#allocation6 + $0x328] sm:$0xff]  ;;  %v451_v57 = vld [vmem:[#allocation6 + $0x150] sm:$0xff]  ;;  %v6217_v60 = vcombine.low %v459_v49, %v463_v50  ;;  %v6170_v50 = vcombine.high %v411_v35, %v415_v37 }
 0x160   :  { %v591_v49 = vld [vmem:[#allocation6 + $0x5b0] sm:$0xff] }
 0x161   :  { %1737 = vmatpush1.bf16.msra.mxu0 %v6335_v59  ;;  %v6271_v59 = vcombine.low %v514_v45, %v518_v46  ;;  %v531_v46 = vld [vmem:[#allocation6 + $0x3d0] sm:$0xff] }
 0x162   :  { %1696 = vmatpush1.bf16.msra.mxu1 %v6199_v58  ;;  %1738 = vmatprep.subr.bf16.mxu0 %v6328_v3  ;;  %v455_v58 = vld [vmem:[#allocation6 + $0x170] sm:$0xff]  ;;  %v6264_v3 = vcombine.high %v506_v54, %v510_v56 }
 0x163   :  { %1697 = vmatprep.subr.bf16.mxu1 %v6192_v2  ;;  %v447_v2 = vld [vmem:[#allocation6 + $0x130] sm:$0xff]  ;;  %v6209_v6 = vcombine.low %v451_v57, %v455_v58 }
 0x164   :  { %v6201_v18 = vcombine.low %v443_v63, %v447_v2 }
 0x165   :  { %1739 = vmatpush1.bf16.msra.mxu0 %v6327_v5  ;;  %v6263_v5 = vcombine.low %v506_v54, %v510_v56  ;;  %v523_v56 = vld [vmem:[#allocation6 + $0x390] sm:$0xff] }
 0x166   :  { %1698 = vmatpush1.bf16.msra.mxu1 %v6191_v4  ;;  %1740 = vmatprep.subr.bf16.mxu0 %v6320_v15  ;;  %v6210_v4 = vcombine.high %v451_v57, %v455_v58  ;;  %v6256_v15 = vcombine.high %v498_v61, %v502_v62  ;;  %v527_v57 = vld [vmem:[#allocation6 + $0x3b0] sm:$0xff] }
 0x167   :  { %1699 = vmatprep.subr.bf16.mxu1 %v6184_v14  ;;  %v439_v14 = vld [vmem:[#allocation6 + $0xf0] sm:$0xff] }
 0x168   :  { %v6193_v26 = vcombine.low %v435_v13, %v439_v14  ;;  %v579_v58 = vld [vmem:[#allocation6 + $0x550] sm:$0xff] }
 0x169   :  { %1741 = vmatpush1.bf16.msra.mxu0 %v6319_v17  ;;  %v6255_v17 = vcombine.low %v498_v61, %v502_v62  ;;  %v6282_v62 = vcombine.high %v523_v56, %v527_v57 }
 0x16a   :  { %1700 = vmatpush1.bf16.msra.mxu1 %v6183_v16  ;;  %1742 = vmatprep.subr.bf16.mxu0 %v6312_v23  ;;  %v6202_v16 = vcombine.high %v443_v63, %v447_v2  ;;  %v6248_v23 = vcombine.high %v490_v7, %v494_v10  ;;  %v515_v2 = vld [vmem:[#allocation6 + $0x350] sm:$0xff] }
 0x16b   :  { %1701 = vmatprep.subr.bf16.mxu1 %v6176_v22  ;;  %v431_v22 = vld [vmem:[#allocation6 + $0xb0] sm:$0xff] }
 0x16c   :  { %v6185_v34 = vcombine.low %v427_v21, %v431_v22 }
 0x16d   :  { %1743 = vmatpush1.bf16.msra.mxu0 %v6311_v25  ;;  %v6247_v25 = vcombine.low %v490_v7, %v494_v10 }
 0x16e   :  { %1702 = vmatpush1.bf16.msra.mxu1 %v6175_v24  ;;  %1744 = vmatprep.subr.bf16.mxu0 %v6304_v31  ;;  %v6194_v24 = vcombine.high %v435_v13, %v439_v14  ;;  %v6240_v31 = vcombine.high %v482_v19, %v486_v20  ;;  %v507_v14 = vld [vmem:[#allocation6 + $0x310] sm:$0xff] }
 0x16f   :  { %1703 = vmatprep.subr.bf16.mxu1 %v6168_v30  ;;  %v423_v30 = vld [vmem:[#allocation6 + $0x70] sm:$0xff] }
 0x170   :  { %v6177_v45 = vcombine.low %v419_v29, %v423_v30 }
 0x171   :  { %1745 = vmatpush1.bf16.msra.mxu0 %v6303_v33  ;;  %v6239_v33 = vcombine.low %v482_v19, %v486_v20 }
 0x172   :  { %1704 = vmatpush1.bf16.msra.mxu1 %v6167_v32  ;;  %1746 = vmatprep.subr.bf16.mxu0 %v6296_v40  ;;  %v6186_v32 = vcombine.high %v427_v21, %v431_v22  ;;  %v6232_v40 = vcombine.high %v474_v27, %v478_v28  ;;  %v499_v22 = vld [vmem:[#allocation6 + $0x2d0] sm:$0xff] }
 0x173   :  { %1705 = vmatprep.subr.bf16.mxu1 %v6288_v39  ;;  %v599_v39 = vld [vmem:[#allocation6 + $0x5f0] sm:$0xff] }
 0x175   :  { %1747 = vmatpush1.bf16.msra.mxu0 %v6295_v44  ;;  %v6231_v44 = vcombine.low %v474_v27, %v478_v28 }
 0x176   :  { %1706 = vmatpush2.bf16.msra.mxu1 %v6287_v43  ;;  %1775 = vmatprep.subr.bf16.mxu0 %v6226_v48  ;;  %v6178_v43 = vcombine.high %v419_v29, %v423_v30  ;;  %v587_v48 = vld [vmem:[#allocation6 + $0x590] sm:$0xff] }
 0x177   :  { %1707 = vmatprep.subr.bf16.mxu1 %v6280_v47  ;;  %v535_v47 = vld [vmem:[#allocation6 + $0x3f0] sm:$0xff]  ;;  %v6345_v61 = vcombine.low %v587_v48, %v591_v49 }
 0x178   :  { %1765 = vmatmul.mubr.bf16.vlgmr.msra.gmra.mxu0 %v8115_v36  ;;  %v6290_v54 = vcombine.high %v531_v46, %v535_v47  ;;  %v491_v30 = vld [vmem:[#allocation6 + $0x290] sm:$0xff] }
 0x179   :  { %1776 = vmatpush1.bf16.msra.mxu0 %v6225_v52  ;;  %1807 = vmatprep.mubr.bf16.mxu0 %v8122_v42  ;;  %v6169_v52 = vcombine.low %v411_v35, %v415_v37 }
 0x17a   :  { %1708 = vmatpush2.bf16.msra.mxu1 %v6279_v51  ;;  %1777 = vmatprep.subr.bf16.mxu0 %v6218_v55  ;;  %v6354_v51 = vcombine.high %v595_v38, %v599_v39  ;;  %v6346_v55 = vcombine.high %v587_v48, %v591_v49  ;;  %v475_v49 = vld [vmem:[#allocation6 + $0x210] sm:$0xff] }
 0x17b   :  { %1709 = vmatprep.subr.bf16.mxu1 %v6272_v53  ;;  %v6353_v53 = vcombine.low %v595_v38, %v599_v39  ;;  %v483_v39 = vld [vmem:[#allocation6 + $0x250] sm:$0xff] }
 0x17d   :  { %1778 = vmatpush1.bf16.msra.mxu0 %v6217_v60  ;;  %v6289_v60 = vcombine.low %v531_v46, %v535_v47 }
 0x17e   :  { %1710 = vmatpush2.bf16.msra.mxu1 %v6271_v59  ;;  %1779 = vmatprep.subr.bf16.mxu0 %v6210_v4  ;;  %v583_v59 = vld [vmem:[#allocation6 + $0x570] sm:$0xff] }
 0x17f   :  { %1711 = vmatprep.subr.bf16.mxu1 %v6264_v3  ;;  %v6338_v63 = vcombine.high %v579_v58, %v583_v59  ;;  %v519_v3 = vld [vmem:[#allocation6 + $0x370] sm:$0xff]  ;;  %v6337_v7 = vcombine.low %v579_v58, %v583_v59  ;;  %v464_v58 = vld [vmem:[#allocation6 + $0x1b8] sm:$0xff] }
 0x180   :  { %v571_v4 = vld [vmem:[#allocation6 + $0x510] sm:$0xff]  ;;  %v6274_v10 = vcombine.high %v515_v2, %v519_v3  ;;  %v596_v59 = vld [vmem:[#allocation6 + $0x5d8] sm:$0xff] }
 0x181   :  { %1780 = vmatpush1.bf16.msra.mxu0 %v6209_v6  ;;  %v6281_v6 = vcombine.low %v523_v56, %v527_v57  ;;  %v460_v57 = vld [vmem:[#allocation6 + $0x198] sm:$0xff] }
 0x182   :  { %1712 = vmatpush2.bf16.msra.mxu1 %v6263_v5  ;;  %1781 = vmatprep.subr.bf16.mxu0 %v6202_v16  ;;  %v575_v5 = vld [vmem:[#allocation6 + $0x530] sm:$0xff] }
 0x183   :  { %1713 = vmatprep.subr.bf16.mxu1 %v6256_v15  ;;  %v6330_v13 = vcombine.high %v571_v4, %v575_v5  ;;  %v511_v15 = vld [vmem:[#allocation6 + $0x330] sm:$0xff]  ;;  %v6329_v19 = vcombine.low %v571_v4, %v575_v5  ;;  %v456_v4 = vld [vmem:[#allocation6 + $0x178] sm:$0xff] }
 0x184   :  { %v563_v16 = vld [vmem:[#allocation6 + $0x4d0] sm:$0xff]  ;;  %v6266_v20 = vcombine.high %v507_v14, %v511_v15  ;;  %v588_v5 = vld [vmem:[#allocation6 + $0x598] sm:$0xff] }
 0x185   :  { %1782 = vmatpush1.bf16.msra.mxu0 %v6201_v18  ;;  %v6273_v18 = vcombine.low %v515_v2, %v519_v3  ;;  %v452_v2 = vld [vmem:[#allocation6 + $0x158] sm:$0xff] }
 0x186   :  { %1714 = vmatpush2.bf16.msra.mxu1 %v6255_v17  ;;  %1783 = vmatprep.subr.bf16.mxu0 %v6194_v24  ;;  %v567_v17 = vld [vmem:[#allocation6 + $0x4f0] sm:$0xff] }
 0x187   :  { %1715 = vmatprep.subr.bf16.mxu1 %v6248_v23  ;;  %v6322_v21 = vcombine.high %v563_v16, %v567_v17  ;;  %v503_v23 = vld [vmem:[#allocation6 + $0x2f0] sm:$0xff]  ;;  %v6321_v27 = vcombine.low %v563_v16, %v567_v17  ;;  %v448_v16 = vld [vmem:[#allocation6 + $0x138] sm:$0xff] }
 0x188   :  { %v555_v24 = vld [vmem:[#allocation6 + $0x490] sm:$0xff]  ;;  %v6258_v28 = vcombine.high %v499_v22, %v503_v23  ;;  %v580_v17 = vld [vmem:[#allocation6 + $0x558] sm:$0xff] }
 0x189   :  { %1784 = vmatpush1.bf16.msra.mxu0 %v6193_v26  ;;  %v6265_v26 = vcombine.low %v507_v14, %v511_v15  ;;  %v444_v15 = vld [vmem:[#allocation6 + $0x118] sm:$0xff] }
 0x18a   :  { %1716 = vmatpush2.bf16.msra.mxu1 %v6247_v25  ;;  %1785 = vmatprep.subr.bf16.mxu0 %v6186_v32  ;;  %v559_v25 = vld [vmem:[#allocation6 + $0x4b0] sm:$0xff] }
 0x18b   :  { %1717 = vmatprep.subr.bf16.mxu1 %v6240_v31  ;;  %v6314_v29 = vcombine.high %v555_v24, %v559_v25  ;;  %v495_v31 = vld [vmem:[#allocation6 + $0x2b0] sm:$0xff]  ;;  %v6313_v35 = vcombine.low %v555_v24, %v559_v25  ;;  %v572_v24 = vld [vmem:[#allocation6 + $0x518] sm:$0xff] }
 0x18c   :  { %v547_v32 = vld [vmem:[#allocation6 + $0x450] sm:$0xff]  ;;  %v6250_v37 = vcombine.high %v491_v30, %v495_v31  ;;  %v576_v25 = vld [vmem:[#allocation6 + $0x538] sm:$0xff] }
 0x18d   :  { %1786 = vmatpush1.bf16.msra.mxu0 %v6185_v34  ;;  %v6257_v34 = vcombine.low %v499_v22, %v503_v23  ;;  %v436_v23 = vld [vmem:[#allocation6 + $0xd8] sm:$0xff] }
 0x18e   :  { %1718 = vmatpush2.bf16.msra.mxu1 %v6239_v33  ;;  %1787 = vmatprep.subr.bf16.mxu0 %v6178_v43  ;;  %v551_v33 = vld [vmem:[#allocation6 + $0x470] sm:$0xff] }
 0x18f   :  { %1719 = vmatprep.subr.bf16.mxu1 %v6232_v40  ;;  %v6306_v38 = vcombine.high %v547_v32, %v551_v33  ;;  %v487_v40 = vld [vmem:[#allocation6 + $0x270] sm:$0xff]  ;;  %v6305_v46 = vcombine.low %v547_v32, %v551_v33  ;;  %v564_v32 = vld [vmem:[#allocation6 + $0x4d8] sm:$0xff] }
 0x190   :  { %v539_v43 = vld [vmem:[#allocation6 + $0x410] sm:$0xff]  ;;  %v6242_v47 = vcombine.high %v483_v39, %v487_v40  ;;  %v568_v33 = vld [vmem:[#allocation6 + $0x4f8] sm:$0xff] }
 0x191   :  { %1788 = vmatpush1.bf16.msra.mxu0 %v6177_v45  ;;  %v6249_v45 = vcombine.low %v491_v30, %v495_v31  ;;  %v428_v30 = vld [vmem:[#allocation6 + $0x98] sm:$0xff] }
 0x192   :  { %1720 = vmatpush2.bf16.msra.mxu1 %v6231_v44  ;;  %1789 = vmatprep.subr.bf16.mxu0 %v6170_v50  ;;  %v543_v44 = vld [vmem:[#allocation6 + $0x430] sm:$0xff]  ;;  %v432_v31 = vld [vmem:[#allocation6 + $0xb8] sm:$0xff] }
 0x193   :  { %1818 = vmatprep.subr.bf16.mxu1 %v6354_v51  ;;  %v6298_v48 = vcombine.high %v539_v43, %v543_v44  ;;  %v479_v50 = vld [vmem:[#allocation6 + $0x230] sm:$0xff]  ;;  %v468_v51 = vld [vmem:[#allocation6 + $0x1d8] sm:$0xff] }
 0x195   :  { %1722 = vmatmul.mubr.bf16.vlgmr.msra.gmra.mxu1 %v8118_v41  ;;  %1790 = vmatpush1.bf16.msra.mxu0 %v6169_v52  ;;  %v472_v52 = vld [vmem:[#allocation6 + $0x1f8] sm:$0xff] }
 0x196   :  { %1819 = vmatpush1.bf16.msra.mxu1 %v6353_v53  ;;  %1791 = vmatprep.subr.bf16.mxu0 %v6290_v54  ;;  %v6241_v53 = vcombine.low %v483_v39, %v487_v40  ;;  %v6297_v54 = vcombine.low %v539_v43, %v543_v44  ;;  %v6228_v56 = vcombine.high %v468_v51, %v472_v52  ;;  %v420_v39 = vld [vmem:[#allocation6 + $0x58] sm:$0xff] }
 0x197   :  { %1820 = vmatprep.subr.bf16.mxu1 %v6346_v55  ;;  %1850 = vmatprep.mubr.bf16.mxu1 %v8010_v1  ;;  %v6234_v55 = vcombine.high %v475_v49, %v479_v50  ;;  %v424_v40 = vld [vmem:[#allocation6 + $0x78] sm:$0xff] }
 0x198   :  { %v556_v43 = vld [vmem:[#allocation6 + $0x498] sm:$0xff] }
 0x199   :  { %1792 = vmatpush2.bf16.msra.mxu0 %v6289_v60  ;;  %v600_v60 = vld [vmem:[#allocation6 + $0x5f8] sm:$0xff] }
 0x19a   :  { %1821 = vmatpush1.bf16.msra.mxu1 %v6345_v61  ;;  %1793 = vmatprep.subr.bf16.mxu0 %v6282_v62  ;;  %v6233_v61 = vcombine.low %v475_v49, %v479_v50  ;;  %v6227_v62 = vcombine.low %v468_v51, %v472_v52  ;;  %v6356_v3 = vcombine.high %v596_v59, %v600_v60  ;;  %v560_v44 = vld [vmem:[#allocation6 + $0x4b8] sm:$0xff] }
 0x19b   :  { %1822 = vmatprep.subr.bf16.mxu1 %v6338_v63  ;;  %v6220_v63 = vcombine.high %v460_v57, %v464_v58  ;;  %v412_v49 = vld [vmem:[#allocation6 + $0x18] sm:$0xff] }
 0x19c   :  { %v416_v50 = vld [vmem:[#allocation6 + $0x38] sm:$0xff] }
 0x19d   :  { %1794 = vmatpush2.bf16.msra.mxu0 %v6281_v6  ;;  %v592_v6 = vld [vmem:[#allocation6 + $0x5b8] sm:$0xff] }
 0x19e   :  { %1823 = vmatpush1.bf16.msra.mxu1 %v6337_v7  ;;  %1795 = vmatprep.subr.bf16.mxu0 %v6274_v10  ;;  %v6219_v7 = vcombine.low %v460_v57, %v464_v58  ;;  %v6355_v10 = vcombine.low %v596_v59, %v600_v60  ;;  %v6348_v14 = vcombine.high %v588_v5, %v592_v6  ;;  %v548_v51 = vld [vmem:[#allocation6 + $0x458] sm:$0xff] }
 0x19f   :  { %1824 = vmatprep.subr.bf16.mxu1 %v6330_v13  ;;  %v6212_v13 = vcombine.high %v452_v2, %v456_v4  ;;  %v552_v52 = vld [vmem:[#allocation6 + $0x478] sm:$0xff] }
 0x1a0   :  { %v532_v57 = vld [vmem:[#allocation6 + $0x3d8] sm:$0xff] }
 0x1a1   :  { %1796 = vmatpush2.bf16.msra.mxu0 %v6273_v18  ;;  %v584_v18 = vld [vmem:[#allocation6 + $0x578] sm:$0xff] }
 0x1a2   :  { %1825 = vmatpush1.bf16.msra.mxu1 %v6329_v19  ;;  %1797 = vmatprep.subr.bf16.mxu0 %v6266_v20  ;;  %v6211_v19 = vcombine.low %v452_v2, %v456_v4  ;;  %v6347_v20 = vcombine.low %v588_v5, %v592_v6  ;;  %v6340_v22 = vcombine.high %v580_v17, %v584_v18  ;;  %v536_v58 = vld [vmem:[#allocation6 + $0x3f8] sm:$0xff] }
 0x1a3   :  { %1826 = vmatprep.subr.bf16.mxu1 %v6322_v21  ;;  %v6204_v21 = vcombine.high %v444_v15, %v448_v16  ;;  %v540_v59 = vld [vmem:[#allocation6 + $0x418] sm:$0xff]  ;;  %v6291_v5 = vcombine.low %v532_v57, %v536_v58 }
 0x1a4   :  { %v544_v60 = vld [vmem:[#allocation6 + $0x438] sm:$0xff] }
 0x1a5   :  { %1798 = vmatpush2.bf16.msra.mxu0 %v6265_v26  ;;  %v6203_v26 = vcombine.low %v444_v15, %v448_v16  ;;  %v6300_v2 = vcombine.high %v540_v59, %v544_v60  ;;  %v528_v4 = vld [vmem:[#allocation6 + $0x3b8] sm:$0xff]  ;;  %v6299_v6 = vcombine.low %v540_v59, %v544_v60  ;;  %v7126_v16 = vld [vmem:[#allocation9 + $0x188] ss:$28 sps:$4 sm:$0xff]  }
 0x1a6   :  { %1827 = vmatpush1.bf16.msra.mxu1 %v6321_v27  ;;  %1799 = vmatprep.subr.bf16.mxu0 %v6258_v28  ;;  %v6339_v27 = vcombine.low %v580_v17, %v584_v18  ;;  %v7131_v18 = vld [vmem:[#allocation9 + $0x154] ss:$28 sps:$4 sm:$0xff]  }
 0x1a7   :  { %1828 = vmatprep.subr.bf16.mxu1 %v6314_v29  ;;  %v6332_v29 = vcombine.high %v572_v24, %v576_v25  ;;  %v7177_v59 = vld [vmem:[#allocation9 + $0x4d0] ss:$28 sps:$4 sm:$0xff]  }
 0x1a8   :  { %v7155_v60 = vld [vmem:[#allocation9 + $0x314] ss:$28 sps:$4 sm:$0xff]  }
 0x1a9   :  { %1800 = vmatpush2.bf16.msra.mxu0 %v6257_v34 }
 0x1aa   :  { %1829 = vmatpush1.bf16.msra.mxu1 %v6313_v35  ;;  %1801 = vmatprep.subr.bf16.mxu0 %v6250_v37  ;;  %v6331_v35 = vcombine.low %v572_v24, %v576_v25  ;;  %v6188_v37 = vcombine.high %v428_v30, %v432_v31  ;;  %v500_v24 = vld [vmem:[#allocation6 + $0x2d8] sm:$0xff] }
 0x1ab   :  { %1830 = vmatprep.subr.bf16.mxu1 %v6306_v38  ;;  %v6324_v38 = vcombine.high %v564_v32, %v568_v33  ;;  %v504_v25 = vld [vmem:[#allocation6 + $0x2f8] sm:$0xff] }
 0x1ad   :  { %1802 = vmatpush2.bf16.msra.mxu0 %v6249_v45  ;;  %v6187_v45 = vcombine.low %v428_v30, %v432_v31  ;;  %v492_v30 = vld [vmem:[#allocation6 + $0x298] sm:$0xff]  ;;  %v6259_v31 = vcombine.low %v500_v24, %v504_v25 }
 0x1ae   :  { %1831 = vmatpush1.bf16.msra.mxu1 %v6305_v46  ;;  %1803 = vmatprep.subr.bf16.mxu0 %v6242_v47  ;;  %v6323_v46 = vcombine.low %v564_v32, %v568_v33  ;;  %v6180_v47 = vcombine.high %v420_v39, %v424_v40  ;;  %v7135_v32 = vld [vmem:[#allocation9 + $0xe0] ss:$28 sps:$4 sm:$0xff]  }
 0x1af   :  { %1832 = vmatprep.subr.bf16.mxu1 %v6298_v48  ;;  %v6316_v48 = vcombine.high %v556_v43, %v560_v44 }
 0x1b1   :  { %1804 = vmatpush2.bf16.msra.mxu0 %v6241_v53  ;;  %v6179_v53 = vcombine.low %v420_v39, %v424_v40  ;;  %v7138_v39 = vld [vmem:[#allocation9 + $0xa8] ss:$28 sps:$4 sm:$0xff]  }
 0x1b2   :  { %1833 = vmatpush1.bf16.msra.mxu1 %v6297_v54  ;;  %1805 = vmatprep.subr.bf16.mxu0 %v6234_v55  ;;  %v6315_v54 = vcombine.low %v556_v43, %v560_v44  ;;  %v6172_v55 = vcombine.high %v412_v49, %v416_v50  ;;  %v7143_v43 = vld [vmem:[#allocation9 + $0x74] ss:$28 sps:$4 sm:$0xff]  }
 0x1b3   :  { %1861 = vmatprep.subr.bf16.mxu1 %v6228_v56  ;;  %v6308_v56 = vcombine.high %v548_v51, %v552_v52  ;;  %v476_v44 = vld [vmem:[#allocation6 + $0x218] sm:$0xff] }
 0x1b5   :  { %1851 = vmatmul.mubr.bf16.vlgmr.msra.gmra.mxu1 %v8115_v36  ;;  %1806 = vmatpush2.bf16.msra.mxu0 %v6233_v61  ;;  %v6171_v61 = vcombine.low %v412_v49, %v416_v50  ;;  %v7146_v49 = vld [vmem:[#allocation9 + $0x3c] ss:$28 sps:$4 sm:$0xff]  }
 0x1b6   :  { %1862 = vmatpush1.bf16.msra.mxu1 %v6227_v62  ;;  %1893 = vmatprep.mubr.bf16.mxu1 %v8122_v42  ;;  %v440_v42 = vld [vmem:[#allocation6 + $0xf8] sm:$0xff]  ;;  %v6307_v62 = vcombine.low %v548_v51, %v552_v52  ;;  %v7149_v52 = vld [vmem:[#allocation9 + $0x4] ss:$28 sps:$4 sm:$0xff]  }
 0x1b7   :  { %1863 = vmatprep.subr.bf16.mxu1 %v6220_v63  ;;  %1904 = vmatprep.subr.bf16.mxu0 %v6356_v3  ;;  %v6196_v28 = vcombine.high %v436_v23, %v440_v42  ;;  %v6195_v34 = vcombine.low %v436_v23, %v440_v42  ;;  %v6292_v63 = vcombine.high %v532_v57, %v536_v58  ;;  %v524_v3 = vld [vmem:[#allocation6 + $0x398] sm:$0xff]  ;;  %v7134_v42 = vld [vmem:[#allocation9 + $0x11c] ss:$28 sps:$4 sm:$0xff]   ;;  %v7150_v58 = vld [vmem:[#allocation9 + $0x348] ss:$28 sps:$4 sm:$0xff]  }
 0x1b8   :  { %1808 = vmatmul.mubr.bf16.vlgmr.msra.gmra.mxu0 %v8118_v41  ;;  %v6283_v15 = vcombine.low %v524_v3, %v528_v4  ;;  %v7144_v51 = vld [vmem:[#allocation9 + $0x38] ss:$28 sps:$4 sm:$0xff]  }
 0x1b9   :  { %1905 = vmatpush1.bf16.msra.mxu0 %v6355_v10  ;;  %1936 = vmatprep.mubr.bf16.mxu0 %v8010_v1  ;;  %v7128_v10 = vld [vmem:[#allocation9 + $0x18c] ss:$28 sps:$4 sm:$0xff]   ;;  %v7179_v57 = vld [vmem:[#allocation9 + $0x4d4] ss:$28 sps:$4 sm:$0xff]  }
 0x1ba   :  { %1864 = vmatpush1.bf16.msra.mxu1 %v6219_v7  ;;  %1906 = vmatprep.subr.bf16.mxu0 %v6348_v14  ;;  %v6284_v7 = vcombine.high %v524_v3, %v528_v4  ;;  %v520_v14 = vld [vmem:[#allocation6 + $0x378] sm:$0xff]  ;;  %v7185_v3 = vld [vmem:[#allocation9 + $0x464] ss:$28 sps:$4 sm:$0xff]  }
 0x1bb   :  { %1865 = vmatprep.subr.bf16.mxu1 %v6212_v13  ;;  %v516_v13 = vld [vmem:[#allocation6 + $0x358] sm:$0xff] }
 0x1bc   :  { %v6276_v17 = vcombine.high %v516_v13, %v520_v14  ;;  %v7156_v4 = vld [vmem:[#allocation9 + $0x2d8] ss:$28 sps:$4 sm:$0xff]  }
 0x1bd   :  { %1907 = vmatpush1.bf16.msra.mxu0 %v6347_v20  ;;  %v512_v20 = vld [vmem:[#allocation6 + $0x338] sm:$0xff] }
 0x1be   :  { %1866 = vmatpush1.bf16.msra.mxu1 %v6211_v19  ;;  %1908 = vmatprep.subr.bf16.mxu0 %v6340_v22  ;;  %v508_v19 = vld [vmem:[#allocation6 + $0x318] sm:$0xff] }
 0x1bf   :  { %1867 = vmatprep.subr.bf16.mxu1 %v6204_v21  ;;  %v6275_v21 = vcombine.low %v516_v13, %v520_v14  ;;  %v7129_v22 = vld [vmem:[#allocation9 + $0x150] ss:$28 sps:$4 sm:$0xff]   ;;  %v6268_v23 = vcombine.high %v508_v19, %v512_v20 }
 0x1c0   :  { %v7164_v13 = vld [vmem:[#allocation9 + $0x26c] ss:$28 sps:$4 sm:$0xff]   ;;  %v7191_v14 = vld [vmem:[#allocation9 + $0x3f4] ss:$28 sps:$4 sm:$0xff]  }
 0x1c1   :  { %1909 = vmatpush1.bf16.msra.mxu0 %v6339_v27  ;;  %v7132_v27 = vld [vmem:[#allocation9 + $0x118] ss:$28 sps:$4 sm:$0xff]  }
 0x1c2   :  { %1868 = vmatpush1.bf16.msra.mxu1 %v6203_v26  ;;  %1910 = vmatprep.subr.bf16.mxu0 %v6332_v29  ;;  %v6267_v26 = vcombine.low %v508_v19, %v512_v20  ;;  %v7137_v29 = vld [vmem:[#allocation9 + $0xe4] ss:$28 sps:$4 sm:$0xff]   ;;  %v7165_v19 = vld [vmem:[#allocation9 + $0x230] ss:$28 sps:$4 sm:$0xff]   ;;  %v7192_v20 = vld [vmem:[#allocation9 + $0x3b8] ss:$28 sps:$4 sm:$0xff]  }
 0x1c3   :  { %1869 = vmatprep.subr.bf16.mxu1 %v6196_v28  ;;  %v6260_v28 = vcombine.high %v500_v24, %v504_v25  ;;  %v7176_v24 = vld [vmem:[#allocation9 + $0x1c4] ss:$28 sps:$4 sm:$0xff]   ;;  %v7200_v25 = vld [vmem:[#allocation9 + $0x6cc] ss:$28 sps:$4 sm:$0xff]  }
 0x1c5   :  { %1911 = vmatpush1.bf16.msra.mxu0 %v6331_v35  ;;  %v484_v35 = vld [vmem:[#allocation6 + $0x258] sm:$0xff] }
 0x1c6   :  { %1870 = vmatpush1.bf16.msra.mxu1 %v6195_v34  ;;  %1912 = vmatprep.subr.bf16.mxu0 %v6324_v38  ;;  %v7140_v34 = vld [vmem:[#allocation9 + $0xac] ss:$28 sps:$4 sm:$0xff]  }
 0x1c7   :  { %1871 = vmatprep.subr.bf16.mxu1 %v6188_v37  ;;  %v488_v37 = vld [vmem:[#allocation6 + $0x278] sm:$0xff] }
 0x1c8   :  { %v6244_v40 = vcombine.high %v484_v35, %v488_v37 }
 0x1c9   :  { %1913 = vmatpush1.bf16.msra.mxu0 %v6323_v46  ;;  %v6243_v46 = vcombine.low %v484_v35, %v488_v37 }
 0x1ca   :  { %1872 = vmatpush1.bf16.msra.mxu1 %v6187_v45  ;;  %1914 = vmatprep.subr.bf16.mxu0 %v6316_v48  ;;  %v480_v45 = vld [vmem:[#allocation6 + $0x238] sm:$0xff] }
 0x1cb   :  { %1873 = vmatprep.subr.bf16.mxu1 %v6180_v47  ;;  %v7141_v47 = vld [vmem:[#allocation9 + $0x70] ss:$28 sps:$4 sm:$0xff]   ;;  %v6236_v48 = vcombine.high %v476_v44, %v480_v45  ;;  %v6235_v50 = vcombine.low %v476_v44, %v480_v45 }
 0x1cd   :  { %1915 = vmatpush1.bf16.msra.mxu0 %v6315_v54  ;;  %v7147_v54 = vld [vmem:[#allocation9] ss:$28 sps:$4 sm:$0xff]  }
 0x1ce   :  { %1874 = vmatpush1.bf16.msra.mxu1 %v6179_v53  ;;  %1916 = vmatprep.subr.bf16.mxu0 %v6308_v56  ;;  %v7173_v53 = vld [vmem:[#allocation9 + $0x50c] ss:$28 sps:$4 sm:$0xff]  }
 0x1cf   :  { %1875 = vmatprep.subr.bf16.mxu1 %v6172_v55  ;;  %v7171_v55 = vld [vmem:[#allocation9 + $0x508] ss:$28 sps:$4 sm:$0xff]  }
 0x1d0   :  { %v7152_v56 = vld [vmem:[#allocation9 + $0x34c] ss:$28 sps:$4 sm:$0xff]  }
 0x1d1   :  { %1917 = vmatpush1.bf16.msra.mxu0 %v6307_v62  ;;  %v7153_v62 = vld [vmem:[#allocation9 + $0x310] ss:$28 sps:$4 sm:$0xff]  }
 0x1d2   :  { %1876 = vmatpush1.bf16.msra.mxu1 %v6171_v61  ;;  %1918 = vmatprep.subr.bf16.mxu0 %v6300_v2  ;;  %v7182_v61 = vld [vmem:[#allocation9 + $0x49c] ss:$28 sps:$4 sm:$0xff]  }
 0x1d3   :  { %1877 = vmatprep.subr.bf16.mxu1 %v6292_v63  ;;  %v7180_v63 = vld [vmem:[#allocation9 + $0x498] ss:$28 sps:$4 sm:$0xff]  }
 0x1d4   :  { %v7158_v2 = vld [vmem:[#allocation9 + $0x2dc] ss:$28 sps:$4 sm:$0xff]  }
 0x1d5   :  { %1919 = vmatpush1.bf16.msra.mxu0 %v6299_v6  ;;  %v7188_v6 = vld [vmem:[#allocation9 + $0x42c] ss:$28 sps:$4 sm:$0xff]  }
 0x1d6   :  { %1878 = vmatpush2.bf16.msra.mxu1 %v6291_v5  ;;  %4816 = vmatprep.subr.bf16.mxu0 %v7128_v10  ;;  %v7161_v5 = vld [vmem:[#allocation9 + $0x2a4] ss:$28 sps:$4 sm:$0xff]  }
 0x1d7   :  { %1879 = vmatprep.subr.bf16.mxu1 %v6284_v7  ;;  %v7159_v7 = vld [vmem:[#allocation9 + $0x2a0] ss:$28 sps:$4 sm:$0xff]   ;;  %v7186_v10 = vld [vmem:[#allocation9 + $0x428] ss:$28 sps:$4 sm:$0xff]  }
 0x1d8   :  { %1937 = vmatmul.mubr.bf16.vlgmr.msra.gmra.mxu0 %v8115_v36  ;;  %v496_v36 = vld [vmem:[#allocation6 + $0x2b8] sm:$0xff] }
 0x1d9   :  { %4817 = vmatpush1.bf16.msra.mxu0 %v7126_v16  ;;  %v6252_v33 = vcombine.high %v492_v30, %v496_v36  ;;  %v6251_v38 = vcombine.low %v492_v30, %v496_v36  ;;  %v7189_v16 = vld [vmem:[#allocation9 + $0x3f0] ss:$28 sps:$4 sm:$0xff]   ;;  %v8138_v36 = vld [vmem:[#allocation7] sm:$0xff] }
 0x1da   :  { %1880 = vmatpush2.bf16.msra.mxu1 %v6283_v15  ;;  %4818 = vmatprep.subr.bf16.mxu0 %v7131_v18  ;;  %v7162_v15 = vld [vmem:[#allocation9 + $0x268] ss:$28 sps:$4 sm:$0xff]   ;;  %v7194_v18 = vld [vmem:[#allocation9 + $0x3bc] ss:$28 sps:$4 sm:$0xff]   ;;  %v610_v37 = vrot.slane %v8138_v36, %v8109_v12 }
 0x1db   :  { %1881 = vmatprep.subr.bf16.mxu1 %v6276_v17  ;;  %v7167_v17 = vld [vmem:[#allocation9 + $0x234] ss:$28 sps:$4 sm:$0xff]  }
 0x1dd   :  { %4819 = vmatpush1.bf16.msra.mxu0 %v7129_v22  ;;  %v7197_v22 = vld [vmem:[#allocation9 + $0x384] ss:$28 sps:$4 sm:$0xff]  }
 0x1de   :  { %1882 = vmatpush2.bf16.msra.mxu1 %v6275_v21  ;;  %4820 = vmatprep.subr.bf16.mxu0 %v7134_v42  ;;  %v7170_v21 = vld [vmem:[#allocation9 + $0x1fc] ss:$28 sps:$4 sm:$0xff]  }
 0x1df   :  { %1883 = vmatprep.subr.bf16.mxu1 %v6268_v23  ;;  %v7168_v23 = vld [vmem:[#allocation9 + $0x1f8] ss:$28 sps:$4 sm:$0xff]   ;;  %v7195_v42 = vld [vmem:[#allocation9 + $0x380] ss:$28 sps:$4 sm:$0xff]  }
 0x1e1   :  { %4821 = vmatpush1.bf16.msra.mxu0 %v7132_v27  ;;  %v7198_v27 = vld [vmem:[#allocation9 + $0x6c8] ss:$28 sps:$4 sm:$0xff]  }
 0x1e2   :  { %1884 = vmatpush2.bf16.msra.mxu1 %v6267_v26  ;;  %4822 = vmatprep.subr.bf16.mxu0 %v7137_v29  ;;  %v7174_v26 = vld [vmem:[#allocation9 + $0x1c0] ss:$28 sps:$4 sm:$0xff]   ;;  %v7206_v29 = vld [vmem:[#allocation9 + $0x694] ss:$28 sps:$4 sm:$0xff]  }
 0x1e3   :  { %1885 = vmatprep.subr.bf16.mxu1 %v6260_v28  ;;  %v7203_v28 = vld [vmem:[#allocation9 + $0x88c] ss:$28 sps:$4 sm:$0xff]  }
 0x1e5   :  { %4823 = vmatpush1.bf16.msra.mxu0 %v7135_v32  ;;  %v7212_v32 = vld [vmem:[#allocation9 + $0x65c] ss:$28 sps:$4 sm:$0xff]  }
 0x1e6   :  { %1886 = vmatpush2.bf16.msra.mxu1 %v6259_v31  ;;  %4824 = vmatprep.subr.bf16.mxu0 %v7140_v34  ;;  %v7204_v31 = vld [vmem:[#allocation9 + $0x690] ss:$28 sps:$4 sm:$0xff]   ;;  %v606_v34 = vrot.slane %v8138_v36, %v8103_v9 }
 0x1e7   :  { %1887 = vmatprep.subr.bf16.mxu1 %v6252_v33 }
 0x1e9   :  { %4825 = vmatpush1.bf16.msra.mxu0 %v7138_v39 }
 0x1ea   :  { %1888 = vmatpush2.bf16.msra.mxu1 %v6251_v38  ;;  %4826 = vmatprep.subr.bf16.mxu0 %v7143_v43  ;;  %v7210_v38 = vld [vmem:[#allocation9 + $0x658] ss:$28 sps:$4 sm:$0xff]  }
 0x1eb   :  { %1889 = vmatprep.subr.bf16.mxu1 %v6244_v40  ;;  %v7218_v40 = vld [vmem:[#allocation9 + $0x624] ss:$28 sps:$4 sm:$0xff]  }
 0x1ed   :  { %4827 = vmatpush1.bf16.msra.mxu0 %v7141_v47 }
 0x1ee   :  { %1890 = vmatpush2.bf16.msra.mxu1 %v6243_v46  ;;  %4828 = vmatprep.subr.bf16.mxu0 %v7146_v49 }
 0x1ef   :  { %1891 = vmatprep.subr.bf16.mxu1 %v6236_v48  ;;  %v7216_v48 = vld [vmem:[#allocation9 + $0x620] ss:$28 sps:$4 sm:$0xff]  }
 0x1f1   :  { %4829 = vmatpush1.bf16.msra.mxu0 %v7144_v51 }
 0x1f2   :  { %1892 = vmatpush2.bf16.msra.mxu1 %v6235_v50  ;;  %4830 = vmatprep.subr.bf16.mxu0 %v7149_v52  ;;  %v7224_v50 = vld [vmem:[#allocation9 + $0x5ec] ss:$28 sps:$4 sm:$0xff]  }
 0x1f3   :  { %4859 = vmatprep.subr.bf16.mxu1 %v7173_v53 }
 0x1f5   :  { %1894 = vmatmul.mubr.bf16.vlgmr.msra.gmra.mxu1 %v8118_v41  ;;  %4831 = vmatpush1.bf16.msra.mxu0 %v7147_v54  ;;  %v7183_v41 = vld [vmem:[#allocation9 + $0x460] ss:$28 sps:$4 sm:$0xff]  }
 0x1f6   :  { %4860 = vmatpush1.bf16.msra.mxu1 %v7171_v55  ;;  %4832 = vmatprep.subr.bf16.mxu0 %v7152_v56 }
 0x1f7   :  { %4861 = vmatprep.subr.bf16.mxu1 %v7179_v57  ;;  %v7222_v57 = vld [vmem:[#allocation9 + $0x5e8] ss:$28 sps:$4 sm:$0xff]  }
 0x1f9   :  { %4833 = vmatpush2.bf16.msra.mxu0 %v7150_v58 }
 0x1fa   :  { %4862 = vmatpush1.bf16.msra.mxu1 %v7177_v59  ;;  %4834 = vmatprep.subr.bf16.mxu0 %v7155_v60  ;;  %v7230_v59 = vld [vmem:[#allocation9 + $0x5b4] ss:$28 sps:$4 sm:$0xff]  }
 0x1fb   :  { %4863 = vmatprep.subr.bf16.mxu1 %v7182_v61 }
 0x1fd   :  { %4835 = vmatpush2.bf16.msra.mxu0 %v7153_v62  ;;  %v7201_v62 = vld [vmem:[#allocation9 + $0x888] ss:$28 sps:$4 sm:$0xff]  }
 0x1fe   :  { %4864 = vmatpush1.bf16.msra.mxu1 %v7180_v63  ;;  %4836 = vmatprep.subr.bf16.mxu0 %v7158_v2  ;;  %v7228_v63 = vld [vmem:[#allocation9 + $0x5b0] ss:$28 sps:$4 sm:$0xff]  }
 0x1ff   :  { %4865 = vmatprep.subr.bf16.mxu1 %v7185_v3  ;;  %v7209_v3 = vld [vmem:[#allocation9 + $0x854] ss:$28 sps:$4 sm:$0xff]  }
 0x201   :  { %4837 = vmatpush2.bf16.msra.mxu0 %v7156_v4  ;;  %v7236_v4 = vld [vmem:[#allocation9 + $0x57c] ss:$28 sps:$4 sm:$0xff]  }
 0x202   :  { %4866 = vmatpush1.bf16.msra.mxu1 %v7183_v41  ;;  %4838 = vmatprep.subr.bf16.mxu0 %v7161_v5  ;;  %v7207_v41 = vld [vmem:[#allocation9 + $0x850] ss:$28 sps:$4 sm:$0xff]   ;;  %v7234_v5 = vld [vmem:[#allocation9 + $0x578] ss:$28 sps:$4 sm:$0xff]  }
 0x203   :  { %4867 = vmatprep.subr.bf16.mxu1 %v7188_v6  ;;  %v7215_v6 = vld [vmem:[#allocation9 + $0x81c] ss:$28 sps:$4 sm:$0xff]  }
 0x205   :  { %4839 = vmatpush2.bf16.msra.mxu0 %v7159_v7  ;;  %v7242_v7 = vld [vmem:[#allocation9 + $0x544] ss:$28 sps:$4 sm:$0xff]  }
 0x206   :  { %4868 = vmatpush1.bf16.msra.mxu1 %v7186_v10  ;;  %4840 = vmatprep.subr.bf16.mxu0 %v7164_v13  ;;  %v7213_v10 = vld [vmem:[#allocation9 + $0x818] ss:$28 sps:$4 sm:$0xff]   ;;  %v7240_v13 = vld [vmem:[#allocation9 + $0x540] ss:$28 sps:$4 sm:$0xff]  }
 0x207   :  { %4869 = vmatprep.subr.bf16.mxu1 %v7191_v14  ;;  %v7221_v14 = vld [vmem:[#allocation9 + $0x7e4] ss:$28 sps:$4 sm:$0xff]  }
 0x209   :  { %4841 = vmatpush2.bf16.msra.mxu0 %v7162_v15  ;;  %v7272_v15 = vld [vmem:[#allocation9 + $0xc0c] ss:$28 sps:$4 sm:$0xff]  }
 0x20a   :  { %4870 = vmatpush1.bf16.msra.mxu1 %v7189_v16  ;;  %4842 = vmatprep.subr.bf16.mxu0 %v7167_v17  ;;  %v7219_v16 = vld [vmem:[#allocation9 + $0x7e0] ss:$28 sps:$4 sm:$0xff]   ;;  %v7227_v17 = vld [vmem:[#allocation9 + $0x7ac] ss:$28 sps:$4 sm:$0xff]  }
 0x20b   :  { %4871 = vmatprep.subr.bf16.mxu1 %v7194_v18  ;;  %v7225_v18 = vld [vmem:[#allocation9 + $0x7a8] ss:$28 sps:$4 sm:$0xff]  }
 0x20d   :  { %4843 = vmatpush2.bf16.msra.mxu0 %v7165_v19  ;;  %v7233_v19 = vld [vmem:[#allocation9 + $0x774] ss:$28 sps:$4 sm:$0xff]  }
 0x20e   :  { %4872 = vmatpush1.bf16.msra.mxu1 %v7192_v20  ;;  %4844 = vmatprep.subr.bf16.mxu0 %v7170_v21  ;;  %v7231_v20 = vld [vmem:[#allocation9 + $0x770] ss:$28 sps:$4 sm:$0xff]   ;;  %v7239_v21 = vld [vmem:[#allocation9 + $0x73c] ss:$28 sps:$4 sm:$0xff]  }
 0x20f   :  { %4873 = vmatprep.subr.bf16.mxu1 %v7197_v22  ;;  %v7237_v22 = vld [vmem:[#allocation9 + $0x738] ss:$28 sps:$4 sm:$0xff]  }
 0x211   :  { %4845 = vmatpush2.bf16.msra.mxu0 %v7168_v23  ;;  %v7245_v23 = vld [vmem:[#allocation9 + $0x704] ss:$28 sps:$4 sm:$0xff]  }
 0x212   :  { %4874 = vmatpush1.bf16.msra.mxu1 %v7195_v42  ;;  %4846 = vmatprep.subr.bf16.mxu0 %v7176_v24  ;;  %v7243_v42 = vld [vmem:[#allocation9 + $0x700] ss:$28 sps:$4 sm:$0xff]   ;;  %v7248_v24 = vld [vmem:[#allocation9 + $0xa4c] ss:$28 sps:$4 sm:$0xff]  }
 0x213   :  { %4875 = vmatprep.subr.bf16.mxu1 %v7200_v25  ;;  %v7246_v25 = vld [vmem:[#allocation9 + $0xa48] ss:$28 sps:$4 sm:$0xff]  }
 0x215   :  { %v1680_v30 = vpop.f32.mrf.mxu1  ;;  %4847 = vmatpush2.bf16.msra.mxu0 %v7174_v26  ;;  %v7251_v26 = vld [vmem:[#allocation9 + $0xa14] ss:$28 sps:$4 sm:$0xff]  }
 0x216   :  { %4876 = vmatpush2.bf16.msra.mxu1 %v7198_v27  ;;  %4902 = vmatprep.subr.bf16.mxu0 %v7203_v28  ;;  %v7249_v27 = vld [vmem:[#allocation9 + $0xa10] ss:$28 sps:$4 sm:$0xff]   ;;  %v7254_v28 = vld [vmem:[#allocation9 + $0x9dc] ss:$28 sps:$4 sm:$0xff]  }
 0x217   :  { %4877 = vmatprep.subr.bf16.mxu1 %v7206_v29  ;;  %v1682_v33 = vpop.f32.mrf.mxu1  ;;  %v7252_v29 = vld [vmem:[#allocation9 + $0x9d8] ss:$28 sps:$4 sm:$0xff]  }
 0x218   :  { %v1637_v35 = vpop.f32.mrf.mxu0 }
 0x219   :  { %v1638_v43 = vadd.f32 %v1637_v35, %v606_v34  ;;  %v1684_v44 = vpop.f32.mrf.mxu1 }
 0x21a   :  { %4878 = vmatpush2.bf16.msra.mxu1 %v7204_v31  ;;  %v1639_v39 = vpop.f32.mrf.mxu0 }
 0x21b   :  { %4879 = vmatprep.subr.bf16.mxu1 %v7212_v32  ;;  %v1640_v46 = vadd.f32 %v1639_v39, %v610_v37  ;;  %v1681_v53 = vadd.f32 %v1680_v30, %v1638_v43  ;;  %v1686_v54 = vpop.f32.mrf.mxu1  ;;  %v7257_v30 = vld [vmem:[#allocation9 + $0x9a4] ss:$28 sps:$4 sm:$0xff]   ;;  %v617_v32 = vsub.s32 3, %v8100_v8 }
 0x21c   :  { %v1641_v45 = vpop.f32.mrf.mxu0 }
 0x21d   :  { %v1642_v47 = vadd.f32 %v1641_v45, %v606_v34  ;;  %v1683_v55 = vadd.f32 %v1682_v33, %v1640_v46  ;;  %v7255_v33 = vld [vmem:[#allocation9 + $0x9a0] ss:$28 sps:$4 sm:$0xff]   ;;  %v7260_v34 = vld [vmem:[#allocation9 + $0x96c] ss:$28 sps:$4 sm:$0xff]   ;;  %v618_v39 = vrot.slane %v8138_v36, %v617_v32 }
 0x21e   :  { %4880 = vmatpush2.bf16.msra.mxu1 %v7210_v38  ;;  %v1643_v49 = vpop.f32.mrf.mxu0 }
 0x21f   :  { %4881 = vmatprep.subr.bf16.mxu1 %v7218_v40  ;;  %v1685_v51 = vadd.f32 %v1684_v44, %v1642_v47  ;;  %v1644_v52 = vadd.f32 %v1643_v49, %v610_v37  ;;  %v614_v37 = vrot.slane %v8138_v36, %v8106_v11  ;;  %v7258_v40 = vld [vmem:[#allocation9 + $0x968] ss:$28 sps:$4 sm:$0xff]   ;;  %v7263_v44 = vld [vmem:[#allocation9 + $0x934] ss:$28 sps:$4 sm:$0xff]  }
 0x221   :  { %v1687_v56 = vadd.f32 %v1686_v54, %v1644_v52  ;;  %v1947_v58 = vpack.c.bf16 %v1685_v51, %v1681_v53  ;;  %v7266_v52 = vld [vmem:[#allocation9 + $0x8fc] ss:$28 sps:$4 sm:$0xff]  }
 0x222   :  { %4882 = vmatpush2.bf16.msra.mxu1 %v7216_v48 }
 0x223   :  { %4883 = vmatprep.subr.bf16.mxu1 %v7224_v50  ;;  %v1948_v60 = vpack.c.bf16 %v1687_v56, %v1683_v55  ;;  %v8148_v2 = vmax.bf16 %v8010_v1, %v1947_v58  ;;  %v7261_v50 = vld [vmem:[#allocation9 + $0x930] ss:$28 sps:$4 sm:$0xff]  }
 0x225   :  { %v8145_v61 = vmax.bf16 %v8010_v1, %v1948_v60 }
 0x226   :  { %4884 = vmatpush2.bf16.msra.mxu1 %v7222_v57 }
 0x227   :  { %4885 = vmatprep.subr.bf16.mxu1 %v7230_v59  ;;  %4848 = vmatprep.mubr.bf16.mxu0 %v8145_v61  ;;  %v7264_v59 = vld [vmem:[#allocation9 + $0x8f8] ss:$28 sps:$4 sm:$0xff]  }
 0x228   :  { %4849 = vmatmul.mubr.bf16.vlgmr.msra.gmra.mxu0 %v8148_v2 }
 0x229   :  { %4903 = vmatpush1.bf16.msra.mxu0 %v7201_v62  ;;  %v7269_v62 = vld [vmem:[#allocation9 + $0x8c4] ss:$28 sps:$4 sm:$0xff]  }
 0x22a   :  { %4886 = vmatpush2.bf16.msra.mxu1 %v7228_v63  ;;  %4904 = vmatprep.subr.bf16.mxu0 %v7209_v3 }
 0x22b   :  { %4887 = vmatprep.subr.bf16.mxu1 %v7236_v4  ;;  %v7267_v4 = vld [vmem:[#allocation9 + $0x8c0] ss:$28 sps:$4 sm:$0xff]  }
 0x22d   :  { %4905 = vmatpush1.bf16.msra.mxu0 %v7207_v41  ;;  %v7270_v41 = vld [vmem:[#allocation9 + $0xc08] ss:$28 sps:$4 sm:$0xff]  }
 0x22e   :  { %4888 = vmatpush2.bf16.msra.mxu1 %v7234_v5  ;;  %4906 = vmatprep.subr.bf16.mxu0 %v7215_v6  ;;  %v7275_v6 = vld [vmem:[#allocation9 + $0xbd4] ss:$28 sps:$4 sm:$0xff]  }
 0x22f   :  { %4889 = vmatprep.subr.bf16.mxu1 %v7242_v7  ;;  %v7278_v7 = vld [vmem:[#allocation9 + $0x194] ss:$28 sps:$4 sm:$0xff]  }
 0x231   :  { %4907 = vmatpush1.bf16.msra.mxu0 %v7213_v10  ;;  %v7273_v10 = vld [vmem:[#allocation9 + $0xbd0] ss:$28 sps:$4 sm:$0xff]  }
 0x232   :  { %4890 = vmatpush2.bf16.msra.mxu1 %v7240_v13  ;;  %4908 = vmatprep.subr.bf16.mxu0 %v7221_v14  ;;  %v7281_v13 = vld [vmem:[#allocation9 + $0xb9c] ss:$28 sps:$4 sm:$0xff]  }
 0x233   :  { %4945 = vmatprep.subr.bf16.mxu1 %v7272_v15  ;;  %v7279_v14 = vld [vmem:[#allocation9 + $0xb98] ss:$28 sps:$4 sm:$0xff]   ;;  %v7287_v15 = vld [vmem:[#allocation9 + $0xb64] ss:$28 sps:$4 sm:$0xff]  }
 0x235   :  { %4909 = vmatpush1.bf16.msra.mxu0 %v7219_v16  ;;  %v7285_v16 = vld [vmem:[#allocation9 + $0xb60] ss:$28 sps:$4 sm:$0xff]  }
 0x236   :  { %4910 = vmatprep.subr.bf16.mxu0 %v7227_v17  ;;  %v7293_v17 = vld [vmem:[#allocation9 + $0xb2c] ss:$28 sps:$4 sm:$0xff]  }
 0x238   :  { %v1766_v31 = vpop.f32.mrf.mxu0 }
 0x239   :  { %4911 = vmatpush1.bf16.msra.mxu0 %v7225_v18  ;;  %v7291_v18 = vld [vmem:[#allocation9 + $0xb28] ss:$28 sps:$4 sm:$0xff]  }
 0x23a   :  { %4912 = vmatprep.subr.bf16.mxu0 %v7233_v19  ;;  %v1768_v35 = vpop.f32.mrf.mxu0  ;;  %v7299_v19 = vld [vmem:[#allocation9 + $0xaf4] ss:$28 sps:$4 sm:$0xff]  }
 0x23c   :  { %v1770_v45 = vpop.f32.mrf.mxu0 }
 0x23d   :  { %4913 = vmatpush1.bf16.msra.mxu0 %v7231_v20 }
 0x23e   :  { %4914 = vmatprep.subr.bf16.mxu0 %v7239_v21  ;;  %v1772_v55 = vpop.f32.mrf.mxu0  ;;  %v621_v21 = vsub.s32 4, %v8100_v8 }
 0x241   :  { %4915 = vmatpush1.bf16.msra.mxu0 %v7237_v22  ;;  %v625_v22 = vsub.s32 5, %v8100_v8 }
 0x242   :  { %4916 = vmatprep.subr.bf16.mxu0 %v7245_v23  ;;  %v7297_v23 = vld [vmem:[#allocation9 + $0xaf0] ss:$28 sps:$4 sm:$0xff]  }
 0x245   :  { %4917 = vmatpush1.bf16.msra.mxu0 %v7243_v42  ;;  %v7305_v42 = vld [vmem:[#allocation9 + $0xabc] ss:$28 sps:$4 sm:$0xff]  }
 0x246   :  { %4918 = vmatprep.subr.bf16.mxu0 %v7248_v24 }
 0x249   :  { %4919 = vmatpush2.bf16.msra.mxu0 %v7246_v25  ;;  %v622_v25 = vrot.slane %v8138_v36, %v621_v21 }
 0x24a   :  { %4920 = vmatprep.subr.bf16.mxu0 %v7251_v26 }
 0x24d   :  { %4921 = vmatpush2.bf16.msra.mxu0 %v7249_v27  ;;  %v626_v27 = vrot.slane %v8138_v36, %v625_v22 }
 0x24e   :  { %4922 = vmatprep.subr.bf16.mxu0 %v7254_v28  ;;  %v7303_v28 = vld [vmem:[#allocation9 + $0xab8] ss:$28 sps:$4 sm:$0xff]  }
 0x251   :  { %4923 = vmatpush2.bf16.msra.mxu0 %v7252_v29 }
 0x252   :  { %4924 = vmatprep.subr.bf16.mxu0 %v7257_v30  ;;  %v7311_v30 = vld [vmem:[#allocation9 + $0xa84] ss:$28 sps:$4 sm:$0xff]  }
 0x255   :  { %v1723_v38 = vpop.f32.mrf.mxu1  ;;  %4925 = vmatpush2.bf16.msra.mxu0 %v7255_v33 }
 0x256   :  { %4926 = vmatprep.subr.bf16.mxu0 %v7260_v34  ;;  %v1724_v46 = vadd.f32 %v1723_v38, %v614_v37  ;;  %v7309_v38 = vld [vmem:[#allocation9 + $0xa80] ss:$28 sps:$4 sm:$0xff]  }
 0x257   :  { %v1725_v43 = vpop.f32.mrf.mxu1 }
 0x258   :  { %v1726_v48 = vadd.f32 %v1725_v43, %v618_v39  ;;  %v1767_v56 = vadd.f32 %v1766_v31, %v1724_v46 }
 0x259   :  { %v1727_v47 = vpop.f32.mrf.mxu1  ;;  %4927 = vmatpush2.bf16.msra.mxu0 %v7258_v40  ;;  %v7317_v40 = vld [vmem:[#allocation9 + $0xdcc] ss:$28 sps:$4 sm:$0xff]  }
 0x25a   :  { %v1728_v49 = vadd.f32 %v1727_v47, %v614_v37  ;;  %4928 = vmatprep.subr.bf16.mxu0 %v7263_v44  ;;  %v1769_v57 = vadd.f32 %v1768_v35, %v1726_v48 }
 0x25b   :  { %v1729_v51 = vpop.f32.mrf.mxu1 }
 0x25c   :  { %v1771_v53 = vadd.f32 %v1770_v45, %v1728_v49  ;;  %v1730_v54 = vadd.f32 %v1729_v51, %v618_v39  ;;  %v7315_v49 = vld [vmem:[#allocation9 + $0xdc8] ss:$28 sps:$4 sm:$0xff]   ;;  %v7323_v51 = vld [vmem:[#allocation9 + $0xd94] ss:$28 sps:$4 sm:$0xff]  }
 0x25d   :  { %4929 = vmatpush2.bf16.msra.mxu0 %v7261_v50 }
 0x25e   :  { %v1773_v58 = vadd.f32 %v1772_v55, %v1730_v54  ;;  %v1949_v60 = vpack.c.bf16 %v1771_v53, %v1767_v56  ;;  %4930 = vmatprep.subr.bf16.mxu0 %v7266_v52  ;;  %v7276_v54 = vld [vmem:[#allocation9 + $0x190] ss:$28 sps:$4 sm:$0xff]   ;;  %v7284_v56 = vld [vmem:[#allocation9 + $0x15c] ss:$28 sps:$4 sm:$0xff]  }
 0x260   :  { %v1950_v63 = vpack.c.bf16 %v1773_v58, %v1769_v57  ;;  %v8162_v5 = vmax.bf16 %v8010_v1, %v1949_v60  ;;  %v7321_v57 = vld [vmem:[#allocation9 + $0xd90] ss:$28 sps:$4 sm:$0xff]   ;;  %v7329_v58 = vld [vmem:[#allocation9 + $0xd5c] ss:$28 sps:$4 sm:$0xff]   ;;  %v7290_v60 = vld [vmem:[#allocation9 + $0x124] ss:$28 sps:$4 sm:$0xff]  }
 0x261   :  { %4931 = vmatpush2.bf16.msra.mxu0 %v7264_v59  ;;  %v7282_v59 = vld [vmem:[#allocation9 + $0x158] ss:$28 sps:$4 sm:$0xff]  }
 0x262   :  { %v8159_v3 = vmax.bf16 %v8010_v1, %v1950_v63  ;;  %4932 = vmatprep.subr.bf16.mxu0 %v7269_v62  ;;  %v7327_v62 = vld [vmem:[#allocation9 + $0xd58] ss:$28 sps:$4 sm:$0xff]   ;;  %v7335_v63 = vld [vmem:[#allocation9 + $0xd24] ss:$28 sps:$4 sm:$0xff]  }
 0x264   :  { %4891 = vmatprep.mubr.bf16.mxu1 %v8159_v3 }
 0x265   :  { %4892 = vmatmul.mubr.bf16.vlgmr.msra.gmra.mxu1 %v8162_v5  ;;  %4933 = vmatpush2.bf16.msra.mxu0 %v7267_v4  ;;  %v7288_v4 = vld [vmem:[#allocation9 + $0x120] ss:$28 sps:$4 sm:$0xff]  }
 0x266   :  { %4946 = vmatpush1.bf16.msra.mxu1 %v7270_v41  ;;  %4988 = vmatprep.subr.bf16.mxu0 %v7278_v7  ;;  %v7296_v41 = vld [vmem:[#allocation9 + $0xec] ss:$28 sps:$4 sm:$0xff]  }
 0x267   :  { %4947 = vmatprep.subr.bf16.mxu1 %v7275_v6  ;;  %v7333_v6 = vld [vmem:[#allocation9 + $0xd20] ss:$28 sps:$4 sm:$0xff]   ;;  %v7341_v7 = vld [vmem:[#allocation9 + $0xcec] ss:$28 sps:$4 sm:$0xff]  }
 0x26a   :  { %4948 = vmatpush1.bf16.msra.mxu1 %v7273_v10  ;;  %v7294_v10 = vld [vmem:[#allocation9 + $0xe8] ss:$28 sps:$4 sm:$0xff]  }
 0x26b   :  { %4949 = vmatprep.subr.bf16.mxu1 %v7281_v13  ;;  %v7302_v13 = vld [vmem:[#allocation9 + $0xb4] ss:$28 sps:$4 sm:$0xff]  }
 0x26e   :  { %4950 = vmatpush1.bf16.msra.mxu1 %v7279_v14  ;;  %v7339_v14 = vld [vmem:[#allocation9 + $0xce8] ss:$28 sps:$4 sm:$0xff]  }
 0x26f   :  { %4951 = vmatprep.subr.bf16.mxu1 %v7287_v15  ;;  %v7347_v15 = vld [vmem:[#allocation9 + $0xcb4] ss:$28 sps:$4 sm:$0xff]  }
 0x272   :  { %4952 = vmatpush1.bf16.msra.mxu1 %v7285_v16  ;;  %v7300_v16 = vld [vmem:[#allocation9 + $0xb0] ss:$28 sps:$4 sm:$0xff]  }
 0x273   :  { %4953 = vmatprep.subr.bf16.mxu1 %v7293_v17  ;;  %v7308_v17 = vld [vmem:[#allocation9 + $0x7c] ss:$28 sps:$4 sm:$0xff]  }
 0x275   :  { %v1852_v20 = vpop.f32.mrf.mxu1 }
 0x276   :  { %4954 = vmatpush1.bf16.msra.mxu1 %v7291_v18  ;;  %v7345_v18 = vld [vmem:[#allocation9 + $0xcb0] ss:$28 sps:$4 sm:$0xff]  }
 0x277   :  { %4955 = vmatprep.subr.bf16.mxu1 %v7299_v19  ;;  %v1854_v24 = vpop.f32.mrf.mxu1  ;;  %v7353_v19 = vld [vmem:[#allocation9 + $0xc7c] ss:$28 sps:$4 sm:$0xff]  }
 0x278   :  { %v1809_v26 = vpop.f32.mrf.mxu0 }
 0x279   :  { %v1810_v31 = vadd.f32 %v1809_v26, %v622_v25  ;;  %v1856_v33 = vpop.f32.mrf.mxu1  ;;  %v7320_v26 = vld [vmem:[#allocation9 + $0xc] ss:$28 sps:$4 sm:$0xff]  }
 0x27a   :  { %4956 = vmatpush1.bf16.msra.mxu1 %v7297_v23  ;;  %v1811_v29 = vpop.f32.mrf.mxu0  ;;  %v7314_v23 = vld [vmem:[#allocation9 + $0x44] ss:$28 sps:$4 sm:$0xff]  }
 0x27b   :  { %4957 = vmatprep.subr.bf16.mxu1 %v7305_v42  ;;  %v1812_v35 = vadd.f32 %v1811_v29, %v626_v27  ;;  %v1853_v45 = vadd.f32 %v1852_v20, %v1810_v31  ;;  %v1858_v46 = vpop.f32.mrf.mxu1  ;;  %v7306_v20 = vld [vmem:[#allocation9 + $0x78] ss:$28 sps:$4 sm:$0xff]   ;;  %v7318_v29 = vld [vmem:[#allocation9 + $0x8] ss:$28 sps:$4 sm:$0xff]   ;;  %v7324_v31 = vld [vmem:[#allocation9 + $0x350] ss:$28 sps:$4 sm:$0xff]  }
 0x27c   :  { %v1813_v34 = vpop.f32.mrf.mxu0  ;;  %v7351_v42 = vld [vmem:[#allocation9 + $0xc78] ss:$28 sps:$4 sm:$0xff]  }
 0x27d   :  { %v1814_v37 = vadd.f32 %v1813_v34, %v622_v25  ;;  %v1855_v47 = vadd.f32 %v1854_v24, %v1812_v35  ;;  %v7359_v24 = vld [vmem:[#allocation9 + $0xc44] ss:$28 sps:$4 sm:$0xff]   ;;  %v7330_v34 = vld [vmem:[#allocation9 + $0x318] ss:$28 sps:$4 sm:$0xff]  }
 0x27e   :  { %4958 = vmatpush1.bf16.msra.mxu1 %v7303_v28  ;;  %v1815_v39 = vpop.f32.mrf.mxu0  ;;  %v7312_v25 = vld [vmem:[#allocation9 + $0x40] ss:$28 sps:$4 sm:$0xff]   ;;  %v7368_v28 = vld [vmem:[#allocation9 + $0x514] ss:$28 sps:$4 sm:$0xff]  }
 0x27f   :  { %4959 = vmatprep.subr.bf16.mxu1 %v7311_v30  ;;  %v1857_v43 = vadd.f32 %v1856_v33, %v1814_v37  ;;  %v1816_v44 = vadd.f32 %v1815_v39, %v626_v27  ;;  %v7357_v27 = vld [vmem:[#allocation9 + $0xc40] ss:$28 sps:$4 sm:$0xff]   ;;  %v7326_v30 = vld [vmem:[#allocation9 + $0x354] ss:$28 sps:$4 sm:$0xff]  }
 0x280   :  { %v7332_v33 = vld [vmem:[#allocation9 + $0x31c] ss:$28 sps:$4 sm:$0xff]   ;;  %v7338_v35 = vld [vmem:[#allocation9 + $0x2e4] ss:$28 sps:$4 sm:$0xff]  }
 0x281   :  { %v1859_v48 = vadd.f32 %v1858_v46, %v1816_v44  ;;  %v1951_v50 = vpack.c.bf16 %v1857_v43, %v1853_v45  ;;  %v7336_v37 = vld [vmem:[#allocation9 + $0x2e0] ss:$28 sps:$4 sm:$0xff]   ;;  %v7342_v43 = vld [vmem:[#allocation9 + $0x2a8] ss:$28 sps:$4 sm:$0xff]   ;;  %v633_v44 = vsub.s32 7, %v8100_v8 }
 0x282   :  { %4960 = vmatpush1.bf16.msra.mxu1 %v7309_v38  ;;  %v7344_v38 = vld [vmem:[#allocation9 + $0x2ac] ss:$28 sps:$4 sm:$0xff]   ;;  %v7350_v45 = vld [vmem:[#allocation9 + $0x274] ss:$28 sps:$4 sm:$0xff]  }
 0x283   :  { %4961 = vmatprep.subr.bf16.mxu1 %v7317_v40  ;;  %v1952_v52 = vpack.c.bf16 %v1859_v48, %v1855_v47  ;;  %v8178_v55 = vmax.bf16 %v8010_v1, %v1951_v50  ;;  %v629_v40 = vsub.s32 6, %v8100_v8  ;;  %v7348_v50 = vld [vmem:[#allocation9 + $0x270] ss:$28 sps:$4 sm:$0xff]  }
 0x285   :  { %v8175_v53 = vmax.bf16 %v8010_v1, %v1952_v52  ;;  %v630_v47 = vrot.slane %v8138_v36, %v629_v40  ;;  %v7356_v52 = vld [vmem:[#allocation9 + $0x23c] ss:$28 sps:$4 sm:$0xff]  }
 0x286   :  { %4962 = vmatpush2.bf16.msra.mxu1 %v7315_v49  ;;  %v634_v49 = vrot.slane %v8138_v36, %v633_v44  ;;  %v7398_v44 = vld [vmem:[#allocation9 + $0x7b4] ss:$28 sps:$4 sm:$0xff]  }
 0x287   :  { %4963 = vmatprep.subr.bf16.mxu1 %v7323_v51  ;;  %4934 = vmatprep.mubr.bf16.mxu0 %v8175_v53 }
 0x288   :  { %4935 = vmatmul.mubr.bf16.vlgmr.msra.gmra.mxu0 %v8178_v55 }
 0x289   :  { %4989 = vmatpush1.bf16.msra.mxu0 %v7276_v54  ;;  %5020 = vmatprep.mubr.bf16.mxu0 %v8145_v61 }
 0x28a   :  { %4990 = vmatprep.subr.bf16.mxu0 %v7284_v56  ;;  %4964 = vmatpush2.bf16.msra.mxu1 %v7321_v57 }
 0x28b   :  { %4965 = vmatprep.subr.bf16.mxu1 %v7329_v58 }
 0x28d   :  { %4991 = vmatpush1.bf16.msra.mxu0 %v7282_v59 }
 0x28e   :  { %4992 = vmatprep.subr.bf16.mxu0 %v7290_v60  ;;  %4966 = vmatpush2.bf16.msra.mxu1 %v7327_v62  ;;  %v7354_v60 = vld [vmem:[#allocation9 + $0x238] ss:$28 sps:$4 sm:$0xff]  }
 0x28f   :  { %4967 = vmatprep.subr.bf16.mxu1 %v7335_v63  ;;  %v7362_v63 = vld [vmem:[#allocation9 + $0x204] ss:$28 sps:$4 sm:$0xff]  }
 0x291   :  { %4993 = vmatpush1.bf16.msra.mxu0 %v7288_v4 }
 0x292   :  { %4994 = vmatprep.subr.bf16.mxu0 %v7296_v41  ;;  %4968 = vmatpush2.bf16.msra.mxu1 %v7333_v6 }
 0x293   :  { %4969 = vmatprep.subr.bf16.mxu1 %v7341_v7 }
 0x295   :  { %4995 = vmatpush1.bf16.msra.mxu0 %v7294_v10 }
 0x296   :  { %4996 = vmatprep.subr.bf16.mxu0 %v7302_v13  ;;  %4970 = vmatpush2.bf16.msra.mxu1 %v7339_v14  ;;  %v7360_v13 = vld [vmem:[#allocation9 + $0x200] ss:$28 sps:$4 sm:$0xff]  }
 0x297   :  { %4971 = vmatprep.subr.bf16.mxu1 %v7347_v15  ;;  %v7365_v15 = vld [vmem:[#allocation9 + $0x1cc] ss:$28 sps:$4 sm:$0xff]  }
 0x298   :  { %v1938_v39 = vpop.f32.mrf.mxu0 }
 0x299   :  { %4997 = vmatpush1.bf16.msra.mxu0 %v7300_v16 }
 0x29a   :  { %4998 = vmatprep.subr.bf16.mxu0 %v7308_v17  ;;  %4972 = vmatpush2.bf16.msra.mxu1 %v7345_v18  ;;  %v1940_v46 = vpop.f32.mrf.mxu0  ;;  %v7363_v18 = vld [vmem:[#allocation9 + $0x1c8] ss:$28 sps:$4 sm:$0xff]  }
 0x29b   :  { %4973 = vmatprep.subr.bf16.mxu1 %v7353_v19  ;;  %v7366_v19 = vld [vmem:[#allocation9 + $0x510] ss:$28 sps:$4 sm:$0xff]  }
 0x29c   :  { %v1942_v54 = vpop.f32.mrf.mxu0 }
 0x29d   :  { %4999 = vmatpush1.bf16.msra.mxu0 %v7306_v20 }
 0x29e   :  { %5000 = vmatprep.subr.bf16.mxu0 %v7314_v23  ;;  %4974 = vmatpush2.bf16.msra.mxu1 %v7351_v42  ;;  %v1944_v6 = vpop.f32.mrf.mxu0  ;;  %v7371_v23 = vld [vmem:[#allocation9 + $0x4dc] ss:$28 sps:$4 sm:$0xff]   ;;  %v7374_v42 = vld [vmem:[#allocation9 + $0x894] ss:$28 sps:$4 sm:$0xff]  }
 0x29f   :  { %4975 = vmatprep.subr.bf16.mxu1 %v7359_v24  ;;  %v7369_v24 = vld [vmem:[#allocation9 + $0x4d8] ss:$28 sps:$4 sm:$0xff]  }
 0x2a1   :  { %5001 = vmatpush1.bf16.msra.mxu0 %v7312_v25  ;;  %v7372_v25 = vld [vmem:[#allocation9 + $0x890] ss:$28 sps:$4 sm:$0xff]  }
 0x2a2   :  { %5002 = vmatprep.subr.bf16.mxu0 %v7320_v26  ;;  %4976 = vmatpush2.bf16.msra.mxu1 %v7357_v27  ;;  %v7377_v26 = vld [vmem:[#allocation9 + $0x4a4] ss:$28 sps:$4 sm:$0xff]   ;;  %v7380_v27 = vld [vmem:[#allocation9 + $0x85c] ss:$28 sps:$4 sm:$0xff]  }
 0x2a3   :  { %5031 = vmatprep.subr.bf16.mxu1 %v7368_v28  ;;  %v7375_v28 = vld [vmem:[#allocation9 + $0x4a0] ss:$28 sps:$4 sm:$0xff]  }
 0x2a5   :  { %5003 = vmatpush1.bf16.msra.mxu0 %v7318_v29  ;;  %v7378_v29 = vld [vmem:[#allocation9 + $0x858] ss:$28 sps:$4 sm:$0xff]  }
 0x2a6   :  { %5004 = vmatprep.subr.bf16.mxu0 %v7326_v30  ;;  %v7383_v30 = vld [vmem:[#allocation9 + $0x46c] ss:$28 sps:$4 sm:$0xff]  }
 0x2a9   :  { %5005 = vmatpush2.bf16.msra.mxu0 %v7324_v31  ;;  %v7386_v31 = vld [vmem:[#allocation9 + $0x824] ss:$28 sps:$4 sm:$0xff]  }
 0x2aa   :  { %5006 = vmatprep.subr.bf16.mxu0 %v7332_v33  ;;  %v7381_v33 = vld [vmem:[#allocation9 + $0x468] ss:$28 sps:$4 sm:$0xff]  }
 0x2ad   :  { %5007 = vmatpush2.bf16.msra.mxu0 %v7330_v34  ;;  %v7384_v34 = vld [vmem:[#allocation9 + $0x820] ss:$28 sps:$4 sm:$0xff]  }
 0x2ae   :  { %5008 = vmatprep.subr.bf16.mxu0 %v7338_v35  ;;  %v7389_v35 = vld [vmem:[#allocation9 + $0x434] ss:$28 sps:$4 sm:$0xff]  }
 0x2b1   :  { %5009 = vmatpush2.bf16.msra.mxu0 %v7336_v37  ;;  %v7392_v37 = vld [vmem:[#allocation9 + $0x7ec] ss:$28 sps:$4 sm:$0xff]  }
 0x2b2   :  { %5010 = vmatprep.subr.bf16.mxu0 %v7344_v38  ;;  %v7387_v38 = vld [vmem:[#allocation9 + $0x430] ss:$28 sps:$4 sm:$0xff]  }
 0x2b5   :  { %v1895_v48 = vpop.f32.mrf.mxu1  ;;  %5011 = vmatpush2.bf16.msra.mxu0 %v7342_v43  ;;  %v7395_v43 = vld [vmem:[#allocation9 + $0x3fc] ss:$28 sps:$4 sm:$0xff]  }
 0x2b6   :  { %5012 = vmatprep.subr.bf16.mxu0 %v7350_v45  ;;  %v1896_v56 = vadd.f32 %v1895_v48, %v630_v47  ;;  %v7393_v45 = vld [vmem:[#allocation9 + $0x3f8] ss:$28 sps:$4 sm:$0xff]  }
 0x2b7   :  { %v1897_v51 = vpop.f32.mrf.mxu1  ;;  %v7404_v48 = vld [vmem:[#allocation9 + $0x77c] ss:$28 sps:$4 sm:$0xff]  }
 0x2b8   :  { %v1898_v58 = vadd.f32 %v1897_v51, %v634_v49  ;;  %v1939_v7 = vadd.f32 %v1938_v39, %v1896_v56  ;;  %v7390_v39 = vld [vmem:[#allocation9 + $0x7e8] ss:$28 sps:$4 sm:$0xff]   ;;  %v7408_v56 = vld [vmem:[#allocation9 + $0x740] ss:$28 sps:$4 sm:$0xff]  }
 0x2b9   :  { %v1899_v57 = vpop.f32.mrf.mxu1  ;;  %5013 = vmatpush2.bf16.msra.mxu0 %v7348_v50  ;;  %v7402_v50 = vld [vmem:[#allocation9 + $0x778] ss:$28 sps:$4 sm:$0xff]   ;;  %v7407_v51 = vld [vmem:[#allocation9 + $0x38c] ss:$28 sps:$4 sm:$0xff]  }
 0x2ba   :  { %v1900_v59 = vadd.f32 %v1899_v57, %v630_v47  ;;  %5014 = vmatprep.subr.bf16.mxu0 %v7356_v52  ;;  %v1941_v10 = vadd.f32 %v1940_v46, %v1898_v58  ;;  %v7396_v46 = vld [vmem:[#allocation9 + $0x7b0] ss:$28 sps:$4 sm:$0xff]   ;;  %v7401_v47 = vld [vmem:[#allocation9 + $0x3c4] ss:$28 sps:$4 sm:$0xff]  }
 0x2bb   :  { %v1901_v62 = vpop.f32.mrf.mxu1  ;;  %v7410_v52 = vld [vmem:[#allocation9 + $0x744] ss:$28 sps:$4 sm:$0xff]   ;;  %v7413_v57 = vld [vmem:[#allocation9 + $0x6d4] ss:$28 sps:$4 sm:$0xff]   ;;  %v7416_v58 = vld [vmem:[#allocation9 + $0x70c] ss:$28 sps:$4 sm:$0xff]  }
 0x2bc   :  { %v1943_v4 = vadd.f32 %v1942_v54, %v1900_v59  ;;  %v1902_v41 = vadd.f32 %v1901_v62, %v634_v49  ;;  %v7399_v49 = vld [vmem:[#allocation9 + $0x3c0] ss:$28 sps:$4 sm:$0xff]   ;;  %v7405_v54 = vld [vmem:[#allocation9 + $0x388] ss:$28 sps:$4 sm:$0xff]   ;;  %v7411_v59 = vld [vmem:[#allocation9 + $0x6d0] ss:$28 sps:$4 sm:$0xff]  }
 0x2bd   :  { %5015 = vmatpush2.bf16.msra.mxu0 %v7354_v60  ;;  %v7414_v60 = vld [vmem:[#allocation9 + $0x708] ss:$28 sps:$4 sm:$0xff]   ;;  %v7419_v62 = vld [vmem:[#allocation9 + $0x69c] ss:$28 sps:$4 sm:$0xff]  }
 0x2be   :  { %v1945_v36 = vadd.f32 %v1944_v6, %v1902_v41  ;;  %v1953_v14 = vpack.c.bf16 %v1943_v4, %v1939_v7  ;;  %5016 = vmatprep.subr.bf16.mxu0 %v7362_v63  ;;  %v7422_v63 = vld [vmem:[#allocation9 + $0xa54] ss:$28 sps:$4 sm:$0xff]   ;;  %v7425_v6 = vld [vmem:[#allocation9 + $0x664] ss:$28 sps:$4 sm:$0xff]   ;;  %v7428_v7 = vld [vmem:[#allocation9 + $0xa1c] ss:$28 sps:$4 sm:$0xff]  }
 0x2bf   :  { %v7417_v4 = vld [vmem:[#allocation9 + $0x698] ss:$28 sps:$4 sm:$0xff]   ;;  %v7420_v41 = vld [vmem:[#allocation9 + $0xa50] ss:$28 sps:$4 sm:$0xff]  }
 0x2c0   :  { %v1954_v16 = vpack.c.bf16 %v1945_v36, %v1941_v10  ;;  %v8193_v20 = vmax.bf16 %v8010_v1, %v1953_v14  ;;  %v7423_v10 = vld [vmem:[#allocation9 + $0x660] ss:$28 sps:$4 sm:$0xff]   ;;  %v7426_v36 = vld [vmem:[#allocation9 + $0xa18] ss:$28 sps:$4 sm:$0xff]  }
 0x2c1   :  { %5017 = vmatpush2.bf16.msra.mxu0 %v7360_v13  ;;  %v7431_v13 = vld [vmem:[#allocation9 + $0x62c] ss:$28 sps:$4 sm:$0xff]   ;;  %v7434_v14 = vld [vmem:[#allocation9 + $0x9e4] ss:$28 sps:$4 sm:$0xff]  }
 0x2c2   :  { %v8190_v17 = vmax.bf16 %v8010_v1, %v1954_v16  ;;  %5018 = vmatprep.subr.bf16.mxu0 %v7365_v15  ;;  %v7429_v15 = vld [vmem:[#allocation9 + $0x628] ss:$28 sps:$4 sm:$0xff]   ;;  %v7432_v16 = vld [vmem:[#allocation9 + $0x9e0] ss:$28 sps:$4 sm:$0xff]  }
 0x2c4   :  { %4977 = vmatprep.mubr.bf16.mxu1 %v8190_v17 }
 0x2c5   :  { %4978 = vmatmul.mubr.bf16.vlgmr.msra.gmra.mxu1 %v8193_v20  ;;  %5019 = vmatpush2.bf16.msra.mxu0 %v7363_v18  ;;  %v7437_v18 = vld [vmem:[#allocation9 + $0x5f4] ss:$28 sps:$4 sm:$0xff]  }
 0x2c6   :  { %5032 = vmatpush1.bf16.msra.mxu1 %v7366_v19  ;;  %5063 = vmatprep.mubr.bf16.mxu1 %v8159_v3  ;;  %v7440_v19 = vld [vmem:[#allocation9 + $0x9ac] ss:$28 sps:$4 sm:$0xff]  }
 0x2c7   :  { %5033 = vmatprep.subr.bf16.mxu1 %v7371_v23  ;;  %5074 = vmatprep.subr.bf16.mxu0 %v7374_v42  ;;  %v7435_v23 = vld [vmem:[#allocation9 + $0x5f0] ss:$28 sps:$4 sm:$0xff]   ;;  %v7438_v42 = vld [vmem:[#allocation9 + $0x9a8] ss:$28 sps:$4 sm:$0xff]  }
 0x2c8   :  { %5021 = vmatmul.mubr.bf16.vlgmr.msra.gmra.mxu0 %v8148_v2 }
 0x2c9   :  { %5075 = vmatpush1.bf16.msra.mxu0 %v7372_v25  ;;  %5106 = vmatprep.mubr.bf16.mxu0 %v8175_v53  ;;  %v7446_v25 = vld [vmem:[#allocation9 + $0x974] ss:$28 sps:$4 sm:$0xff]  }
 0x2ca   :  { %5034 = vmatpush1.bf16.msra.mxu1 %v7369_v24  ;;  %5076 = vmatprep.subr.bf16.mxu0 %v7380_v27  ;;  %v7443_v24 = vld [vmem:[#allocation9 + $0x5bc] ss:$28 sps:$4 sm:$0xff]   ;;  %v7444_v27 = vld [vmem:[#allocation9 + $0x970] ss:$28 sps:$4 sm:$0xff]  }
 0x2cb   :  { %5035 = vmatprep.subr.bf16.mxu1 %v7377_v26  ;;  %v7441_v26 = vld [vmem:[#allocation9 + $0x5b8] ss:$28 sps:$4 sm:$0xff]  }
 0x2cd   :  { %5077 = vmatpush1.bf16.msra.mxu0 %v7378_v29  ;;  %v7452_v29 = vld [vmem:[#allocation9 + $0x93c] ss:$28 sps:$4 sm:$0xff]  }
 0x2ce   :  { %5036 = vmatpush1.bf16.msra.mxu1 %v7375_v28  ;;  %5078 = vmatprep.subr.bf16.mxu0 %v7386_v31  ;;  %v7449_v28 = vld [vmem:[#allocation9 + $0x584] ss:$28 sps:$4 sm:$0xff]   ;;  %v7450_v31 = vld [vmem:[#allocation9 + $0x938] ss:$28 sps:$4 sm:$0xff]  }
 0x2cf   :  { %5037 = vmatprep.subr.bf16.mxu1 %v7383_v30  ;;  %v7447_v30 = vld [vmem:[#allocation9 + $0x580] ss:$28 sps:$4 sm:$0xff]  }
 0x2d1   :  { %5079 = vmatpush1.bf16.msra.mxu0 %v7384_v34  ;;  %v7458_v34 = vld [vmem:[#allocation9 + $0x904] ss:$28 sps:$4 sm:$0xff]  }
 0x2d2   :  { %5038 = vmatpush1.bf16.msra.mxu1 %v7381_v33  ;;  %5080 = vmatprep.subr.bf16.mxu0 %v7392_v37  ;;  %v7455_v33 = vld [vmem:[#allocation9 + $0x54c] ss:$28 sps:$4 sm:$0xff]   ;;  %v7456_v37 = vld [vmem:[#allocation9 + $0x900] ss:$28 sps:$4 sm:$0xff]  }
 0x2d3   :  { %5039 = vmatprep.subr.bf16.mxu1 %v7389_v35  ;;  %v7453_v35 = vld [vmem:[#allocation9 + $0x548] ss:$28 sps:$4 sm:$0xff]  }
 0x2d5   :  { %5081 = vmatpush1.bf16.msra.mxu0 %v7390_v39  ;;  %v7464_v39 = vld [vmem:[#allocation9 + $0xc14] ss:$28 sps:$4 sm:$0xff]  }
 0x2d6   :  { %5040 = vmatpush1.bf16.msra.mxu1 %v7387_v38  ;;  %5082 = vmatprep.subr.bf16.mxu0 %v7398_v44  ;;  %v7461_v38 = vld [vmem:[#allocation9 + $0x8cc] ss:$28 sps:$4 sm:$0xff]  }
 0x2d7   :  { %5041 = vmatprep.subr.bf16.mxu1 %v7395_v43  ;;  %v7459_v43 = vld [vmem:[#allocation9 + $0x8c8] ss:$28 sps:$4 sm:$0xff]   ;;  %v7462_v44 = vld [vmem:[#allocation9 + $0xc10] ss:$28 sps:$4 sm:$0xff]  }
 0x2d9   :  { %5083 = vmatpush1.bf16.msra.mxu0 %v7396_v46  ;;  %v7470_v46 = vld [vmem:[#allocation9 + $0x19c] ss:$28 sps:$4 sm:$0xff]  }
 0x2da   :  { %5042 = vmatpush1.bf16.msra.mxu1 %v7393_v45  ;;  %5084 = vmatprep.subr.bf16.mxu0 %v7404_v48  ;;  %v7467_v45 = vld [vmem:[#allocation9 + $0xbdc] ss:$28 sps:$4 sm:$0xff]  }
 0x2db   :  { %5043 = vmatprep.subr.bf16.mxu1 %v7401_v47  ;;  %v7465_v47 = vld [vmem:[#allocation9 + $0xbd8] ss:$28 sps:$4 sm:$0xff]  }
 0x2dc   :  { %v7468_v48 = vld [vmem:[#allocation9 + $0x198] ss:$28 sps:$4 sm:$0xff]  }
 0x2dd   :  { %5085 = vmatpush1.bf16.msra.mxu0 %v7402_v50  ;;  %v7476_v50 = vld [vmem:[#allocation9 + $0x164] ss:$28 sps:$4 sm:$0xff]  }
 0x2de   :  { %5044 = vmatpush1.bf16.msra.mxu1 %v7399_v49  ;;  %5086 = vmatprep.subr.bf16.mxu0 %v7410_v52  ;;  %v7473_v49 = vld [vmem:[#allocation9 + $0xba4] ss:$28 sps:$4 sm:$0xff]  }
 0x2df   :  { %5045 = vmatprep.subr.bf16.mxu1 %v7407_v51  ;;  %v7471_v51 = vld [vmem:[#allocation9 + $0xba0] ss:$28 sps:$4 sm:$0xff]  }
 0x2e0   :  { %v7474_v52 = vld [vmem:[#allocation9 + $0x160] ss:$28 sps:$4 sm:$0xff]  }
 0x2e1   :  { %5087 = vmatpush1.bf16.msra.mxu0 %v7408_v56  ;;  %v7482_v56 = vld [vmem:[#allocation9 + $0x12c] ss:$28 sps:$4 sm:$0xff]  }
 0x2e2   :  { %5046 = vmatpush1.bf16.msra.mxu1 %v7405_v54  ;;  %5088 = vmatprep.subr.bf16.mxu0 %v7416_v58  ;;  %v7479_v54 = vld [vmem:[#allocation9 + $0xb6c] ss:$28 sps:$4 sm:$0xff]  }
 0x2e3   :  { %5047 = vmatprep.subr.bf16.mxu1 %v7413_v57  ;;  %v7477_v57 = vld [vmem:[#allocation9 + $0xb68] ss:$28 sps:$4 sm:$0xff]  }
 0x2e4   :  { %v7480_v58 = vld [vmem:[#allocation9 + $0x128] ss:$28 sps:$4 sm:$0xff]  }
 0x2e5   :  { %5089 = vmatpush1.bf16.msra.mxu0 %v7414_v60  ;;  %v7488_v60 = vld [vmem:[#allocation9 + $0xf4] ss:$28 sps:$4 sm:$0xff]  }
 0x2e6   :  { %5048 = vmatpush2.bf16.msra.mxu1 %v7411_v59  ;;  %5090 = vmatprep.subr.bf16.mxu0 %v7422_v63  ;;  %v7485_v59 = vld [vmem:[#allocation9 + $0xb34] ss:$28 sps:$4 sm:$0xff]  }
 0x2e7   :  { %5049 = vmatprep.subr.bf16.mxu1 %v7419_v62  ;;  %v7483_v62 = vld [vmem:[#allocation9 + $0xb30] ss:$28 sps:$4 sm:$0xff]  }
 0x2e8   :  { %v7486_v63 = vld [vmem:[#allocation9 + $0xf0] ss:$28 sps:$4 sm:$0xff]  }
 0x2e9   :  { %5091 = vmatpush2.bf16.msra.mxu0 %v7420_v41  ;;  %v7494_v41 = vld [vmem:[#allocation9 + $0xbc] ss:$28 sps:$4 sm:$0xff]  }
 0x2ea   :  { %5050 = vmatpush2.bf16.msra.mxu1 %v7417_v4  ;;  %5092 = vmatprep.subr.bf16.mxu0 %v7428_v7  ;;  %v7491_v4 = vld [vmem:[#allocation9 + $0xafc] ss:$28 sps:$4 sm:$0xff]  }
 0x2eb   :  { %5051 = vmatprep.subr.bf16.mxu1 %v7425_v6  ;;  %v7489_v6 = vld [vmem:[#allocation9 + $0xaf8] ss:$28 sps:$4 sm:$0xff]  }
 0x2ec   :  { %v7492_v7 = vld [vmem:[#allocation9 + $0xb8] ss:$28 sps:$4 sm:$0xff]  }
 0x2ed   :  { %5093 = vmatpush2.bf16.msra.mxu0 %v7426_v36  ;;  %v7500_v36 = vld [vmem:[#allocation9 + $0x84] ss:$28 sps:$4 sm:$0xff]  }
 0x2ee   :  { %5052 = vmatpush2.bf16.msra.mxu1 %v7423_v10  ;;  %5094 = vmatprep.subr.bf16.mxu0 %v7434_v14  ;;  %v7497_v10 = vld [vmem:[#allocation9 + $0xac4] ss:$28 sps:$4 sm:$0xff]  }
 0x2ef   :  { %5053 = vmatprep.subr.bf16.mxu1 %v7431_v13  ;;  %v7495_v13 = vld [vmem:[#allocation9 + $0xac0] ss:$28 sps:$4 sm:$0xff]  }
 0x2f0   :  { %v7498_v14 = vld [vmem:[#allocation9 + $0x80] ss:$28 sps:$4 sm:$0xff]  }
 0x2f1   :  { %5095 = vmatpush2.bf16.msra.mxu0 %v7432_v16  ;;  %v7506_v16 = vld [vmem:[#allocation9 + $0x4c] ss:$28 sps:$4 sm:$0xff]  }
 0x2f2   :  { %5054 = vmatpush2.bf16.msra.mxu1 %v7429_v15  ;;  %5096 = vmatprep.subr.bf16.mxu0 %v7440_v19  ;;  %v7503_v15 = vld [vmem:[#allocation9 + $0xa8c] ss:$28 sps:$4 sm:$0xff]  }
 0x2f3   :  { %5055 = vmatprep.subr.bf16.mxu1 %v7437_v18  ;;  %v7501_v18 = vld [vmem:[#allocation9 + $0xa88] ss:$28 sps:$4 sm:$0xff]  }
 0x2f4   :  { %v7504_v19 = vld [vmem:[#allocation9 + $0x48] ss:$28 sps:$4 sm:$0xff]  }
 0x2f5   :  { %5097 = vmatpush2.bf16.msra.mxu0 %v7438_v42  ;;  %v7512_v42 = vld [vmem:[#allocation9 + $0x14] ss:$28 sps:$4 sm:$0xff]  }
 0x2f6   :  { %5056 = vmatpush2.bf16.msra.mxu1 %v7435_v23  ;;  %5098 = vmatprep.subr.bf16.mxu0 %v7446_v25  ;;  %v7509_v23 = vld [vmem:[#allocation9 + $0xdd4] ss:$28 sps:$4 sm:$0xff]  }
 0x2f7   :  { %5057 = vmatprep.subr.bf16.mxu1 %v7443_v24  ;;  %v7507_v24 = vld [vmem:[#allocation9 + $0xdd0] ss:$28 sps:$4 sm:$0xff]  }
 0x2f8   :  { %v7510_v25 = vld [vmem:[#allocation9 + $0x10] ss:$28 sps:$4 sm:$0xff]  }
 0x2f9   :  { %5099 = vmatpush2.bf16.msra.mxu0 %v7444_v27  ;;  %v7518_v27 = vld [vmem:[#allocation9 + $0x35c] ss:$28 sps:$4 sm:$0xff]  }
 0x2fa   :  { %5058 = vmatpush2.bf16.msra.mxu1 %v7441_v26  ;;  %5100 = vmatprep.subr.bf16.mxu0 %v7452_v29  ;;  %v7515_v26 = vld [vmem:[#allocation9 + $0xd9c] ss:$28 sps:$4 sm:$0xff]  }
 0x2fb   :  { %5059 = vmatprep.subr.bf16.mxu1 %v7449_v28  ;;  %v7513_v28 = vld [vmem:[#allocation9 + $0xd98] ss:$28 sps:$4 sm:$0xff]  }
 0x2fc   :  { %v7516_v29 = vld [vmem:[#allocation9 + $0x358] ss:$28 sps:$4 sm:$0xff]  }
 0x2fd   :  { %5101 = vmatpush2.bf16.msra.mxu0 %v7450_v31  ;;  %v7524_v31 = vld [vmem:[#allocation9 + $0x324] ss:$28 sps:$4 sm:$0xff]  }
 0x2fe   :  { %5060 = vmatpush2.bf16.msra.mxu1 %v7447_v30  ;;  %5102 = vmatprep.subr.bf16.mxu0 %v7458_v34  ;;  %v7521_v30 = vld [vmem:[#allocation9 + $0xd64] ss:$28 sps:$4 sm:$0xff]  }
 0x2ff   :  { %5061 = vmatprep.subr.bf16.mxu1 %v7455_v33  ;;  %v7519_v33 = vld [vmem:[#allocation9 + $0xd60] ss:$28 sps:$4 sm:$0xff]  }
 0x300   :  { %v7522_v34 = vld [vmem:[#allocation9 + $0x320] ss:$28 sps:$4 sm:$0xff]  }
 0x301   :  { %5103 = vmatpush2.bf16.msra.mxu0 %v7456_v37  ;;  %v7530_v37 = vld [vmem:[#allocation9 + $0x2ec] ss:$28 sps:$4 sm:$0xff]  }
 0x302   :  { %5062 = vmatpush2.bf16.msra.mxu1 %v7453_v35  ;;  %5104 = vmatprep.subr.bf16.mxu0 %v7461_v38  ;;  %v7527_v35 = vld [vmem:[#allocation9 + $0xd2c] ss:$28 sps:$4 sm:$0xff]  }
 0x303   :  { %5117 = vmatprep.subr.bf16.mxu1 %v7464_v39  ;;  %v7525_v38 = vld [vmem:[#allocation9 + $0xd28] ss:$28 sps:$4 sm:$0xff]  }
 0x304   :  { %v7528_v39 = vld [vmem:[#allocation9 + $0x2e8] ss:$28 sps:$4 sm:$0xff]  }
 0x305   :  { %5064 = vmatmul.mubr.bf16.vlgmr.msra.gmra.mxu1 %v8162_v5  ;;  %5105 = vmatpush2.bf16.msra.mxu0 %v7459_v43  ;;  %v7533_v43 = vld [vmem:[#allocation9 + $0xcf4] ss:$28 sps:$4 sm:$0xff]  }
 0x306   :  { %5118 = vmatpush1.bf16.msra.mxu1 %v7462_v44  ;;  %5149 = vmatprep.mubr.bf16.mxu1 %v8190_v17  ;;  %v7536_v44 = vld [vmem:[#allocation9 + $0x2b4] ss:$28 sps:$4 sm:$0xff]  }
 0x307   :  { %5119 = vmatprep.subr.bf16.mxu1 %v7467_v45  ;;  %5160 = vmatprep.subr.bf16.mxu0 %v7470_v46  ;;  %v7531_v45 = vld [vmem:[#allocation9 + $0xcf0] ss:$28 sps:$4 sm:$0xff]  }
 0x308   :  { %5107 = vmatmul.mubr.bf16.vlgmr.msra.gmra.mxu0 %v8178_v55  ;;  %v7534_v46 = vld [vmem:[#allocation9 + $0x2b0] ss:$28 sps:$4 sm:$0xff]  }
 0x309   :  { %5161 = vmatpush1.bf16.msra.mxu0 %v7468_v48  ;;  %5192 = vmatprep.mubr.bf16.mxu0 %v8145_v61  ;;  %v7542_v48 = vld [vmem:[#allocation9 + $0x27c] ss:$28 sps:$4 sm:$0xff]  }
 0x30a   :  { %5120 = vmatpush1.bf16.msra.mxu1 %v7465_v47  ;;  %5162 = vmatprep.subr.bf16.mxu0 %v7476_v50  ;;  %v7539_v47 = vld [vmem:[#allocation9 + $0xcbc] ss:$28 sps:$4 sm:$0xff]  }
 0x30b   :  { %5121 = vmatprep.subr.bf16.mxu1 %v7473_v49  ;;  %v7537_v49 = vld [vmem:[#allocation9 + $0xcb8] ss:$28 sps:$4 sm:$0xff]  }
 0x30c   :  { %v7540_v50 = vld [vmem:[#allocation9 + $0x278] ss:$28 sps:$4 sm:$0xff]  }
 0x30d   :  { %5163 = vmatpush1.bf16.msra.mxu0 %v7474_v52  ;;  %v7548_v52 = vld [vmem:[#allocation9 + $0x244] ss:$28 sps:$4 sm:$0xff]  }
 0x30e   :  { %5122 = vmatpush1.bf16.msra.mxu1 %v7471_v51  ;;  %5164 = vmatprep.subr.bf16.mxu0 %v7482_v56  ;;  %v7545_v51 = vld [vmem:[#allocation9 + $0xc84] ss:$28 sps:$4 sm:$0xff]  }
 0x30f   :  { %5123 = vmatprep.subr.bf16.mxu1 %v7479_v54  ;;  %v7543_v54 = vld [vmem:[#allocation9 + $0xc80] ss:$28 sps:$4 sm:$0xff]  }
 0x310   :  { %v7546_v56 = vld [vmem:[#allocation9 + $0x240] ss:$28 sps:$4 sm:$0xff]  }
 0x311   :  { %5165 = vmatpush1.bf16.msra.mxu0 %v7480_v58  ;;  %v7554_v58 = vld [vmem:[#allocation9 + $0x20c] ss:$28 sps:$4 sm:$0xff]  }
 0x312   :  { %5124 = vmatpush1.bf16.msra.mxu1 %v7477_v57  ;;  %5166 = vmatprep.subr.bf16.mxu0 %v7488_v60  ;;  %v7551_v57 = vld [vmem:[#allocation9 + $0xc4c] ss:$28 sps:$4 sm:$0xff]  }
 0x313   :  { %5125 = vmatprep.subr.bf16.mxu1 %v7485_v59  ;;  %v7549_v59 = vld [vmem:[#allocation9 + $0xc48] ss:$28 sps:$4 sm:$0xff]  }
 0x314   :  { %v7552_v60 = vld [vmem:[#allocation9 + $0x208] ss:$28 sps:$4 sm:$0xff]  }
 0x315   :  { %5167 = vmatpush1.bf16.msra.mxu0 %v7486_v63  ;;  %v7560_v63 = vld [vmem:[#allocation9 + $0x51c] ss:$28 sps:$4 sm:$0xff]  }
 0x316   :  { %5126 = vmatpush1.bf16.msra.mxu1 %v7483_v62  ;;  %5168 = vmatprep.subr.bf16.mxu0 %v7494_v41  ;;  %v7557_v62 = vld [vmem:[#allocation9 + $0x1d4] ss:$28 sps:$4 sm:$0xff]  }
 0x317   :  { %5127 = vmatprep.subr.bf16.mxu1 %v7491_v4  ;;  %v7555_v4 = vld [vmem:[#allocation9 + $0x1d0] ss:$28 sps:$4 sm:$0xff]   ;;  %v7558_v41 = vld [vmem:[#allocation9 + $0x518] ss:$28 sps:$4 sm:$0xff]  }
 0x319   :  { %5169 = vmatpush1.bf16.msra.mxu0 %v7492_v7  ;;  %v7566_v7 = vld [vmem:[#allocation9 + $0x89c] ss:$28 sps:$4 sm:$0xff]  }
 0x31a   :  { %5128 = vmatpush1.bf16.msra.mxu1 %v7489_v6  ;;  %5170 = vmatprep.subr.bf16.mxu0 %v7500_v36  ;;  %v7563_v6 = vld [vmem:[#allocation9 + $0x4e4] ss:$28 sps:$4 sm:$0xff]   ;;  %v7564_v36 = vld [vmem:[#allocation9 + $0x898] ss:$28 sps:$4 sm:$0xff]  }
 0x31b   :  { %5129 = vmatprep.subr.bf16.mxu1 %v7497_v10  ;;  %v7561_v10 = vld [vmem:[#allocation9 + $0x4e0] ss:$28 sps:$4 sm:$0xff]  }
 0x31d   :  { %5171 = vmatpush1.bf16.msra.mxu0 %v7498_v14  ;;  %v7572_v14 = vld [vmem:[#allocation9 + $0x864] ss:$28 sps:$4 sm:$0xff]  }
 0x31e   :  { %5130 = vmatpush1.bf16.msra.mxu1 %v7495_v13  ;;  %5172 = vmatprep.subr.bf16.mxu0 %v7506_v16  ;;  %v7569_v13 = vld [vmem:[#allocation9 + $0x4ac] ss:$28 sps:$4 sm:$0xff]   ;;  %v7570_v16 = vld [vmem:[#allocation9 + $0x860] ss:$28 sps:$4 sm:$0xff]  }
 0x31f   :  { %5131 = vmatprep.subr.bf16.mxu1 %v7503_v15  ;;  %v7567_v15 = vld [vmem:[#allocation9 + $0x4a8] ss:$28 sps:$4 sm:$0xff]  }
 0x321   :  { %5173 = vmatpush1.bf16.msra.mxu0 %v7504_v19  ;;  %v7578_v19 = vld [vmem:[#allocation9 + $0x82c] ss:$28 sps:$4 sm:$0xff]  }
 0x322   :  { %5132 = vmatpush1.bf16.msra.mxu1 %v7501_v18  ;;  %5174 = vmatprep.subr.bf16.mxu0 %v7512_v42  ;;  %v7575_v18 = vld [vmem:[#allocation9 + $0x474] ss:$28 sps:$4 sm:$0xff]   ;;  %v7576_v42 = vld [vmem:[#allocation9 + $0x828] ss:$28 sps:$4 sm:$0xff]  }
 0x323   :  { %5133 = vmatprep.subr.bf16.mxu1 %v7509_v23  ;;  %v7573_v23 = vld [vmem:[#allocation9 + $0x470] ss:$28 sps:$4 sm:$0xff]  }
 0x325   :  { %5175 = vmatpush1.bf16.msra.mxu0 %v7510_v25  ;;  %v7584_v25 = vld [vmem:[#allocation9 + $0x7f4] ss:$28 sps:$4 sm:$0xff]  }
 0x326   :  { %5134 = vmatpush2.bf16.msra.mxu1 %v7507_v24  ;;  %5176 = vmatprep.subr.bf16.mxu0 %v7518_v27  ;;  %v7581_v24 = vld [vmem:[#allocation9 + $0x43c] ss:$28 sps:$4 sm:$0xff]   ;;  %v7582_v27 = vld [vmem:[#allocation9 + $0x7f0] ss:$28 sps:$4 sm:$0xff]  }
 0x327   :  { %5135 = vmatprep.subr.bf16.mxu1 %v7515_v26  ;;  %v7579_v26 = vld [vmem:[#allocation9 + $0x438] ss:$28 sps:$4 sm:$0xff]  }
 0x329   :  { %5177 = vmatpush2.bf16.msra.mxu0 %v7516_v29  ;;  %v7590_v29 = vld [vmem:[#allocation9 + $0x7bc] ss:$28 sps:$4 sm:$0xff]  }
 0x32a   :  { %5136 = vmatpush2.bf16.msra.mxu1 %v7513_v28  ;;  %5178 = vmatprep.subr.bf16.mxu0 %v7524_v31  ;;  %v7587_v28 = vld [vmem:[#allocation9 + $0x404] ss:$28 sps:$4 sm:$0xff]   ;;  %v7588_v31 = vld [vmem:[#allocation9 + $0x7b8] ss:$28 sps:$4 sm:$0xff]  }
 0x32b   :  { %5137 = vmatprep.subr.bf16.mxu1 %v7521_v30  ;;  %v7585_v30 = vld [vmem:[#allocation9 + $0x400] ss:$28 sps:$4 sm:$0xff]  }
 0x32d   :  { %5179 = vmatpush2.bf16.msra.mxu0 %v7522_v34  ;;  %v7596_v34 = vld [vmem:[#allocation9 + $0x784] ss:$28 sps:$4 sm:$0xff]  }
 0x32e   :  { %5138 = vmatpush2.bf16.msra.mxu1 %v7519_v33  ;;  %5180 = vmatprep.subr.bf16.mxu0 %v7530_v37  ;;  %v7593_v33 = vld [vmem:[#allocation9 + $0x3cc] ss:$28 sps:$4 sm:$0xff]   ;;  %v7594_v37 = vld [vmem:[#allocation9 + $0x780] ss:$28 sps:$4 sm:$0xff]  }
 0x32f   :  { %5139 = vmatprep.subr.bf16.mxu1 %v7527_v35  ;;  %v7591_v35 = vld [vmem:[#allocation9 + $0x3c8] ss:$28 sps:$4 sm:$0xff]  }
 0x331   :  { %5181 = vmatpush2.bf16.msra.mxu0 %v7528_v39  ;;  %v7602_v39 = vld [vmem:[#allocation9 + $0x74c] ss:$28 sps:$4 sm:$0xff]  }
 0x332   :  { %5140 = vmatpush2.bf16.msra.mxu1 %v7525_v38  ;;  %5182 = vmatprep.subr.bf16.mxu0 %v7536_v44  ;;  %v7599_v38 = vld [vmem:[#allocation9 + $0x394] ss:$28 sps:$4 sm:$0xff]   ;;  %v7600_v44 = vld [vmem:[#allocation9 + $0x748] ss:$28 sps:$4 sm:$0xff]  }
 0x333   :  { %5141 = vmatprep.subr.bf16.mxu1 %v7533_v43  ;;  %v7597_v43 = vld [vmem:[#allocation9 + $0x390] ss:$28 sps:$4 sm:$0xff]  }
 0x335   :  { %5183 = vmatpush2.bf16.msra.mxu0 %v7534_v46  ;;  %v7608_v46 = vld [vmem:[#allocation9 + $0x714] ss:$28 sps:$4 sm:$0xff]  }
 0x336   :  { %5142 = vmatpush2.bf16.msra.mxu1 %v7531_v45  ;;  %5184 = vmatprep.subr.bf16.mxu0 %v7542_v48  ;;  %v7605_v45 = vld [vmem:[#allocation9 + $0x6dc] ss:$28 sps:$4 sm:$0xff]   ;;  %v7606_v48 = vld [vmem:[#allocation9 + $0x710] ss:$28 sps:$4 sm:$0xff]  }
 0x337   :  { %5143 = vmatprep.subr.bf16.mxu1 %v7539_v47  ;;  %v7603_v47 = vld [vmem:[#allocation9 + $0x6d8] ss:$28 sps:$4 sm:$0xff]  }
 0x339   :  { %5185 = vmatpush2.bf16.msra.mxu0 %v7540_v50  ;;  %v7614_v50 = vld [vmem:[#allocation9 + $0xa5c] ss:$28 sps:$4 sm:$0xff]  }
 0x33a   :  { %5144 = vmatpush2.bf16.msra.mxu1 %v7537_v49  ;;  %5186 = vmatprep.subr.bf16.mxu0 %v7548_v52  ;;  %v7611_v49 = vld [vmem:[#allocation9 + $0x6a4] ss:$28 sps:$4 sm:$0xff]   ;;  %v7612_v52 = vld [vmem:[#allocation9 + $0xa58] ss:$28 sps:$4 sm:$0xff]  }
 0x33b   :  { %5145 = vmatprep.subr.bf16.mxu1 %v7545_v51  ;;  %v7609_v51 = vld [vmem:[#allocation9 + $0x6a0] ss:$28 sps:$4 sm:$0xff]  }
 0x33d   :  { %5187 = vmatpush2.bf16.msra.mxu0 %v7546_v56  ;;  %v7620_v56 = vld [vmem:[#allocation9 + $0xa24] ss:$28 sps:$4 sm:$0xff]  }
 0x33e   :  { %5146 = vmatpush2.bf16.msra.mxu1 %v7543_v54  ;;  %5188 = vmatprep.subr.bf16.mxu0 %v7554_v58  ;;  %v7617_v54 = vld [vmem:[#allocation9 + $0x66c] ss:$28 sps:$4 sm:$0xff]   ;;  %v7618_v58 = vld [vmem:[#allocation9 + $0xa20] ss:$28 sps:$4 sm:$0xff]  }
 0x33f   :  { %5147 = vmatprep.subr.bf16.mxu1 %v7551_v57  ;;  %v7615_v57 = vld [vmem:[#allocation9 + $0x668] ss:$28 sps:$4 sm:$0xff]  }
 0x341   :  { %5189 = vmatpush2.bf16.msra.mxu0 %v7552_v60  ;;  %v7626_v60 = vld [vmem:[#allocation9 + $0x9ec] ss:$28 sps:$4 sm:$0xff]  }
 0x342   :  { %5148 = vmatpush2.bf16.msra.mxu1 %v7549_v59  ;;  %5190 = vmatprep.subr.bf16.mxu0 %v7557_v62  ;;  %v7623_v59 = vld [vmem:[#allocation9 + $0x634] ss:$28 sps:$4 sm:$0xff]  }
 0x343   :  { %5203 = vmatprep.subr.bf16.mxu1 %v7560_v63  ;;  %v7621_v62 = vld [vmem:[#allocation9 + $0x630] ss:$28 sps:$4 sm:$0xff]   ;;  %v7624_v63 = vld [vmem:[#allocation9 + $0x9e8] ss:$28 sps:$4 sm:$0xff]  }
 0x345   :  { %5150 = vmatmul.mubr.bf16.vlgmr.msra.gmra.mxu1 %v8193_v20  ;;  %5191 = vmatpush2.bf16.msra.mxu0 %v7555_v4  ;;  %v7629_v4 = vld [vmem:[#allocation9 + $0x5fc] ss:$28 sps:$4 sm:$0xff]  }
 0x346   :  { %5204 = vmatpush1.bf16.msra.mxu1 %v7558_v41  ;;  %5235 = vmatprep.mubr.bf16.mxu1 %v8159_v3  ;;  %v7632_v41 = vld [vmem:[#allocation9 + $0x9b4] ss:$28 sps:$4 sm:$0xff]  }
 0x347   :  { %5205 = vmatprep.subr.bf16.mxu1 %v7563_v6  ;;  %5246 = vmatprep.subr.bf16.mxu0 %v7566_v7  ;;  %v7627_v6 = vld [vmem:[#allocation9 + $0x5f8] ss:$28 sps:$4 sm:$0xff]   ;;  %v7630_v7 = vld [vmem:[#allocation9 + $0x9b0] ss:$28 sps:$4 sm:$0xff]  }
 0x348   :  { %5193 = vmatmul.mubr.bf16.vlgmr.msra.gmra.mxu0 %v8148_v2 }
 0x349   :  { %5247 = vmatpush1.bf16.msra.mxu0 %v7564_v36  ;;  %5278 = vmatprep.mubr.bf16.mxu0 %v8175_v53  ;;  %v7638_v36 = vld [vmem:[#allocation9 + $0x97c] ss:$28 sps:$4 sm:$0xff]  }
 0x34a   :  { %5206 = vmatpush1.bf16.msra.mxu1 %v7561_v10  ;;  %5248 = vmatprep.subr.bf16.mxu0 %v7572_v14  ;;  %v7635_v10 = vld [vmem:[#allocation9 + $0x5c4] ss:$28 sps:$4 sm:$0xff]   ;;  %v7636_v14 = vld [vmem:[#allocation9 + $0x978] ss:$28 sps:$4 sm:$0xff]  }
 0x34b   :  { %5207 = vmatprep.subr.bf16.mxu1 %v7569_v13  ;;  %v7633_v13 = vld [vmem:[#allocation9 + $0x5c0] ss:$28 sps:$4 sm:$0xff]  }
 0x34d   :  { %5249 = vmatpush1.bf16.msra.mxu0 %v7570_v16  ;;  %v7644_v16 = vld [vmem:[#allocation9 + $0x944] ss:$28 sps:$4 sm:$0xff]  }
 0x34e   :  { %5208 = vmatpush1.bf16.msra.mxu1 %v7567_v15  ;;  %5250 = vmatprep.subr.bf16.mxu0 %v7578_v19  ;;  %v7641_v15 = vld [vmem:[#allocation9 + $0x58c] ss:$28 sps:$4 sm:$0xff]   ;;  %v7642_v19 = vld [vmem:[#allocation9 + $0x940] ss:$28 sps:$4 sm:$0xff]  }
 0x34f   :  { %5209 = vmatprep.subr.bf16.mxu1 %v7575_v18  ;;  %v7639_v18 = vld [vmem:[#allocation9 + $0x588] ss:$28 sps:$4 sm:$0xff]  }
 0x351   :  { %5251 = vmatpush1.bf16.msra.mxu0 %v7576_v42  ;;  %v7650_v42 = vld [vmem:[#allocation9 + $0x90c] ss:$28 sps:$4 sm:$0xff]  }
 0x352   :  { %5210 = vmatpush1.bf16.msra.mxu1 %v7573_v23  ;;  %5252 = vmatprep.subr.bf16.mxu0 %v7584_v25  ;;  %v7647_v23 = vld [vmem:[#allocation9 + $0x554] ss:$28 sps:$4 sm:$0xff]   ;;  %v7648_v25 = vld [vmem:[#allocation9 + $0x908] ss:$28 sps:$4 sm:$0xff]  }
 0x353   :  { %5211 = vmatprep.subr.bf16.mxu1 %v7581_v24  ;;  %v7645_v24 = vld [vmem:[#allocation9 + $0x550] ss:$28 sps:$4 sm:$0xff]  }
 0x355   :  { %5253 = vmatpush1.bf16.msra.mxu0 %v7582_v27  ;;  %v7656_v27 = vld [vmem:[#allocation9 + $0xc1c] ss:$28 sps:$4 sm:$0xff]  }
 0x356   :  { %5212 = vmatpush1.bf16.msra.mxu1 %v7579_v26  ;;  %5254 = vmatprep.subr.bf16.mxu0 %v7590_v29  ;;  %v7653_v26 = vld [vmem:[#allocation9 + $0x8d4] ss:$28 sps:$4 sm:$0xff]  }
 0x357   :  { %5213 = vmatprep.subr.bf16.mxu1 %v7587_v28  ;;  %v7651_v28 = vld [vmem:[#allocation9 + $0x8d0] ss:$28 sps:$4 sm:$0xff]   ;;  %v7654_v29 = vld [vmem:[#allocation9 + $0xc18] ss:$28 sps:$4 sm:$0xff]  }
 0x359   :  { %5255 = vmatpush1.bf16.msra.mxu0 %v7588_v31  ;;  %v7660_v31 = vld [vmem:[#allocation9 + $0x360] ss:$28 sps:$4 sm:$0xff]  }
 0x35a   :  { %5214 = vmatpush1.bf16.msra.mxu1 %v7585_v30  ;;  %5256 = vmatprep.subr.bf16.mxu0 %v7596_v34  ;;  %v7659_v30 = vld [vmem:[#allocation9 + $0xbe4] ss:$28 sps:$4 sm:$0xff]  }
 0x35b   :  { %5215 = vmatprep.subr.bf16.mxu1 %v7593_v33  ;;  %v7657_v33 = vld [vmem:[#allocation9 + $0xbe0] ss:$28 sps:$4 sm:$0xff]  }
 0x35c   :  { %v7661_v34 = vld [vmem:[#allocation9 + $0x1a0] ss:$28 sps:$4 sm:$0xff]  }
 0x35d   :  { %5257 = vmatpush1.bf16.msra.mxu0 %v7594_v37  ;;  %v7665_v37 = vld [vmem:[#allocation9 + $0x328] ss:$28 sps:$4 sm:$0xff]  }
 0x35e   :  { %5216 = vmatpush1.bf16.msra.mxu1 %v7591_v35  ;;  %5258 = vmatprep.subr.bf16.mxu0 %v7602_v39  ;;  %v7664_v35 = vld [vmem:[#allocation9 + $0xbac] ss:$28 sps:$4 sm:$0xff]  }
 0x35f   :  { %5217 = vmatprep.subr.bf16.mxu1 %v7599_v38  ;;  %v7662_v38 = vld [vmem:[#allocation9 + $0xba8] ss:$28 sps:$4 sm:$0xff]  }
 0x360   :  { %v7666_v39 = vld [vmem:[#allocation9 + $0x168] ss:$28 sps:$4 sm:$0xff]  }
 0x361   :  { %5259 = vmatpush1.bf16.msra.mxu0 %v7600_v44  ;;  %v7670_v44 = vld [vmem:[#allocation9 + $0x2f0] ss:$28 sps:$4 sm:$0xff]  }
 0x362   :  { %5218 = vmatpush1.bf16.msra.mxu1 %v7597_v43  ;;  %5260 = vmatprep.subr.bf16.mxu0 %v7608_v46  ;;  %v7669_v43 = vld [vmem:[#allocation9 + $0xb74] ss:$28 sps:$4 sm:$0xff]  }
 0x363   :  { %5219 = vmatprep.subr.bf16.mxu1 %v7605_v45  ;;  %v7667_v45 = vld [vmem:[#allocation9 + $0xb70] ss:$28 sps:$4 sm:$0xff]  }
 0x364   :  { %v7671_v46 = vld [vmem:[#allocation9 + $0x130] ss:$28 sps:$4 sm:$0xff]  }
 0x365   :  { %5261 = vmatpush1.bf16.msra.mxu0 %v7606_v48  ;;  %v7675_v48 = vld [vmem:[#allocation9 + $0x2b8] ss:$28 sps:$4 sm:$0xff]  }
 0x366   :  { %5220 = vmatpush2.bf16.msra.mxu1 %v7603_v47  ;;  %5262 = vmatprep.subr.bf16.mxu0 %v7614_v50  ;;  %v7674_v47 = vld [vmem:[#allocation9 + $0xb3c] ss:$28 sps:$4 sm:$0xff]  }
 0x367   :  { %5221 = vmatprep.subr.bf16.mxu1 %v7611_v49  ;;  %v7672_v49 = vld [vmem:[#allocation9 + $0xb38] ss:$28 sps:$4 sm:$0xff]  }
 0x368   :  { %v7676_v50 = vld [vmem:[#allocation9 + $0xf8] ss:$28 sps:$4 sm:$0xff]  }
 0x369   :  { %5263 = vmatpush2.bf16.msra.mxu0 %v7612_v52  ;;  %v7677_v52 = vld [vmem:[#allocation9 + $0xb00] ss:$28 sps:$4 sm:$0xff]  }
 0x36a   :  { %5222 = vmatpush2.bf16.msra.mxu1 %v7609_v51  ;;  %5264 = vmatprep.subr.bf16.mxu0 %v7620_v56  ;;  %v7679_v51 = vld [vmem:[#allocation9 + $0xb04] ss:$28 sps:$4 sm:$0xff]   ;;  %v7684_v56 = vld [vmem:[#allocation9 + $0xacc] ss:$28 sps:$4 sm:$0xff]  }
 0x36b   :  { %5223 = vmatprep.subr.bf16.mxu1 %v7617_v54  ;;  %v7681_v54 = vld [vmem:[#allocation9 + $0xc0] ss:$28 sps:$4 sm:$0xff]  }
 0x36d   :  { %5265 = vmatpush2.bf16.msra.mxu0 %v7618_v58  ;;  %v7682_v58 = vld [vmem:[#allocation9 + $0xac8] ss:$28 sps:$4 sm:$0xff]  }
 0x36e   :  { %5224 = vmatpush2.bf16.msra.mxu1 %v7615_v57  ;;  %5266 = vmatprep.subr.bf16.mxu0 %v7626_v60  ;;  %v7685_v57 = vld [vmem:[#allocation9 + $0x248] ss:$28 sps:$4 sm:$0xff]   ;;  %v7689_v60 = vld [vmem:[#allocation9 + $0xa94] ss:$28 sps:$4 sm:$0xff]  }
 0x36f   :  { %5225 = vmatprep.subr.bf16.mxu1 %v7623_v59  ;;  %v7686_v59 = vld [vmem:[#allocation9 + $0x88] ss:$28 sps:$4 sm:$0xff]  }
 0x371   :  { %5267 = vmatpush2.bf16.msra.mxu0 %v7624_v63  ;;  %v7687_v63 = vld [vmem:[#allocation9 + $0xa90] ss:$28 sps:$4 sm:$0xff]  }
 0x372   :  { %5226 = vmatpush2.bf16.msra.mxu1 %v7621_v62  ;;  %5268 = vmatprep.subr.bf16.mxu0 %v7632_v41  ;;  %v7690_v62 = vld [vmem:[#allocation9 + $0x210] ss:$28 sps:$4 sm:$0xff]   ;;  %v7694_v41 = vld [vmem:[#allocation9 + $0xddc] ss:$28 sps:$4 sm:$0xff]  }
 0x373   :  { %5227 = vmatprep.subr.bf16.mxu1 %v7629_v4  ;;  %v7691_v4 = vld [vmem:[#allocation9 + $0x50] ss:$28 sps:$4 sm:$0xff]  }
 0x375   :  { %5269 = vmatpush2.bf16.msra.mxu0 %v7630_v7  ;;  %v8212_v7 = vpop.f32.mrf.mxu0 }
 0x376   :  { %5228 = vmatpush2.bf16.msra.mxu1 %v7627_v6  ;;  %5270 = vmatprep.subr.bf16.mxu0 %v7638_v36  ;;  %v7695_v6 = vld [vmem:[#allocation9 + $0x1d8] ss:$28 sps:$4 sm:$0xff]  }
 0x377   :  { %5229 = vmatprep.subr.bf16.mxu1 %v7635_v10  ;;  %v7692_v10 = vld [vmem:[#allocation9 + $0xdd8] ss:$28 sps:$4 sm:$0xff]  }
 0x378   :  { %v7696_v36 = vld [vmem:[#allocation9 + $0x18] ss:$28 sps:$4 sm:$0xff]  }
 0x379   :  { %5271 = vmatpush2.bf16.msra.mxu0 %v7636_v14  ;;  %v7700_v14 = vld [vmem:[#allocation9 + $0xa60] ss:$28 sps:$4 sm:$0xff]  }
 0x37a   :  { %5230 = vmatpush2.bf16.msra.mxu1 %v7633_v13  ;;  %5272 = vmatprep.subr.bf16.mxu0 %v7644_v16  ;;  %v7699_v13 = vld [vmem:[#allocation9 + $0xda4] ss:$28 sps:$4 sm:$0xff]   ;;  %v8216_v16 = vpop.f32.mrf.mxu0 }
 0x37b   :  { %5231 = vmatprep.subr.bf16.mxu1 %v7641_v15  ;;  %v8214_v15 = vpop.f32.mrf.mxu1 }
 0x37d   :  { %5273 = vmatpush2.bf16.msra.mxu0 %v7642_v19  ;;  %v7701_v19 = vld [vmem:[#allocation9 + $0x8a0] ss:$28 sps:$4 sm:$0xff]  }
 0x37e   :  { %5232 = vmatpush2.bf16.msra.mxu1 %v7639_v18  ;;  %5274 = vmatprep.subr.bf16.mxu0 %v7650_v42  ;;  %v7697_v18 = vld [vmem:[#allocation9 + $0xda0] ss:$28 sps:$4 sm:$0xff]   ;;  %v8218_v42 = vpop.f32.mrf.mxu1 }
 0x37f   :  { %5233 = vmatprep.subr.bf16.mxu1 %v7647_v23  ;;  %v7704_v23 = vld [vmem:[#allocation9 + $0xd6c] ss:$28 sps:$4 sm:$0xff]  }
 0x381   :  { %5275 = vmatpush2.bf16.msra.mxu0 %v7648_v25  ;;  %v8221_v25 = vpop.f32.mrf.mxu0 }
 0x382   :  { %5234 = vmatpush2.bf16.msra.mxu1 %v7645_v24  ;;  %5276 = vmatprep.subr.bf16.mxu0 %v7653_v26  ;;  %v7705_v24 = vld [vmem:[#allocation9 + $0xa28] ss:$28 sps:$4 sm:$0xff]  }
 0x383   :  { %5289 = vmatprep.subr.bf16.mxu1 %v7656_v27  ;;  %v7702_v26 = vld [vmem:[#allocation9 + $0xd68] ss:$28 sps:$4 sm:$0xff]  }
 0x384   :  { %v7706_v27 = vld [vmem:[#allocation9 + $0x868] ss:$28 sps:$4 sm:$0xff]  }
 0x385   :  { %5236 = vmatmul.mubr.bf16.vlgmr.msra.gmra.mxu1 %v8162_v5  ;;  %5277 = vmatpush2.bf16.msra.mxu0 %v7651_v28  ;;  %v7709_v28 = vld [vmem:[#allocation9 + $0xd34] ss:$28 sps:$4 sm:$0xff]  }
 0x386   :  { %5290 = vmatpush1.bf16.msra.mxu1 %v7654_v29  ;;  %5321 = vmatprep.mubr.bf16.mxu1 %v8190_v17  ;;  %v7710_v29 = vld [vmem:[#allocation9 + $0x9f0] ss:$28 sps:$4 sm:$0xff]  }
 0x387   :  { %5291 = vmatprep.subr.bf16.mxu1 %v7659_v30  ;;  %6871 = vmatprep.subr.bf16.mxu0 %v7660_v31  ;;  %v8224_v30 = vpop.f32.mrf.mxu1  ;;  %v4856_v31 = vpop.f32.mrf.mxu0 }
 0x388   :  { %5279 = vmatmul.mubr.bf16.vlgmr.msra.gmra.mxu0 %v8178_v55 }
 0x389   :  { %6872 = vmatpush3.bf16.msra.mxu0 %v7661_v34  ;;  %5364 = vmatprep.mubr.bf16.mxu0 %v8145_v61  ;;  %v7680_v61 = vld [vmem:[#allocation9 + $0x280] ss:$28 sps:$4 sm:$0xff]   ;;  %v7711_v34 = vld [vmem:[#allocation9 + $0x830] ss:$28 sps:$4 sm:$0xff]  }
 0x38a   :  { %5292 = vmatpush1.bf16.msra.mxu1 %v7657_v33  ;;  %6873 = vmatprep.subr.bf16.mxu0 %v7665_v37  ;;  %v7707_v33 = vld [vmem:[#allocation9 + $0xd30] ss:$28 sps:$4 sm:$0xff]   ;;  %v4899_v37 = vpop.f32.mrf.mxu1 }
 0x38b   :  { %5293 = vmatprep.subr.bf16.mxu1 %v7664_v35  ;;  %v7715_v35 = vld [vmem:[#allocation9 + $0x9b8] ss:$28 sps:$4 sm:$0xff]  }
 0x38d   :  { %6874 = vmatpush3.bf16.msra.mxu0 %v7666_v39  ;;  %v8228_v39 = vpop.f32.mrf.mxu1 }
 0x38e   :  { %5294 = vmatpush1.bf16.msra.mxu1 %v7662_v38  ;;  %6875 = vmatprep.subr.bf16.mxu0 %v7670_v44  ;;  %v8226_v38 = vpop.f32.mrf.mxu0  ;;  %v7719_v44 = vld [vmem:[#allocation9 + $0xcc4] ss:$28 sps:$4 sm:$0xff]  }
 0x38f   :  { %5295 = vmatprep.subr.bf16.mxu1 %v7669_v43  ;;  %v7716_v43 = vld [vmem:[#allocation9 + $0x7f8] ss:$28 sps:$4 sm:$0xff]  }
 0x391   :  { %6876 = vmatpush3.bf16.msra.mxu0 %v7671_v46  ;;  %v4938_v46 = vpop.f32.mrf.mxu0 }
 0x392   :  { %5296 = vmatpush1.bf16.msra.mxu1 %v7667_v45  ;;  %6877 = vmatprep.subr.bf16.mxu0 %v7675_v48  ;;  %v7720_v45 = vld [vmem:[#allocation9 + $0x980] ss:$28 sps:$4 sm:$0xff]  }
 0x393   :  { %5297 = vmatprep.subr.bf16.mxu1 %v7674_v47  ;;  %v4981_v47 = vpop.f32.mrf.mxu1  ;;  %v7717_v48 = vld [vmem:[#allocation9 + $0xcc0] ss:$28 sps:$4 sm:$0xff]  }
 0x395   :  { %6878 = vmatpush3.bf16.msra.mxu0 %v7676_v50  ;;  %v7724_v50 = vld [vmem:[#allocation9 + $0xc8c] ss:$28 sps:$4 sm:$0xff]  }
 0x396   :  { %5298 = vmatpush1.bf16.msra.mxu1 %v7672_v49  ;;  %6879 = vmatprep.subr.bf16.mxu0 %v7680_v61  ;;  %v7721_v49 = vld [vmem:[#allocation9 + $0x7c0] ss:$28 sps:$4 sm:$0xff]  }
 0x397   :  { %5299 = vmatprep.subr.bf16.mxu1 %v7679_v51  ;;  %v7725_v51 = vld [vmem:[#allocation9 + $0x948] ss:$28 sps:$4 sm:$0xff]  }
 0x398   :  { %v8230_v61 = vld [vmem:[#allocation10] sm:$0xff] }
 0x399   :  { %6880 = vmatpush3.bf16.msra.mxu0 %v7681_v54  ;;  %v2484_v54 = vrot.slane %v8230_v61, %v8109_v12  ;;  %v7731_v12 = vld [vmem:[#allocation9 + $0x750] ss:$28 sps:$4 sm:$0xff]  }
 0x39a   :  { %5300 = vmatpush1.bf16.msra.mxu1 %v7677_v52  ;;  %6881 = vmatprep.subr.bf16.mxu0 %v7685_v57  ;;  %v8232_v52 = vpop.f32.mrf.mxu0  ;;  %v7722_v57 = vld [vmem:[#allocation9 + $0xc88] ss:$28 sps:$4 sm:$0xff]  }
 0x39b   :  { %5301 = vmatprep.subr.bf16.mxu1 %v7684_v56  ;;  %v8236_v56 = vpop.f32.mrf.mxu1 }
 0x39d   :  { %6882 = vmatpush3.bf16.msra.mxu0 %v7686_v59  ;;  %v4857_v59 = vadd.f32 %v4856_v31, %v2484_v54  ;;  %v7739_v31 = vld [vmem:[#allocation12 + $0x38] sm:$0xff]  }
 0x39e   :  { %5302 = vmatpush1.bf16.msra.mxu1 %v7682_v58  ;;  %6883 = vmatprep.subr.bf16.mxu0 %v7690_v62  ;;  %v7726_v58 = vld [vmem:[#allocation9 + $0x788] ss:$28 sps:$4 sm:$0xff]   ;;  %v7730_v62 = vld [vmem:[#allocation9 + $0x910] ss:$28 sps:$4 sm:$0xff]  }
 0x39f   :  { %5303 = vmatprep.subr.bf16.mxu1 %v7689_v60  ;;  %v7729_v60 = vld [vmem:[#allocation9 + $0xc54] ss:$28 sps:$4 sm:$0xff]  }
 0x3a1   :  { %6884 = vmatpush3.bf16.msra.mxu0 %v7691_v4  ;;  %v4853_v4 = vadd.f32 %v8216_v16, %v2484_v54  ;;  %v7735_v16 = vld [vmem:[#allocation9 + $0x718] ss:$28 sps:$4 sm:$0xff]   ;;  %v7756_v54 = vld [vmem:[#allocation9 + $0x590] ss:$28 sps:$4 sm:$0xff]  }
 0x3a2   :  { %5304 = vmatpush1.bf16.msra.mxu1 %v7687_v63  ;;  %6885 = vmatprep.subr.bf16.mxu0 %v7695_v6  ;;  %v4942_v63 = vpop.f32.mrf.mxu0  ;;  %v4985_v6 = vpop.f32.mrf.mxu1 }
 0x3a3   :  { %5305 = vmatprep.subr.bf16.mxu1 %v7694_v41  ;;  %v4900_v41 = vadd.f32 %v4899_v37, %v4857_v59  ;;  %v7743_v37 = vld [vmem:[#allocation12 + $0x30] sm:$0xff]  }
 0x3a5   :  { %6886 = vmatpush3.bf16.msra.mxu0 %v7696_v36  ;;  %v4896_v36 = vadd.f32 %v8218_v42, %v4853_v4  ;;  %v7738_v42 = vld [vmem:[#allocation9 + $0x4e8] ss:$28 sps:$4 sm:$0xff]  }
 0x3a6   :  { %5306 = vmatpush2.bf16.msra.mxu1 %v7692_v10  ;;  %6915 = vmatprep.subr.bf16.mxu0 %v7700_v14  ;;  %v7727_v10 = vld [vmem:[#allocation9 + $0xc50] ss:$28 sps:$4 sm:$0xff]   ;;  %v7732_v14 = vld [vmem:[#allocation9 + $0x6e0] ss:$28 sps:$4 sm:$0xff]  }
 0x3a7   :  { %5307 = vmatprep.subr.bf16.mxu1 %v7699_v13  ;;  %v4943_v13 = vadd.f32 %v4942_v63, %v4900_v41  ;;  %v7760_v63 = vld [vmem:[#allocation9 + $0x558] ss:$28 sps:$4 sm:$0xff]  }
 0x3a8   :  { %5365 = vmatmul.mubr.bf16.vlgmr.msra.gmra.mxu0 %v8148_v2  ;;  %v7714_v2 = vld [vmem:[#allocation9 + $0xcfc] ss:$28 sps:$4 sm:$0xff]  }
 0x3a9   :  { %6916 = vmatpush3.bf16.msra.mxu0 %v7701_v19  ;;  %5446 = vmatprep.mubr.bf16.mxu0 %v8175_v53  ;;  %v7712_v53 = vld [vmem:[#allocation9 + $0xcf8] ss:$28 sps:$4 sm:$0xff]   ;;  %v4939_v19 = vadd.f32 %v4938_v46, %v4896_v36  ;;  %v7749_v46 = vld [vmem:[#allocation12 + $0x60] sm:$0xff]   ;;  %v7764_v36 = vld [vmem:[#allocation9 + $0xde0] ss:$28 sps:$4 sm:$0xff]  }
 0x3aa   :  { %5308 = vmatpush2.bf16.msra.mxu1 %v7697_v18  ;;  %6917 = vmatprep.subr.bf16.mxu0 %v7705_v24  ;;  %v7733_v18 = vld [vmem:[#allocation9 + $0x8d8] ss:$28 sps:$4 sm:$0xff]   ;;  %v7734_v24 = vld [vmem:[#allocation9 + $0x520] ss:$28 sps:$4 sm:$0xff]  }
 0x3ab   :  { %5309 = vmatprep.subr.bf16.mxu1 %v7704_v23  ;;  %v4986_v23 = vadd.f32 %v4985_v6, %v4943_v13  ;;  %v7761_v6 = vld [vmem:[#allocation12 + $0x48] sm:$0xff]  }
 0x3ad   :  { %6918 = vmatpush3.bf16.msra.mxu0 %v7706_v27  ;;  %v7736_v27 = vld [vmem:[#allocation9 + $0x6a8] ss:$28 sps:$4 sm:$0xff]  }
 0x3ae   :  { %5310 = vmatpush2.bf16.msra.mxu1 %v7702_v26  ;;  %6919 = vmatprep.subr.bf16.mxu0 %v7710_v29  ;;  %v4982_v26 = vadd.f32 %v4981_v47, %v4939_v19  ;;  %v7750_v47 = vld [vmem:[#allocation9 + $0x440] ss:$28 sps:$4 sm:$0xff]  }
 0x3af   :  { %5311 = vmatprep.subr.bf16.mxu1 %v7709_v28  ;;  %v7737_v28 = vld [vmem:[#allocation12 + $0x78] sm:$0xff]  }
 0x3b0   :  { %v5497_v29 = vpack.c.bf16 %v4986_v23, %v4982_v26  ;;  %v8257_v26 = vpop.f32.mrf.mxu0 }
 0x3b1   :  { %6920 = vmatpush3.bf16.msra.mxu0 %v7711_v34  ;;  %v7741_v34 = vld [vmem:[#allocation12 + $0x70] sm:$0xff]  }
 0x3b2   :  { %5312 = vmatpush2.bf16.msra.mxu1 %v7707_v33  ;;  %6921 = vmatprep.subr.bf16.mxu0 %v7715_v35  ;;  %v7740_v33 = vld [vmem:[#allocation9 + $0x670] ss:$28 sps:$4 sm:$0xff]  }
 0x3b3   :  { %5313 = vmatprep.subr.bf16.mxu1 %v7714_v2  ;;  %v5504_v2 = vmax.bf16 %v8010_v1, %v5497_v29  ;;  %v7742_v35 = vld [vmem:[#allocation9 + $0x4b0] ss:$28 sps:$4 sm:$0xff]   ;;  %v7799_v29 = vld [vmem:[#allocation12 + $0x138] sm:$0xff]  }
 0x3b5   :  { %6922 = vmatpush3.bf16.msra.mxu0 %v7716_v43  ;;  %v7746_v43 = vld [vmem:[#allocation9 + $0x478] ss:$28 sps:$4 sm:$0xff]  }
 0x3b6   :  { %5314 = vmatpush2.bf16.msra.mxu1 %v7712_v53  ;;  %6923 = vmatprep.subr.bf16.mxu0 %v7720_v45  ;;  %v7744_v53 = vld [vmem:[#allocation9 + $0x638] ss:$28 sps:$4 sm:$0xff]   ;;  %v7748_v45 = vld [vmem:[#allocation9 + $0x600] ss:$28 sps:$4 sm:$0xff]  }
 0x3b7   :  { %5315 = vmatprep.subr.bf16.mxu1 %v7719_v44  ;;  %v7747_v44 = vld [vmem:[#allocation12 + $0x28] sm:$0xff]  }
 0x3b9   :  { %6924 = vmatpush3.bf16.msra.mxu0 %v7721_v49  ;;  %v7753_v49 = vld [vmem:[#allocation12 + $0x58] sm:$0xff]  }
 0x3ba   :  { %5316 = vmatpush2.bf16.msra.mxu1 %v7717_v48  ;;  %6925 = vmatprep.subr.bf16.mxu0 %v7725_v51  ;;  %v7752_v48 = vld [vmem:[#allocation9 + $0x5c8] ss:$28 sps:$4 sm:$0xff]  }
 0x3bb   :  { %5317 = vmatprep.subr.bf16.mxu1 %v7724_v50  ;;  %v7754_v50 = vld [vmem:[#allocation9 + $0x408] ss:$28 sps:$4 sm:$0xff]  }
 0x3bc   :  { %v7755_v51 = vld [vmem:[#allocation12 + $0x18] sm:$0xff]  }
 0x3bd   :  { %6926 = vmatpush3.bf16.msra.mxu0 %v7726_v58  ;;  %v7757_v58 = vld [vmem:[#allocation12 + $0x50] sm:$0xff]  }
 0x3be   :  { %5318 = vmatpush2.bf16.msra.mxu1 %v7722_v57  ;;  %6927 = vmatprep.subr.bf16.mxu0 %v7730_v62  ;;  %v2480_v57 = vrot.slane %v8230_v61, %v8103_v9  ;;  %v7759_v62 = vld [vmem:[#allocation12 + $0x10] sm:$0xff]  }
 0x3bf   :  { %5319 = vmatprep.subr.bf16.mxu1 %v7729_v60  ;;  %v7758_v60 = vld [vmem:[#allocation9 + $0x3d0] ss:$28 sps:$4 sm:$0xff]  }
 0x3c0   :  { %v4855_v59 = vadd.f32 %v8221_v25, %v2480_v57  ;;  %v4851_v4 = vadd.f32 %v8212_v7, %v2480_v57  ;;  %v7763_v25 = vld [vmem:[#allocation12 + $0x8] sm:$0xff]   ;;  %v7765_v7 = vld [vmem:[#allocation12 + $0x40] sm:$0xff]   ;;  %v7782_v57 = vld [vmem:[#allocation12 + $0xf8] sm:$0xff]  }
 0x3c1   :  { %6928 = vmatpush3.bf16.msra.mxu0 %v7731_v12  ;;  %v7762_v12 = vld [vmem:[#allocation9 + $0x398] ss:$28 sps:$4 sm:$0xff]  }
 0x3c2   :  { %5320 = vmatpush2.bf16.msra.mxu1 %v7727_v10  ;;  %6929 = vmatprep.subr.bf16.mxu0 %v7733_v18  ;;  %v4898_v41 = vadd.f32 %v8224_v30, %v4855_v59  ;;  %v4894_v10 = vadd.f32 %v8214_v15, %v4851_v4  ;;  %v7766_v18 = vld [vmem:[#allocation9 + $0xc20] ss:$28 sps:$4 sm:$0xff]   ;;  %v7767_v15 = vld [vmem:[#allocation12] sm:$0xff]   ;;  %v2492_v59 = vrot.slane %v8230_v61, %v617_v32  ;;  %v7786_v32 = vld [vmem:[#allocation12 + $0xe8] sm:$0xff]  }
 0x3c3   :  { %6893 = vmatprep.subr.bf16.mxu1 %v7732_v14  ;;  %v7784_v4 = vld [vmem:[#allocation12 + $0xf0] sm:$0xff]  }
 0x3c4   :  { %v4941_v9 = vadd.f32 %v8232_v52, %v4898_v41  ;;  %v4937_v13 = vadd.f32 %v8226_v38, %v4894_v10  ;;  %v7768_v52 = vld [vmem:[#allocation9 + $0xda8] ss:$28 sps:$4 sm:$0xff]  }
 0x3c5   :  { %5322 = vmatmul.mubr.bf16.vlgmr.msra.gmra.mxu1 %v8193_v20  ;;  %6930 = vmatpush3.bf16.msra.mxu0 %v7735_v16  ;;  %v7769_v38 = vld [vmem:[#allocation9 + $0xbe8] ss:$28 sps:$4 sm:$0xff]   ;;  %v7773_v16 = vld [vmem:[#allocation9 + $0xb78] ss:$28 sps:$4 sm:$0xff]  }
 0x3c6   :  { %6894 = vmatpush3.bf16.msra.mxu1 %v7734_v24  ;;  %5405 = vmatprep.mubr.bf16.mxu1 %v8159_v3  ;;  %v7745_v3 = vld [vmem:[#allocation12 + $0x68] sm:$0xff]   ;;  %v4984_v14 = vadd.f32 %v8236_v56, %v4941_v9  ;;  %v4980_v30 = vadd.f32 %v8228_v39, %v4937_v13  ;;  %v7785_v9 = vld [vmem:[#allocation12 + $0xb0] sm:$0xff]  }
 0x3c7   :  { %6895 = vmatprep.subr.bf16.mxu1 %v7736_v27  ;;  %6959 = vmatprep.subr.bf16.mxu0 %v7737_v28  ;;  %v7770_v56 = vld [vmem:[#allocation9 + $0xd70] ss:$28 sps:$4 sm:$0xff]   ;;  %v7772_v24 = vld [vmem:[#allocation9 + $0xd38] ss:$28 sps:$4 sm:$0xff]   ;;  %v5024_v27 = vpop.f32.mrf.mxu0  ;;  %v7775_v28 = vld [vmem:[#allocation9 + $0xb40] ss:$28 sps:$4 sm:$0xff]  }
 0x3c8   :  { %5447 = vmatmul.mubr.bf16.vlgmr.msra.gmra.mxu0 %v8178_v55  ;;  %v7751_v55 = vld [vmem:[#allocation12 + $0x20] sm:$0xff]   ;;  %v5496_v19 = vpack.c.bf16 %v4984_v14, %v4980_v30  ;;  %v7809_v13 = vld [vmem:[#allocation12 + $0x110] sm:$0xff]  }
 0x3c9   :  { %6960 = vmatpush3.bf16.msra.mxu0 %v7739_v31  ;;  %5997 = vmatprep.mubr.bf16.mxu0 %v5504_v2  ;;  %v7771_v39 = vld [vmem:[#allocation9 + $0xbb0] ss:$28 sps:$4 sm:$0xff]   ;;  %v7776_v31 = vld [vmem:[#allocation9 + $0xcc8] ss:$28 sps:$4 sm:$0xff]  }
 0x3ca   :  { %6896 = vmatpush3.bf16.msra.mxu1 %v7738_v42  ;;  %6961 = vmatprep.subr.bf16.mxu0 %v7741_v34  ;;  %v5503_v23 = vmax.bf16 %v8010_v1, %v5496_v19  ;;  %v7800_v42 = vld [vmem:[#allocation12 + $0x170] sm:$0xff]   ;;  %v7777_v2 = vld [vmem:[#allocation9 + $0xb08] ss:$28 sps:$4 sm:$0xff]  }
 0x3cb   :  { %6897 = vmatprep.subr.bf16.mxu1 %v7740_v33  ;;  %v8259_v33 = vpop.f32.mrf.mxu0  ;;  %v7801_v34 = vld [vmem:[#allocation12 + $0x130] sm:$0xff]  }
 0x3cd   :  { %6962 = vmatpush3.bf16.msra.mxu0 %v7743_v37  ;;  %v8261_v37 = vpop.f32.mrf.mxu1 }
 0x3ce   :  { %6898 = vmatpush3.bf16.msra.mxu1 %v7742_v35  ;;  %6963 = vmatprep.subr.bf16.mxu0 %v7745_v3  ;;  %v7802_v35 = vld [vmem:[#allocation12 + $0x168] sm:$0xff]   ;;  %v5028_v3 = vpop.f32.mrf.mxu0 }
 0x3cf   :  { %6899 = vmatprep.subr.bf16.mxu1 %v7744_v53  ;;  %v7778_v53 = vld [vmem:[#allocation9 + $0xc90] ss:$28 sps:$4 sm:$0xff]   ;;  %v5029_v10 = vadd.f32 %v5028_v3, %v2492_v59 }
 0x3d0   :  { %v7794_v3 = vld [vmem:[#allocation12 + $0xc8] sm:$0xff]  }
 0x3d1   :  { %6964 = vmatpush3.bf16.msra.mxu0 %v7747_v44  ;;  %v7779_v44 = vld [vmem:[#allocation9 + $0xad0] ss:$28 sps:$4 sm:$0xff]  }
 0x3d2   :  { %6900 = vmatpush3.bf16.msra.mxu1 %v7746_v43  ;;  %6965 = vmatprep.subr.bf16.mxu0 %v7749_v46  ;;  %v7803_v43 = vld [vmem:[#allocation12 + $0x128] sm:$0xff]   ;;  %v5067_v46 = vpop.f32.mrf.mxu1 }
 0x3d3   :  { %6901 = vmatprep.subr.bf16.mxu1 %v7748_v45  ;;  %v7804_v45 = vld [vmem:[#allocation12 + $0x160] sm:$0xff]  }
 0x3d5   :  { %6966 = vmatpush3.bf16.msra.mxu0 %v7751_v55  ;;  %v7780_v55 = vld [vmem:[#allocation9 + $0xc58] ss:$28 sps:$4 sm:$0xff]  }
 0x3d6   :  { %6902 = vmatpush3.bf16.msra.mxu1 %v7750_v47  ;;  %6967 = vmatprep.subr.bf16.mxu0 %v7753_v49  ;;  %v8263_v47 = vpop.f32.mrf.mxu0  ;;  %v7781_v49 = vld [vmem:[#allocation9 + $0xa98] ss:$28 sps:$4 sm:$0xff]  }
 0x3d7   :  { %6903 = vmatprep.subr.bf16.mxu1 %v7752_v48  ;;  %v7805_v48 = vld [vmem:[#allocation12 + $0x120] sm:$0xff]  }
 0x3d9   :  { %6968 = vmatpush3.bf16.msra.mxu0 %v7755_v51  ;;  %v8265_v51 = vpop.f32.mrf.mxu1 }
 0x3da   :  { %6904 = vmatpush3.bf16.msra.mxu1 %v7754_v50  ;;  %6969 = vmatprep.subr.bf16.mxu0 %v7757_v58  ;;  %v7806_v50 = vld [vmem:[#allocation12 + $0x158] sm:$0xff]  }
 0x3db   :  { %6905 = vmatprep.subr.bf16.mxu1 %v7756_v54  ;;  %v5110_v54 = vpop.f32.mrf.mxu0  ;;  %v7807_v58 = vld [vmem:[#allocation12 + $0x118] sm:$0xff]  }
 0x3dd   :  { %6970 = vmatpush3.bf16.msra.mxu0 %v7759_v62  ;;  %v5071_v62 = vpop.f32.mrf.mxu1 }
 0x3de   :  { %6906 = vmatpush3.bf16.msra.mxu1 %v7758_v60  ;;  %6971 = vmatprep.subr.bf16.mxu0 %v7761_v6  ;;  %v7783_v60 = vld [vmem:[#allocation12 + $0xb8] sm:$0xff]   ;;  %v5025_v6 = vadd.f32 %v5024_v27, %v2492_v59  ;;  %v7821_v59 = vld [vmem:[#allocation12 + $0x180] sm:$0xff]  }
 0x3df   :  { %6907 = vmatprep.subr.bf16.mxu1 %v7760_v63  ;;  %v5112_v63 = vpop.f32.mrf.mxu0  ;;  %v7790_v27 = vld [vmem:[#allocation12 + $0xd8] sm:$0xff]  }
 0x3e0   :  { %v5068_v14 = vadd.f32 %v5067_v46, %v5025_v6 }
 0x3e1   :  { %6972 = vmatpush3.bf16.msra.mxu0 %v7763_v25  ;;  %v5114_v25 = vpop.f32.mrf.mxu0 }
 0x3e2   :  { %6908 = vmatpush3.bf16.msra.mxu1 %v7762_v12  ;;  %6973 = vmatprep.subr.bf16.mxu0 %v7765_v7  ;;  %v7808_v12 = vld [vmem:[#allocation12 + $0x150] sm:$0xff]   ;;  %v5072_v7 = vadd.f32 %v5071_v62, %v5029_v10 }
 0x3e3   :  { %6937 = vmatprep.subr.bf16.mxu1 %v7764_v36 }
 0x3e5   :  { %5406 = vmatmul.mubr.bf16.vlgmr.msra.gmra.mxu1 %v8162_v5  ;;  %6974 = vmatpush3.bf16.msra.mxu0 %v7767_v15  ;;  %v7774_v5 = vld [vmem:[#allocation9 + $0xd00] ss:$28 sps:$4 sm:$0xff]   ;;  %v5115_v15 = vadd.f32 %v5114_v25, %v5072_v7  ;;  %v2496_v25 = vrot.slane %v8230_v61, %v621_v21 }
 0x3e6   :  { %6938 = vmatpush3.bf16.msra.mxu1 %v7766_v18  ;;  %5487 = vmatprep.mubr.bf16.mxu1 %v8190_v17  ;;  %v7798_v17 = vld [vmem:[#allocation12 + $0x178] sm:$0xff]   ;;  %v5111_v18 = vadd.f32 %v5110_v54, %v5068_v14 }
 0x3e7   :  { %6939 = vmatprep.subr.bf16.mxu1 %v7768_v52  ;;  %7003 = vmatprep.subr.bf16.mxu0 %v7798_v17  ;;  %v7810_v52 = vld [vmem:[#allocation12 + $0x148] sm:$0xff]   ;;  %v7818_v54 = vld [vmem:[#allocation12 + $0x198] sm:$0xff]  }
 0x3e8   :  { %5998 = vmatmul.mubr.bf16.vlgmr.msra.gmra.mxu0 %v5503_v23 }
 0x3e9   :  { %7004 = vmatpush3.bf16.msra.mxu0 %v7799_v29  ;;  %v7791_v29 = vld [vmem:[#allocation12 + $0x98] sm:$0xff]  }
 0x3ea   :  { %6940 = vmatpush3.bf16.msra.mxu1 %v7769_v38  ;;  %7005 = vmatprep.subr.bf16.mxu0 %v7800_v42  ;;  %v7788_v38 = vld [vmem:[#allocation12 + $0xe0] sm:$0xff]   ;;  %v2488_v42 = vrot.slane %v8230_v61, %v8106_v11 }
 0x3eb   :  { %6941 = vmatprep.subr.bf16.mxu1 %v7770_v56  ;;  %v7811_v56 = vld [vmem:[#allocation12 + $0x108] sm:$0xff]  }
 0x3ed   :  { %7006 = vmatpush3.bf16.msra.mxu0 %v7801_v34  ;;  %v5027_v34 = vadd.f32 %v8259_v33, %v2488_v42  ;;  %v7797_v33 = vld [vmem:[#allocation12 + $0x80] sm:$0xff]  }
 0x3ee   :  { %6942 = vmatpush3.bf16.msra.mxu1 %v7771_v39  ;;  %7007 = vmatprep.subr.bf16.mxu0 %v7802_v35  ;;  %v5023_v35 = vadd.f32 %v8257_v26, %v2488_v42 }
 0x3ef   :  { %6943 = vmatprep.subr.bf16.mxu1 %v7772_v24 }
 0x3f1   :  { %7008 = vmatpush3.bf16.msra.mxu0 %v7803_v43  ;;  %v5066_v43 = vadd.f32 %v8261_v37, %v5023_v35  ;;  %v7814_v37 = vld [vmem:[#allocation12 + $0x1b8] sm:$0xff]  }
 0x3f2   :  { %6944 = vmatpush3.bf16.msra.mxu1 %v7773_v16  ;;  %7009 = vmatprep.subr.bf16.mxu0 %v7804_v45  ;;  %v7789_v16 = vld [vmem:[#allocation12 + $0xa0] sm:$0xff]   ;;  %v7795_v45 = vld [vmem:[#allocation12 + $0x88] sm:$0xff]  }
 0x3f3   :  { %6945 = vmatprep.subr.bf16.mxu1 %v7774_v5  ;;  %v7812_v5 = vld [vmem:[#allocation12 + $0x140] sm:$0xff]   ;;  %v5109_v46 = vadd.f32 %v8263_v47, %v5066_v43  ;;  %v7815_v47 = vld [vmem:[#allocation12 + $0x1b0] sm:$0xff]  }
 0x3f5   :  { %7010 = vmatpush3.bf16.msra.mxu0 %v7805_v48 }
 0x3f6   :  { %6946 = vmatpush3.bf16.msra.mxu1 %v7775_v28  ;;  %7011 = vmatprep.subr.bf16.mxu0 %v7806_v50  ;;  %v7813_v28 = vld [vmem:[#allocation12 + $0x100] sm:$0xff]   ;;  %v7816_v50 = vld [vmem:[#allocation12 + $0x1a8] sm:$0xff]  }
 0x3f7   :  { %6947 = vmatprep.subr.bf16.mxu1 %v7776_v31  ;;  %v7792_v31 = vld [vmem:[#allocation12 + $0xd0] sm:$0xff]  }
 0x3f9   :  { %7012 = vmatpush3.bf16.msra.mxu0 %v7807_v58  ;;  %v7820_v58 = vld [vmem:[#allocation12 + $0x188] sm:$0xff]  }
 0x3fa   :  { %6948 = vmatpush3.bf16.msra.mxu1 %v7777_v2  ;;  %7013 = vmatprep.subr.bf16.mxu0 %v7808_v12  ;;  %v7793_v2 = vld [vmem:[#allocation12 + $0x90] sm:$0xff]  }
 0x3fb   :  { %6949 = vmatprep.subr.bf16.mxu1 %v7778_v53  ;;  %v5070_v53 = vadd.f32 %v8265_v51, %v5027_v34  ;;  %v7817_v51 = vld [vmem:[#allocation12 + $0x1a0] sm:$0xff]  }
 0x3fd   :  { %7014 = vmatpush3.bf16.msra.mxu0 %v7809_v13 }
 0x3fe   :  { %6950 = vmatpush3.bf16.msra.mxu1 %v7779_v44  ;;  %7015 = vmatprep.subr.bf16.mxu0 %v7810_v52  ;;  %v5113_v44 = vadd.f32 %v5112_v63, %v5070_v53 }
 0x3ff   :  { %6951 = vmatprep.subr.bf16.mxu1 %v7780_v55  ;;  %v7796_v55 = vld [vmem:[#allocation12 + $0xc0] sm:$0xff]  }
 0x401   :  { %7016 = vmatpush3.bf16.msra.mxu0 %v7811_v56 }
 0x402   :  { %6952 = vmatpush3.bf16.msra.mxu1 %v7781_v49  ;;  %7017 = vmatprep.subr.bf16.mxu0 %v7812_v5 }
 0x403   :  { %6981 = vmatprep.subr.bf16.mxu1 %v7782_v57  ;;  %v7819_v57 = vld [vmem:[#allocation12 + $0x190] sm:$0xff]  }
 0x405   :  { %v5151_v41 = vpop.f32.mrf.mxu1  ;;  %5488 = vmatmul.mubr.bf16.vlgmr.msra.gmra.mxu1 %v8193_v20  ;;  %v7787_v20 = vld [vmem:[#allocation12 + $0xa8] sm:$0xff]   ;;  %7018 = vmatpush3.bf16.msra.mxu0 %v7813_v28 }
 0x406   :  { %6982 = vmatpush3.bf16.msra.mxu1 %v7783_v60  ;;  %v5152_v48 = vadd.f32 %v5151_v41, %v5109_v46 }
 0x407   :  { %v5153_v36 = vpop.f32.mrf.mxu1  ;;  %6983 = vmatprep.subr.bf16.mxu1 %v7784_v4 }
 0x408   :  { %v5154_v23 = vadd.f32 %v5153_v36, %v5111_v18  ;;  %v5194_v60 = vpop.f32.mrf.mxu0  ;;  %v2500_v36 = vrot.slane %v8230_v61, %v625_v22 }
 0x409   :  { %v5155_v30 = vpop.f32.mrf.mxu1  ;;  %v5195_v14 = vadd.f32 %v5194_v60, %v2496_v25 }
 0x40a   :  { %6984 = vmatpush3.bf16.msra.mxu1 %v7785_v9  ;;  %v5156_v11 = vadd.f32 %v5155_v30, %v5113_v44  ;;  %v5196_v62 = vpop.f32.mrf.mxu0 }
 0x40b   :  { %v5157_v19 = vpop.f32.mrf.mxu1  ;;  %6985 = vmatprep.subr.bf16.mxu1 %v7786_v32  ;;  %v5197_v30 = vadd.f32 %v5196_v62, %v2500_v36 }
 0x40c   :  { %v5158_v39 = vadd.f32 %v5157_v19, %v5115_v15  ;;  %v5498_v49 = vpack.c.bf16 %v5156_v11, %v5152_v48  ;;  %v5198_v63 = vpop.f32.mrf.mxu0  ;;  %v2504_v48 = vrot.slane %v8230_v61, %v629_v40 }
 0x40d   :  { %v5199_v13 = vadd.f32 %v5198_v63, %v2496_v25 }
 0x40e   :  { %v5499_v24 = vpack.c.bf16 %v5158_v39, %v5154_v23  ;;  %6986 = vmatpush3.bf16.msra.mxu1 %v7787_v20  ;;  %v5505_v26 = vmax.bf16 %v8010_v1, %v5498_v49  ;;  %v5200_v41 = vpop.f32.mrf.mxu0 }
 0x40f   :  { %6987 = vmatprep.subr.bf16.mxu1 %v7788_v38  ;;  %v5201_v18 = vadd.f32 %v5200_v41, %v2500_v36 }
 0x410   :  { %v5506_v17 = vmax.bf16 %v8010_v1, %v5499_v24 }
 0x412   :  { %6988 = vmatpush3.bf16.msra.mxu1 %v7789_v16  ;;  %6038 = vmatprep.mubr.bf16.mxu1 %v5506_v17 }
 0x413   :  { %6989 = vmatprep.subr.bf16.mxu1 %v7790_v27 }
 0x416   :  { %6990 = vmatpush3.bf16.msra.mxu1 %v7791_v29 }
 0x417   :  { %6991 = vmatprep.subr.bf16.mxu1 %v7792_v31 }
 0x41a   :  { %6992 = vmatpush3.bf16.msra.mxu1 %v7793_v2 }
 0x41b   :  { %6993 = vmatprep.subr.bf16.mxu1 %v7794_v3 }
 0x41e   :  { %6994 = vmatpush3.bf16.msra.mxu1 %v7795_v45 }
 0x41f   :  { %6995 = vmatprep.subr.bf16.mxu1 %v7796_v55 }
 0x422   :  { %6996 = vmatpush3.bf16.msra.mxu1 %v7797_v33 }
 0x423   :  { %7054 = vmatprep.subr.bf16.mxu1 %v8008_v0 }
 0x425   :  { %6039 = vmatmul.mubr.bf16.vlgmr.msra.gmra.mxu1 %v5505_v26 }
 0x426   :  { %7070 = vmatprep.mubr.msk.bf16.mxu1 %vm8009_vm0, %v8008_v0  ;;  %7055 = vmatpush3.bf16.msra.mxu1 %v7814_v37 }
 0x427   :  { %7056 = vmatprep.subr.bf16.mxu1 %v8008_v0 }
 0x42a   :  { %7057 = vmatpush3.bf16.msra.mxu1 %v7815_v47 }
 0x42b   :  { %7058 = vmatprep.subr.bf16.mxu1 %v8008_v0 }
 0x42e   :  { %7059 = vmatpush3.bf16.msra.mxu1 %v7816_v50 }
 0x42f   :  { %7060 = vmatprep.subr.bf16.mxu1 %v8008_v0 }
 0x432   :  { %7061 = vmatpush3.bf16.msra.mxu1 %v7817_v51 }
 0x433   :  { %7062 = vmatprep.subr.bf16.mxu1 %v8008_v0 }
 0x436   :  { %7063 = vmatpush3.bf16.msra.mxu1 %v7818_v54 }
 0x437   :  { %7064 = vmatprep.subr.bf16.mxu1 %v8008_v0 }
 0x43a   :  { %7065 = vmatpush3.bf16.msra.mxu1 %v7819_v57 }
 0x43b   :  { %7066 = vmatprep.subr.bf16.mxu1 %v8008_v0 }
 0x43e   :  { %7067 = vmatpush3.bf16.msra.mxu1 %v7820_v58 }
 0x43f   :  { %7068 = vmatprep.subr.bf16.mxu1 %v8008_v0 }
 0x442   :  { %7069 = vmatpush3.bf16.msra.mxu1 %v7821_v59 }
 0x445   :  { %v5237_v4 = vpop.f32.mrf.mxu1 }
 0x446   :  { %v5238_v20 = vadd.f32 %v5237_v4, %v5195_v14 }
 0x447   :  { %v5239_v6 = vpop.f32.mrf.mxu1 }
 0x448   :  { %v5280_v10 = vpop.f32.mrf.mxu0  ;;  %v5240_v38 = vadd.f32 %v5239_v6, %v5197_v30 }
 0x449   :  { %v5241_v9 = vpop.f32.mrf.mxu1  ;;  %v5281_v39 = vadd.f32 %v5280_v10, %v5238_v20 }
 0x44a   :  { %v5282_v12 = vpop.f32.mrf.mxu0  ;;  %v5242_v15 = vadd.f32 %v5241_v9, %v5199_v13 }
 0x44b   :  { %v5243_v0 = vpop.f32.mrf.mxu1  ;;  %v5283_v24 = vadd.f32 %v5282_v12, %v5240_v38 }
 0x44c   :  { %v5284_v32 = vpop.f32.mrf.mxu0  ;;  %v5244_v56 = vadd.f32 %v5243_v0, %v5201_v18 }
 0x44d   :  { %v5285_v23 = vadd.f32 %v5284_v32, %v5242_v15 }
 0x44e   :  { %v5286_v52 = vpop.f32.mrf.mxu0 }
 0x44f   :  { %v5287_v16 = vadd.f32 %v5286_v52, %v5244_v56  ;;  %v6805_v52 = vld [vmem:[#allocation13] ss:$0 sm:$0xff] }
 0x468   :  { %v6887_v2 = vpop.f32.mrf.mxu0 }
 0x46a   :  { %v6888_v35 = vpop.f32.mrf.mxu0 }
 0x46b   :  { %v6889_v33 = vadd.f32 %v6888_v35, %v6887_v2 }
 0x46c   :  { %v6890_v53 = vpop.f32.mrf.mxu0 }
 0x46d   :  { %v5367_v51 = vadd.f32 %v6889_v33, %v2504_v48 }
 0x46e   :  { %v6891_v43 = vpop.f32.mrf.mxu0 }
 0x46f   :  { %v6892_v49 = vadd.f32 %v6891_v43, %v6890_v53 }
 0x471   :  { %v5370_v54 = vadd.f32 %v6892_v49, %v2504_v48 }
 0x485   :  { %v5323_v7 = vpop.f32.mrf.mxu1 }
 0x486   :  { %v5324_v22 = vadd.f32 %v5323_v7, %v5281_v39 }
 0x487   :  { %v5325_v19 = vpop.f32.mrf.mxu1 }
 0x488   :  { %v5326_v28 = vadd.f32 %v5325_v19, %v5283_v24  ;;  %v6931_v45 = vpop.f32.mrf.mxu0 }
 0x489   :  { %v5327_v21 = vpop.f32.mrf.mxu1 }
 0x48a   :  { %v5328_v5 = vadd.f32 %v5327_v21, %v5285_v23  ;;  %v6932_v11 = vpop.f32.mrf.mxu0 }
 0x48b   :  { %v5329_v27 = vpop.f32.mrf.mxu1  ;;  %v6933_v63 = vadd.f32 %v6932_v11, %v6931_v45 }
 0x48c   :  { %v5330_v17 = vadd.f32 %v5329_v27, %v5287_v16  ;;  %v5500_v29 = vpack.c.bf16 %v5328_v5, %v5324_v22  ;;  %v6934_v26 = vpop.f32.mrf.mxu0 }
 0x48e   :  { %v5501_v42 = vpack.c.bf16 %v5330_v17, %v5326_v28  ;;  %v5507_v34 = vmax.bf16 %v8010_v1, %v5500_v29  ;;  %v6935_v57 = vpop.f32.mrf.mxu0 }
 0x48f   :  { %v6936_v4 = vadd.f32 %v6935_v57, %v6934_v26 }
 0x490   :  { %v5508_v31 = vmax.bf16 %v8010_v1, %v5501_v42 }
 0x492   :  { %6079 = vmatprep.mubr.bf16.mxu0 %v5508_v31 }
 0x493   :  { %6080 = vmatmul.mubr.bf16.vlgmr.msra.gmra.mxu0 %v5507_v34 }
 0x4a5   :  { %v6909_v3 = vpop.f32.mrf.mxu1 }
 0x4a7   :  { %v6910_v44 = vpop.f32.mrf.mxu1 }
 0x4a8   :  { %v6911_v37 = vadd.f32 %v6910_v44, %v6909_v3  ;;  %v6975_v36 = vpop.f32.mrf.mxu0 }
 0x4a9   :  { %v6912_v46 = vpop.f32.mrf.mxu1 }
 0x4aa   :  { %v5408_v59 = vadd.f32 %v6911_v37, %v5367_v51  ;;  %v6976_v0 = vpop.f32.mrf.mxu0 }
 0x4ab   :  { %v6913_v55 = vpop.f32.mrf.mxu1  ;;  %v6977_v20 = vadd.f32 %v6976_v0, %v6975_v36 }
 0x4ac   :  { %v6914_v47 = vadd.f32 %v6913_v55, %v6912_v46  ;;  %v5449_v8 = vadd.f32 %v6933_v63, %v5408_v59  ;;  %v6978_v32 = vpop.f32.mrf.mxu0 }
 0x4ad   :  { %v6000_v23 = vadd.f32 %v6977_v20, %v6805_v52 }
 0x4ae   :  { %v5411_v60 = vadd.f32 %v6914_v47, %v5370_v54  ;;  %v6979_v13 = vpop.f32.mrf.mxu0 }
 0x4af   :  { %v6980_v39 = vadd.f32 %v6979_v13, %v6978_v32 }
 0x4b0   :  { %v5452_v10 = vadd.f32 %v6936_v4, %v5411_v60 }
 0x4b1   :  { %v6003_v5 = vadd.f32 %v6980_v39, %v6805_v52 }
 0x4c5   :  { %v6953_v50 = vpop.f32.mrf.mxu1 }
 0x4c7   :  { %v6954_v58 = vpop.f32.mrf.mxu1 }
 0x4c8   :  { %v6955_v41 = vadd.f32 %v6954_v58, %v6953_v50 }
 0x4c9   :  { %v6956_v62 = vpop.f32.mrf.mxu1 }
 0x4ca   :  { %v5490_v61 = vadd.f32 %v6955_v41, %v5449_v8 }
 0x4cb   :  { %v6957_v6 = vpop.f32.mrf.mxu1 }
 0x4cc   :  { %v6958_v40 = vadd.f32 %v6957_v6, %v6956_v62 }
 0x4ce   :  { %v5493_v9 = vadd.f32 %v6958_v40, %v5452_v10 }
 0x4d0   :  { %v5502_v12 = vpack.c.bf16 %v5493_v9, %v5490_v61 }
 0x4d2   :  { %v5509_v25 = vmax.bf16 %v8010_v1, %v5502_v12 }
 0x4d4   :  { %7071 = vmatmul.mubr.bf16.vlgmr.msra.gmra.mxu1 %v5509_v25 }
 0x4e5   :  { %v6997_v14 = vpop.f32.mrf.mxu1 }
 0x4e7   :  { %v6998_v30 = vpop.f32.mrf.mxu1 }
 0x4e8   :  { %v6999_v38 = vadd.f32 %v6998_v30, %v6997_v14 }
 0x4e9   :  { %v7000_v15 = vpop.f32.mrf.mxu1 }
 0x4ea   :  { %v6041_v1 = vadd.f32 %v6999_v38, %v6000_v23 }
 0x4eb   :  { %v7001_v56 = vpop.f32.mrf.mxu1 }
 0x4ec   :  { %v7002_v16 = vadd.f32 %v7001_v56, %v7000_v15 }
 0x4ee   :  { %v6044_v17 = vadd.f32 %v7002_v16, %v6003_v5 }
 0x553   :  { %v7019_v7 = vpop.f32.mrf.mxu0 }
 0x555   :  { %v7020_v18 = vpop.f32.mrf.mxu0 }
 0x556   :  { %v7021_v21 = vadd.f32 %v7020_v18, %v7019_v7 }
 0x557   :  { %v7022_v19 = vpop.f32.mrf.mxu0 }
 0x558   :  { %v6082_v27 = vadd.f32 %v7021_v21, %v6041_v1 }
 0x559   :  { %v7023_v24 = vpop.f32.mrf.mxu0 }
 0x55a   :  { %v7024_v22 = vadd.f32 %v7023_v24, %v7022_v19 }
 0x55c   :  { %v6085_v31 = vadd.f32 %v7024_v22, %v6044_v17 }
 0x594   :  { %v6122_v28 = vpop.f32.mrf.mxu1 }
 0x595   :  { %v6123_v29 = vadd.f32 %v6122_v28, %v6082_v27 }
 0x596   :  { %v7072_v42 = vpop.f32.mrf.mxu1 }
 0x597   :  { %6129 = vst [vmem:[%s8317_s9] sm:$0xff] %v6123_v29 }
 0x598   :  { %v6125_v34 = vpop.f32.mrf.mxu1 }
 0x599   :  { %v6126_v2 = vadd.f32 %v6125_v34, %v6085_v31 }
 0x59a   :  { %v7073_v35 = vpop.f32.mrf.mxu1 }
 0x59b   :  { %6130 = vst [vmem:[%s8317_s9 + $0x8] sm:$0xff] %v6126_v2 }
 0x59c   :  { %6135 = vsyncpa [#allocation3], 1 }
 0x59d   :  { %6136 = vsyncpa [#allocation5], 1 }
 0x59e   :  { %6137 = vsyncpa [#allocation8], 1 }
 0x59f   :  { %6138 = vsyncpa [#allocation11], 1 }
 0x5a0   :  { %6139 = vsyncpa [#allocation14], 1 }

</bundles_post_ra>
